<compile_context>
chip_gen: v7x
topology: tpu7x:2x2x1
jax: 0.10.0
libtpu: 0.0.40
codegen_flags: <defaults>
</compile_context>

<pallas_src>
import functools

import jax
import jax.numpy as jnp
from jax.experimental import pallas as pl
from jax.experimental.pallas import tpu as pltpu

EPS = 1e-5
LANE = 128            # channel axes padded to multiples of this
TILE_M = 256          # rows per grid step; sweep 512-2048 for production
                      # shapes against the per-generation VMEM budget
VMEM_LIMIT_BYTES = 64 * 1024 * 1024   # explicit scoped-VMEM budget


def _round_up(x, m):
    return (x + m - 1) // m * m


def _cparams():
    return pltpu.CompilerParams(dimension_semantics=("parallel",),
                                vmem_limit_bytes=VMEM_LIMIT_BYTES)


def _row_tiles(m):
    tile = min(TILE_M, _round_up(m, 8))
    return tile, _round_up(m, tile)


def _pad2d(w, rows, cols):
    return jnp.pad(w, ((0, rows - w.shape[0]), (0, cols - w.shape[1])))


def _pad1(v, cols):
    return jnp.pad(v, (0, cols - v.shape[0])).reshape(1, cols)


# --------------------------- kernel bodies ----------------------------------

def _write_stats(st_ref, h):
    st_ref[0, 0:1, :] = jnp.sum(h, axis=0, keepdims=True)
    st_ref[0, 1:2, :] = jnp.sum(h * h, axis=0, keepdims=True)


def _mm_stats_kernel(x_ref, w_ref, h_ref, st_ref):
    """1x1 conv tile: h = x @ w (bf16 MXU, f32 acc) + per-tile BN partials."""
    h = jnp.dot(x_ref[...].astype(jnp.bfloat16),
                w_ref[...].astype(jnp.bfloat16),
                preferred_element_type=jnp.float32)
    h_ref[...] = h
    _write_stats(st_ref, h)


def _bn_relu_kernel(h_ref, sc_ref, bi_ref, o_ref):
    o_ref[...] = jnp.maximum(h_ref[...] * sc_ref[...] + bi_ref[...], 0.0)


def _conv3x3_stats_kernel(ph_ref, w_ref, h_ref, st_ref, *, stride, dilation,
                          ho, wo):
    """3x3 conv for one image: 9 taps from polyphase slabs, 9 MXU matmuls."""
    cin = ph_ref.shape[-1]
    cout = w_ref.shape[-1]
    acc = jnp.zeros((ho * wo, cout), jnp.float32)
    for kh in range(3):
        for kw in range(3):
            dh, dw = kh * dilation, kw * dilation
            pi = (dh % stride) * stride + (dw % stride)   # polyphase image
            r0, c0 = dh // stride, dw // stride
            tap = ph_ref[pi, 0, r0:r0 + ho, c0:c0 + wo, :]
            acc = acc + jnp.dot(
                tap.reshape(ho * wo, cin).astype(jnp.bfloat16),
                w_ref[kh * 3 + kw].astype(jnp.bfloat16),
                preferred_element_type=jnp.float32)
    h_ref[0] = acc
    _write_stats(st_ref, acc)


def _mask_rows(a, m_true):
    row = (pl.program_id(0) * a.shape[0]
           + jax.lax.broadcasted_iota(jnp.int32, a.shape, 0))
    return jnp.where(row < m_true, a, 0.0)


def _conv3_ds_stats_kernel(h2_ref, sc2_ref, bi2_ref, w3_ref, xd_ref, wd_ref,
                           h3_ref, hd_ref, st3_ref, std_ref, *, m_true,
                           needs_mask):
    """BN2+ReLU applied on load, conv3 + downsample 1x1 conv, BN partials."""
    a2 = jnp.maximum(h2_ref[...] * sc2_ref[...] + bi2_ref[...], 0.0)
    if needs_mask:  # zero out padded rows so BN3 statistics stay exact
        a2 = _mask_rows(a2, m_true)
    h3 = jnp.dot(a2.astype(jnp.bfloat16), w3_ref[...].astype(jnp.bfloat16),
                 preferred_element_type=jnp.float32)
    hd = jnp.dot(xd_ref[...].astype(jnp.bfloat16),
                 wd_ref[...].astype(jnp.bfloat16),
                 preferred_element_type=jnp.float32)
    h3_ref[...] = h3
    hd_ref[...] = hd
    _write_stats(st3_ref, h3)
    _write_stats(std_ref, hd)


def _conv3_stats_kernel(h2_ref, sc2_ref, bi2_ref, w3_ref, h3_ref, st3_ref, *,
                        m_true, needs_mask):
    a2 = jnp.maximum(h2_ref[...] * sc2_ref[...] + bi2_ref[...], 0.0)
    if needs_mask:
        a2 = _mask_rows(a2, m_true)
    h3 = jnp.dot(a2.astype(jnp.bfloat16), w3_ref[...].astype(jnp.bfloat16),
                 preferred_element_type=jnp.float32)
    h3_ref[...] = h3
    _write_stats(st3_ref, h3)


def _bn_bn_add_relu_kernel(h3_ref, sc3_ref, bi3_ref, hd_ref, scd_ref, bid_ref,
                           o_ref):
    y = (h3_ref[...] * sc3_ref[...] + bi3_ref[...]
         + hd_ref[...] * scd_ref[...] + bid_ref[...])
    o_ref[...] = jnp.maximum(y, 0.0)


def _bn_add_relu_kernel(h3_ref, sc3_ref, bi3_ref, res_ref, o_ref):
    o_ref[...] = jnp.maximum(
        h3_ref[...] * sc3_ref[...] + bi3_ref[...] + res_ref[...], 0.0)


# --------------------------- pallas_call wrappers ----------------------------

def _matmul_stats(x2d, w, tile):
    m_pad, cin = x2d.shape
    cout = w.shape[1]
    grid = (m_pad // tile,)
    return pl.pallas_call(
        _mm_stats_kernel,
        grid=grid,
        in_specs=[pl.BlockSpec((tile, cin), lambda i: (i, 0)),
                  pl.BlockSpec((cin, cout), lambda i: (0, 0))],
        out_specs=[pl.BlockSpec((tile, cout), lambda i: (i, 0)),
                   pl.BlockSpec((1, 2, cout), lambda i: (i, 0, 0))],
        out_shape=[jax.ShapeDtypeStruct((m_pad, cout), jnp.float32),
                   jax.ShapeDtypeStruct((grid[0], 2, cout), jnp.float32)],
        compiler_params=_cparams(),
    )(x2d, w)


def _bn_relu(h, scale, bias, tile):
    m_pad, c = h.shape
    return pl.pallas_call(
        _bn_relu_kernel,
        grid=(m_pad // tile,),
        in_specs=[pl.BlockSpec((tile, c), lambda i: (i, 0)),
                  pl.BlockSpec((1, c), lambda i: (0, 0)),
                  pl.BlockSpec((1, c), lambda i: (0, 0))],
        out_specs=pl.BlockSpec((tile, c), lambda i: (i, 0)),
        out_shape=jax.ShapeDtypeStruct((m_pad, c), jnp.float32),
        compiler_params=_cparams(),
    )(h, scale, bias)


def _conv3x3_stats(phases, w9, ho, wo, stride, dilation):
    s2, n, hph, wph, cin = phases.shape
    cout = w9.shape[-1]
    kern = functools.partial(_conv3x3_stats_kernel, stride=stride,
                             dilation=dilation, ho=ho, wo=wo)
    return pl.pallas_call(
        kern,
        grid=(n,),
        in_specs=[pl.BlockSpec((s2, 1, hph, wph, cin),
                               lambda i: (0, i, 0, 0, 0)),
                  pl.BlockSpec((9, cin, cout), lambda i: (0, 0, 0))],
        out_specs=[pl.BlockSpec((1, ho * wo, cout), lambda i: (i, 0, 0)),
                   pl.BlockSpec((1, 2, cout), lambda i: (i, 0, 0))],
        out_shape=[jax.ShapeDtypeStruct((n, ho * wo, cout), jnp.float32),
                   jax.ShapeDtypeStruct((n, 2, cout), jnp.float32)],
        compiler_params=_cparams(),
    )(phases, w9)


def _conv3_ds_stats(h2, scale2, bias2, w3, xds, wds, m_true, tile):
    m_pad, cb = h2.shape
    cout = w3.shape[1]
    cin = xds.shape[1]
    grid = (m_pad // tile,)
    kern = functools.partial(_conv3_ds_stats_kernel, m_true=m_true,
                             needs_mask=(m_pad != m_true))
    return pl.pallas_call(
        kern,
        grid=grid,
        in_specs=[pl.BlockSpec((tile, cb), lambda i: (i, 0)),
                  pl.BlockSpec((1, cb), lambda i: (0, 0)),
                  pl.BlockSpec((1, cb), lambda i: (0, 0)),
                  pl.BlockSpec((cb, cout), lambda i: (0, 0)),
                  pl.BlockSpec((tile, cin), lambda i: (i, 0)),
                  pl.BlockSpec((cin, cout), lambda i: (0, 0))],
        out_specs=[pl.BlockSpec((tile, cout), lambda i: (i, 0)),
                   pl.BlockSpec((tile, cout), lambda i: (i, 0)),
                   pl.BlockSpec((1, 2, cout), lambda i: (i, 0, 0)),
                   pl.BlockSpec((1, 2, cout), lambda i: (i, 0, 0))],
        out_shape=[jax.ShapeDtypeStruct((m_pad, cout), jnp.float32),
                   jax.ShapeDtypeStruct((m_pad, cout), jnp.float32),
                   jax.ShapeDtypeStruct((grid[0], 2, cout), jnp.float32),
                   jax.ShapeDtypeStruct((grid[0], 2, cout), jnp.float32)],
        compiler_params=_cparams(),
    )(h2, scale2, bias2, w3, xds, wds)


def _conv3_stats(h2, scale2, bias2, w3, m_true, tile):
    m_pad, cb = h2.shape
    cout = w3.shape[1]
    grid = (m_pad // tile,)
    kern = functools.partial(_conv3_stats_kernel, m_true=m_true,
                             needs_mask=(m_pad != m_true))
    return pl.pallas_call(
        kern,
        grid=grid,
        in_specs=[pl.BlockSpec((tile, cb), lambda i: (i, 0)),
                  pl.BlockSpec((1, cb), lambda i: (0, 0)),
                  pl.BlockSpec((1, cb), lambda i: (0, 0)),
                  pl.BlockSpec((cb, cout), lambda i: (0, 0))],
        out_specs=[pl.BlockSpec((tile, cout), lambda i: (i, 0)),
                   pl.BlockSpec((1, 2, cout), lambda i: (i, 0, 0))],
        out_shape=[jax.ShapeDtypeStruct((m_pad, cout), jnp.float32),
                   jax.ShapeDtypeStruct((grid[0], 2, cout), jnp.float32)],
        compiler_params=_cparams(),
    )(h2, scale2, bias2, w3)


def _bn_bn_add_relu(h3, sc3, bi3, hd, scd, bid, tile):
    m_pad, c = h3.shape
    return pl.pallas_call(
        _bn_bn_add_relu_kernel,
        grid=(m_pad // tile,),
        in_specs=[pl.BlockSpec((tile, c), lambda i: (i, 0)),
                  pl.BlockSpec((1, c), lambda i: (0, 0)),
                  pl.BlockSpec((1, c), lambda i: (0, 0)),
                  pl.BlockSpec((tile, c), lambda i: (i, 0)),
                  pl.BlockSpec((1, c), lambda i: (0, 0)),
                  pl.BlockSpec((1, c), lambda i: (0, 0))],
        out_specs=pl.BlockSpec((tile, c), lambda i: (i, 0)),
        out_shape=jax.ShapeDtypeStruct((m_pad, c), jnp.float32),
        compiler_params=_cparams(),
    )(h3, sc3, bi3, hd, scd, bid)


def _bn_add_relu(h3, sc3, bi3, res, tile):
    m_pad, c = h3.shape
    return pl.pallas_call(
        _bn_add_relu_kernel,
        grid=(m_pad // tile,),
        in_specs=[pl.BlockSpec((tile, c), lambda i: (i, 0)),
                  pl.BlockSpec((1, c), lambda i: (0, 0)),
                  pl.BlockSpec((1, c), lambda i: (0, 0)),
                  pl.BlockSpec((tile, c), lambda i: (i, 0))],
        out_specs=pl.BlockSpec((tile, c), lambda i: (i, 0)),
        out_shape=jax.ShapeDtypeStruct((m_pad, c), jnp.float32),
        compiler_params=_cparams(),
    )(h3, sc3, bi3, res)


# --------------------------- plain-JAX glue ----------------------------------

def _finalize_bn(partials, count, gamma, beta):
    """(tiles, 2, C) partial [sum, sumsq] -> exact full-M BN scale/bias."""
    total = jnp.sum(partials, axis=0)
    mean = total[0] / count
    var = jnp.maximum(total[1] / count - mean * mean, 0.0)
    scale = gamma * jax.lax.rsqrt(var + EPS)
    bias = beta - mean * scale
    return scale, bias


def _conv2_weight(w_torch, groups, c_pad):
    """(Cout, Cin/g, 3, 3) grouped weight -> block-diagonal dense (9, Cp, Cp)."""
    cout, cin_pg, _, _ = w_torch.shape
    cin = cin_pg * groups
    cout_pg = cout // groups
    dense = jnp.zeros((cout, cin, 3, 3), w_torch.dtype)
    for g in range(groups):
        dense = dense.at[g * cout_pg:(g + 1) * cout_pg,
                         g * cin_pg:(g + 1) * cin_pg].set(
            w_torch[g * cout_pg:(g + 1) * cout_pg])
    w = jnp.transpose(dense, (2, 3, 1, 0)).reshape(9, cin, cout)
    return jnp.pad(w, ((0, 0), (0, c_pad - cin), (0, c_pad - cout)))


def _phase_decompose(xpad, stride):
    """Polyphase split of the padded NHWC input: (s*s, N, Hp/s, Wp/s, C)."""
    n, hp, wp, c = xpad.shape
    s = stride
    hp2, wp2 = _round_up(hp, s), _round_up(wp, s)
    xpad = jnp.pad(xpad, ((0, 0), (0, hp2 - hp), (0, wp2 - wp), (0, 0)))
    x = xpad.reshape(n, hp2 // s, s, wp2 // s, s, c)
    x = jnp.transpose(x, (2, 4, 0, 1, 3, 5))
    return x.reshape(s * s, n, hp2 // s, wp2 // s, c)


# --------------------------- forward pass ------------------------------------

def bottleneck_forward(x_nchw, params, *, stride, dilation, groups):
    n, cin, h, w = x_nchw.shape
    cb = params['w1'].shape[1]
    cout = params['w3'].shape[1]
    cin_p = _round_up(cin, LANE)
    cb_p = _round_up(cb, LANE)
    cout_p = _round_up(cout, LANE)

    # NCHW -> NHWC, lane-pad channels (padded channels stay exactly zero
    # end-to-end because padded gamma entries are zero).
    x = jnp.transpose(x_nchw, (0, 2, 3, 1))
    x_p = jnp.pad(x, ((0, 0), (0, 0), (0, 0), (0, cin_p - cin)))

    w1 = _pad2d(params['w1'], cin_p, cb_p).astype(jnp.bfloat16)
    w3 = _pad2d(params['w3'], cb_p, cout_p).astype(jnp.bfloat16)
    w2 = _conv2_weight(params['w2'], groups, cb_p).astype(jnp.bfloat16)
    g1, b1 = _pad1(params['g1'], cb_p), _pad1(params['b1'], cb_p)
    g2, b2 = _pad1(params['g2'], cb_p), _pad1(params['b2'], cb_p)
    g3, b3 = _pad1(params['g3'], cout_p), _pad1(params['b3'], cout_p)

    # ---- conv1 (1x1) + BN1 partial stats; then BN1+ReLU apply --------------
    m1 = n * h * w
    tile1, m1_pad = _row_tiles(m1)
    x2d = jnp.pad(x_p.reshape(m1, cin_p), ((0, m1_pad - m1), (0, 0)))
    h1, st1 = _matmul_stats(x2d, w1, tile1)
    sc1, bi1 = _finalize_bn(st1, m1, g1, b1)
    a1 = _bn_relu(h1, sc1, bi1, tile1)[:m1].reshape(n, h, w, cb_p)
    # TODO(synk): BN1+ReLU could be folded into conv2's load with an in-kernel
    # spatial-padding mask to save one activation HBM round trip.

    # ---- conv2 (3x3, grouped/strided/dilated) + BN2 partial stats ----------
    pad = dilation
    ho = (h + 2 * pad - 2 * dilation - 1) // stride + 1
    wo = (w + 2 * pad - 2 * dilation - 1) // stride + 1
    a1p = jnp.pad(a1, ((0, 0), (pad, pad), (pad, pad), (0, 0)))
    phases = _phase_decompose(a1p, stride)
    h2, st2 = _conv3x3_stats(phases, w2, ho, wo, stride, dilation)
    m3 = n * ho * wo
    sc2, bi2 = _finalize_bn(st2, m3, g2, b2)

    tile3, m3_pad = _row_tiles(m3)
    h2f = jnp.pad(h2.reshape(m3, cb_p), ((0, m3_pad - m3), (0, 0)))

    # ---- conv3 (1x1) fused with BN2+ReLU on load (+ downsample branch) -----
    if params.get('w_ds') is not None:
        ds = stride if dilation == 1 else 1
        x_ds = x_p[:, ::ds, ::ds, :]
        assert x_ds.shape[1] == ho and x_ds.shape[2] == wo
        xdsf = jnp.pad(x_ds.reshape(m3, cin_p), ((0, m3_pad - m3), (0, 0)))
        w_ds = _pad2d(params['w_ds'], cin_p, cout_p).astype(jnp.bfloat16)
        g_ds, b_ds = _pad1(params['g_ds'], cout_p), _pad1(params['b_ds'], cout_p)
        h3, hd, st3, std = _conv3_ds_stats(h2f, sc2, bi2, w3, xdsf, w_ds,
                                           m3, tile3)
        sc3, bi3 = _finalize_bn(st3, m3, g3, b3)
        scd, bid = _finalize_bn(std, m3, g_ds, b_ds)
        y2d = _bn_bn_add_relu(h3, sc3, bi3, hd, scd, bid, tile3)
    else:
        assert cin == cout and stride == 1, (
            "identity residual requires in==out channels and stride 1")
        h3, st3 = _conv3_stats(h2f, sc2, bi2, w3, m3, tile3)
        sc3, bi3 = _finalize_bn(st3, m3, g3, b3)
        res = jnp.pad(x_p.reshape(m1, cin_p), ((0, m3_pad - m1), (0, 0)))
        y2d = _bn_add_relu(h3, sc3, bi3, res, tile3)

    y = y2d[:m3, :cout].reshape(n, ho, wo, cout)
    return jnp.transpose(y, (0, 3, 1, 2))   # NHWC -> NCHW


def kaiming_uniform(key, shape, fan_in, a=1.0):
    bound = (6.0 / ((1.0 + a * a) * fan_in)) ** 0.5
    return jax.random.uniform(key, shape, jnp.float32, -bound, bound)


if __name__ == "__main__":
    # Small shapes consistent with the module's forward.
    N, Cin, H, W = 2, 4, 16, 16
    Cb, Cout = 8, 16          # bottleneck_channels, out_channels
    groups, stride, dilation = 2, 2, 1

    key = jax.random.PRNGKey(0)
    keys = jax.random.split(key, 6)
    x = jax.random.normal(keys[0], (N, Cin, H, W), jnp.float32)

    params = {
        # conv1: (Cin, Cb) matmul layout of the (Cb, Cin, 1, 1) torch weight
        'w1': kaiming_uniform(keys[1], (Cin, Cb), fan_in=Cin),
        'g1': jnp.ones((Cb,), jnp.float32), 'b1': jnp.zeros((Cb,), jnp.float32),
        # conv2: PyTorch layout (Cout=Cb, Cin/groups, 3, 3)
        'w2': kaiming_uniform(keys[2], (Cb, Cb // groups, 3, 3),
                              fan_in=(Cb // groups) * 9),
        'g2': jnp.ones((Cb,), jnp.float32), 'b2': jnp.zeros((Cb,), jnp.float32),
        # conv3: (Cb, Cout)
        'w3': kaiming_uniform(keys[3], (Cb, Cout), fan_in=Cb),
        'g3': jnp.ones((Cout,), jnp.float32), 'b3': jnp.zeros((Cout,), jnp.float32),
        # downsample 1x1 conv (exists since Cin != Cout): (Cin, Cout)
        'w_ds': kaiming_uniform(keys[4], (Cin, Cout), fan_in=Cin),
        'g_ds': jnp.ones((Cout,), jnp.float32),
        'b_ds': jnp.zeros((Cout,), jnp.float32),
    }

    fwd = jax.jit(functools.partial(bottleneck_forward, stride=stride,
                                    dilation=dilation, groups=groups))
    y = fwd(x, params)
    jax.block_until_ready(y)
    assert y.shape == (N, Cout, H // stride, W // stride), y.shape
    assert bool(jnp.all(jnp.isfinite(y)))
    print("KERNEL_OK")
</pallas_src>

<mosaic_0001>
module attributes {stable_mosaic.version = 11 : i64} {
  func.func @_mm_stats_kernel(%arg0: i32, %arg1: memref<256x128xf32, #tpu.memory_space<vmem>>, %arg2: memref<128x128xbf16, #tpu.memory_space<vmem>>, %arg3: memref<256x128xf32, #tpu.memory_space<vmem>>, %arg4: memref<1x2x128xf32, #tpu.memory_space<vmem>>) attributes {dimension_semantics = [#tpu.dimension_semantics<parallel>], iteration_bounds = array<i64: 2>, scalar_prefetch = 0 : i64, scratch_operands = 0 : i64, tpu.core_type = #tpu.core_type<tc>, window_params = [{transform_indices = @transform_0, window_bounds = array<i64: 256, 128>}, {pipeline_mode = #tpu.pipeline_mode<synchronous>, transform_indices = @transform_1, window_bounds = array<i64: 128, 128>}, {transform_indices = @transform_2, window_bounds = array<i64: 256, 128>}, {transform_indices = @transform_3, window_bounds = array<i64: 1, 2, 128>}]} {
    %c0 = arith.constant 0 : index
    %c0_0 = arith.constant 0 : index
    %0 = vector.load %arg1[%c0, %c0_0] : memref<256x128xf32, #tpu.memory_space<vmem>>, vector<256x128xf32>
    %1 = arith.truncf %0 : vector<256x128xf32> to vector<256x128xbf16>
    %c0_1 = arith.constant 0 : index
    %c0_2 = arith.constant 0 : index
    %2 = vector.load %arg2[%c0_1, %c0_2] : memref<128x128xbf16, #tpu.memory_space<vmem>>, vector<128x128xbf16>
    %cst = arith.constant dense<0.000000e+00> : vector<256x128xf32>
    %3 = tpu.matmul %1, %2, %cst {dimension_numbers = #tpu.dot_dimension_numbers<[1], [0], [0], [1], [0, 0, 1, 1], [], []>} : vector<256x128xbf16>, vector<128x128xbf16>, vector<256x128xf32> -> vector<256x128xf32>
    %c0_3 = arith.constant 0 : index
    %c0_4 = arith.constant 0 : index
    %4 = vector.load %arg3[%c0_3, %c0_4] : memref<256x128xf32, #tpu.memory_space<vmem>>, vector<256x128xf32>
    tpu.vector_store %arg3[%c0_3, %c0_4], %3 {strides = array<i32>} : memref<256x128xf32, #tpu.memory_space<vmem>>, vector<256x128xf32>,
    %cst_5 = arith.constant dense<0.000000e+00> : vector<128xf32>
    %5 = vector.multi_reduction <add>, %3, %cst_5 [0] : vector<256x128xf32> to vector<128xf32>
    %6 = vector.shape_cast %5 : vector<128xf32> to vector<1x128xf32>
    %c0_6 = arith.constant 0 : index
    %c0_7 = arith.constant 0 : index
    %c0_8 = arith.constant 0 : index
    %7 = vector.load %arg4[%c0_6, %c0_7, %c0_8] : memref<1x2x128xf32, #tpu.memory_space<vmem>>, vector<1x1x128xf32>
    %8 = vector.shape_cast %7 : vector<1x1x128xf32> to vector<1x128xf32>
    %9 = vector.shape_cast %6 : vector<1x128xf32> to vector<1x1x128xf32>
    tpu.vector_store %arg4[%c0_6, %c0_7, %c0_8], %9 {strides = array<i32>} : memref<1x2x128xf32, #tpu.memory_space<vmem>>, vector<1x1x128xf32>,
    %10 = arith.mulf %3, %3 : vector<256x128xf32>
    %cst_9 = arith.constant dense<0.000000e+00> : vector<128xf32>
    %11 = vector.multi_reduction <add>, %10, %cst_9 [0] : vector<256x128xf32> to vector<128xf32>
    %12 = vector.shape_cast %11 : vector<128xf32> to vector<1x128xf32>
    %c0_10 = arith.constant 0 : index
    %c1 = arith.constant 1 : index
    %c0_11 = arith.constant 0 : index
    %13 = vector.load %arg4[%c0_10, %c1, %c0_11] : memref<1x2x128xf32, #tpu.memory_space<vmem>>, vector<1x1x128xf32>
    %14 = vector.shape_cast %13 : vector<1x1x128xf32> to vector<1x128xf32>
    %15 = vector.shape_cast %12 : vector<1x128xf32> to vector<1x1x128xf32>
    tpu.vector_store %arg4[%c0_10, %c1, %c0_11], %15 {strides = array<i32>} : memref<1x2x128xf32, #tpu.memory_space<vmem>>, vector<1x1x128xf32>,
    return
  }
  func.func @transform_0(%arg0: i32) -> (i32, i32) {
    %c0_i32 = arith.constant 0 : i32
    %c0_i32_0 = arith.constant 0 : i32
    return %arg0, %c0_i32 : i32, i32
  }
  func.func @transform_1(%arg0: i32) -> (i32, i32) {
    %c0_i32 = arith.constant 0 : i32
    %c0_i32_0 = arith.constant 0 : i32
    %c0_i32_1 = arith.constant 0 : i32
    return %c0_i32, %c0_i32_0 : i32, i32
  }
  func.func @transform_2(%arg0: i32) -> (i32, i32) {
    %c0_i32 = arith.constant 0 : i32
    %c0_i32_0 = arith.constant 0 : i32
    return %arg0, %c0_i32 : i32, i32
  }
  func.func @transform_3(%arg0: i32) -> (i32, i32, i32) {
    %c0_i32 = arith.constant 0 : i32
    %c0_i32_0 = arith.constant 0 : i32
    %c0_i32_1 = arith.constant 0 : i32
    return %arg0, %c0_i32, %c0_i32_0 : i32, i32, i32
  }
}

module attributes {stable_mosaic.version = 11 : i64} {
  func.func @_bn_relu_kernel(%arg0: i32, %arg1: memref<256x128xf32, #tpu.memory_space<vmem>>, %arg2: memref<1x128xf32, #tpu.memory_space<vmem>>, %arg3: memref<1x128xf32, #tpu.memory_space<vmem>>, %arg4: memref<256x128xf32, #tpu.memory_space<vmem>>) attributes {dimension_semantics = [#tpu.dimension_semantics<parallel>], iteration_bounds = array<i64: 2>, scalar_prefetch = 0 : i64, scratch_operands = 0 : i64, tpu.core_type = #tpu.core_type<tc>, window_params = [{transform_indices = @transform_0, window_bounds = array<i64: 256, 128>}, {pipeline_mode = #tpu.pipeline_mode<synchronous>, transform_indices = @transform_1, window_bounds = array<i64: 1, 128>}, {pipeline_mode = #tpu.pipeline_mode<synchronous>, transform_indices = @transform_2, window_bounds = array<i64: 1, 128>}, {transform_indices = @transform_3, window_bounds = array<i64: 256, 128>}]} {
    %c0 = arith.constant 0 : index
    %c0_0 = arith.constant 0 : index
    %0 = vector.load %arg1[%c0, %c0_0] : memref<256x128xf32, #tpu.memory_space<vmem>>, vector<256x128xf32>
    %c0_1 = arith.constant 0 : index
    %c0_2 = arith.constant 0 : index
    %1 = vector.load %arg2[%c0_1, %c0_2] : memref<1x128xf32, #tpu.memory_space<vmem>>, vector<1x128xf32>
    %2 = vector.broadcast %1 : vector<1x128xf32> to vector<256x128xf32>
    %3 = arith.mulf %0, %2 : vector<256x128xf32>
    %c0_3 = arith.constant 0 : index
    %c0_4 = arith.constant 0 : index
    %4 = vector.load %arg3[%c0_3, %c0_4] : memref<1x128xf32, #tpu.memory_space<vmem>>, vector<1x128xf32>
    %5 = vector.broadcast %4 : vector<1x128xf32> to vector<256x128xf32>
    %6 = arith.addf %3, %5 : vector<256x128xf32>
    %cst = arith.constant 0.000000e+00 : f32
    %7 = vector.broadcast %cst : f32 to vector<256x128xf32>
    %8 = arith.maximumf %6, %7 : vector<256x128xf32>
    %c0_5 = arith.constant 0 : index
    %c0_6 = arith.constant 0 : index
    %9 = vector.load %arg4[%c0_5, %c0_6] : memref<256x128xf32, #tpu.memory_space<vmem>>, vector<256x128xf32>
    tpu.vector_store %arg4[%c0_5, %c0_6], %8 {strides = array<i32>} : memref<256x128xf32, #tpu.memory_space<vmem>>, vector<256x128xf32>,
    return
  }
  func.func @transform_0(%arg0: i32) -> (i32, i32) {
    %c0_i32 = arith.constant 0 : i32
    %c0_i32_0 = arith.constant 0 : i32
    return %arg0, %c0_i32 : i32, i32
  }
  func.func @transform_1(%arg0: i32) -> (i32, i32) {
    %c0_i32 = arith.constant 0 : i32
    %c0_i32_0 = arith.constant 0 : i32
    %c0_i32_1 = arith.constant 0 : i32
    return %c0_i32, %c0_i32_0 : i32, i32
  }
  func.func @transform_2(%arg0: i32) -> (i32, i32) {
    %c0_i32 = arith.constant 0 : i32
    %c0_i32_0 = arith.constant 0 : i32
    %c0_i32_1 = arith.constant 0 : i32
    return %c0_i32, %c0_i32_0 : i32, i32
  }
  func.func @transform_3(%arg0: i32) -> (i32, i32) {
    %c0_i32 = arith.constant 0 : i32
    %c0_i32_0 = arith.constant 0 : i32
    return %arg0, %c0_i32 : i32, i32
  }
}

module attributes {stable_mosaic.version = 11 : i64} {
  func.func @_conv3x3_stats_kernel(%arg0: i32, %arg1: memref<4x1x9x9x128xf32, #tpu.memory_space<vmem>>, %arg2: memref<9x128x128xbf16, #tpu.memory_space<vmem>>, %arg3: memref<1x64x128xf32, #tpu.memory_space<vmem>>, %arg4: memref<1x2x128xf32, #tpu.memory_space<vmem>>) attributes {dimension_semantics = [#tpu.dimension_semantics<parallel>], iteration_bounds = array<i64: 2>, scalar_prefetch = 0 : i64, scratch_operands = 0 : i64, tpu.core_type = #tpu.core_type<tc>, window_params = [{transform_indices = @transform_0, window_bounds = array<i64: 4, 1, 9, 9, 128>}, {pipeline_mode = #tpu.pipeline_mode<synchronous>, transform_indices = @transform_1, window_bounds = array<i64: 9, 128, 128>}, {transform_indices = @transform_2, window_bounds = array<i64: 1, 64, 128>}, {transform_indices = @transform_3, window_bounds = array<i64: 1, 2, 128>}]} {
    %cst = arith.constant 0.000000e+00 : f32
    %0 = vector.broadcast %cst : f32 to vector<64x128xf32>
    %c0 = arith.constant 0 : index
    %c0_0 = arith.constant 0 : index
    %c0_1 = arith.constant 0 : index
    %c0_2 = arith.constant 0 : index
    %c0_3 = arith.constant 0 : index
    %1 = vector.load %arg1[%c0, %c0_0, %c0_1, %c0_2, %c0_3] : memref<4x1x9x9x128xf32, #tpu.memory_space<vmem>>, vector<1x1x8x8x128xf32>
    %2 = vector.shape_cast %1 : vector<1x1x8x8x128xf32> to vector<8x8x128xf32>
    %3 = vector.shape_cast %2 : vector<8x8x128xf32> to vector<64x128xf32>
    %4 = arith.truncf %3 : vector<64x128xf32> to vector<64x128xbf16>
    %c0_4 = arith.constant 0 : index
    %c0_5 = arith.constant 0 : index
    %c0_6 = arith.constant 0 : index
    %5 = vector.load %arg2[%c0_4, %c0_5, %c0_6] : memref<9x128x128xbf16, #tpu.memory_space<vmem>>, vector<1x128x128xbf16>
    %6 = vector.shape_cast %5 : vector<1x128x128xbf16> to vector<128x128xbf16>
    %cst_7 = arith.constant dense<0.000000e+00> : vector<64x128xf32>
    %7 = tpu.matmul %4, %6, %cst_7 {dimension_numbers = #tpu.dot_dimension_numbers<[1], [0], [0], [1], [0, 0, 1, 1], [], []>} : vector<64x128xbf16>, vector<128x128xbf16>, vector<64x128xf32> -> vector<64x128xf32>
    %8 = arith.addf %0, %7 : vector<64x128xf32>
    %c1 = arith.constant 1 : index
    %c0_8 = arith.constant 0 : index
    %c0_9 = arith.constant 0 : index
    %c0_10 = arith.constant 0 : index
    %c0_11 = arith.constant 0 : index
    %9 = vector.load %arg1[%c1, %c0_8, %c0_9, %c0_10, %c0_11] : memref<4x1x9x9x128xf32, #tpu.memory_space<vmem>>, vector<1x1x8x8x128xf32>
    %10 = vector.shape_cast %9 : vector<1x1x8x8x128xf32> to vector<8x8x128xf32>
    %11 = vector.shape_cast %10 : vector<8x8x128xf32> to vector<64x128xf32>
    %12 = arith.truncf %11 : vector<64x128xf32> to vector<64x128xbf16>
    %c1_12 = arith.constant 1 : index
    %c0_13 = arith.constant 0 : index
    %c0_14 = arith.constant 0 : index
    %13 = vector.load %arg2[%c1_12, %c0_13, %c0_14] : memref<9x128x128xbf16, #tpu.memory_space<vmem>>, vector<1x128x128xbf16>
    %14 = vector.shape_cast %13 : vector<1x128x128xbf16> to vector<128x128xbf16>
    %cst_15 = arith.constant dense<0.000000e+00> : vector<64x128xf32>
    %15 = tpu.matmul %12, %14, %cst_15 {dimension_numbers = #tpu.dot_dimension_numbers<[1], [0], [0], [1], [0, 0, 1, 1], [], []>} : vector<64x128xbf16>, vector<128x128xbf16>, vector<64x128xf32> -> vector<64x128xf32>
    %16 = arith.addf %8, %15 : vector<64x128xf32>
    %c0_16 = arith.constant 0 : index
    %c0_17 = arith.constant 0 : index
    %c0_18 = arith.constant 0 : index
    %c1_19 = arith.constant 1 : index
    %c0_20 = arith.constant 0 : index
    %17 = vector.load %arg1[%c0_16, %c0_17, %c0_18, %c1_19, %c0_20] : memref<4x1x9x9x128xf32, #tpu.memory_space<vmem>>, vector<1x1x8x8x128xf32>
    %18 = vector.shape_cast %17 : vector<1x1x8x8x128xf32> to vector<8x8x128xf32>
    %19 = vector.shape_cast %18 : vector<8x8x128xf32> to vector<64x128xf32>
    %20 = arith.truncf %19 : vector<64x128xf32> to vector<64x128xbf16>
    %c2 = arith.constant 2 : index
    %c0_21 = arith.constant 0 : index
    %c0_22 = arith.constant 0 : index
    %21 = vector.load %arg2[%c2, %c0_21, %c0_22] : memref<9x128x128xbf16, #tpu.memory_space<vmem>>, vector<1x128x128xbf16>
    %22 = vector.shape_cast %21 : vector<1x128x128xbf16> to vector<128x128xbf16>
    %cst_23 = arith.constant dense<0.000000e+00> : vector<64x128xf32>
    %23 = tpu.matmul %20, %22, %cst_23 {dimension_numbers = #tpu.dot_dimension_numbers<[1], [0], [0], [1], [0, 0, 1, 1], [], []>} : vector<64x128xbf16>, vector<128x128xbf16>, vector<64x128xf32> -> vector<64x128xf32>
    %24 = arith.addf %16, %23 : vector<64x128xf32>
    %c2_24 = arith.constant 2 : index
    %c0_25 = arith.constant 0 : index
    %c0_26 = arith.constant 0 : index
    %c0_27 = arith.constant 0 : index
    %c0_28 = arith.constant 0 : index
    %25 = vector.load %arg1[%c2_24, %c0_25, %c0_26, %c0_27, %c0_28] : memref<4x1x9x9x128xf32, #tpu.memory_space<vmem>>, vector<1x1x8x8x128xf32>
    %26 = vector.shape_cast %25 : vector<1x1x8x8x128xf32> to vector<8x8x128xf32>
    %27 = vector.shape_cast %26 : vector<8x8x128xf32> to vector<64x128xf32>
    %28 = arith.truncf %27 : vector<64x128xf32> to vector<64x128xbf16>
    %c3 = arith.constant 3 : index
    %c0_29 = arith.constant 0 : index
    %c0_30 = arith.constant 0 : index
    %29 = vector.load %arg2[%c3, %c0_29, %c0_30] : memref<9x128x128xbf16, #tpu.memory_space<vmem>>, vector<1x128x128xbf16>
    %30 = vector.shape_cast %29 : vector<1x128x128xbf16> to vector<128x128xbf16>
    %cst_31 = arith.constant dense<0.000000e+00> : vector<64x128xf32>
    %31 = tpu.matmul %28, %30, %cst_31 {dimension_numbers = #tpu.dot_dimension_numbers<[1], [0], [0], [1], [0, 0, 1, 1], [], []>} : vector<64x128xbf16>, vector<128x128xbf16>, vector<64x128xf32> -> vector<64x128xf32>
    %32 = arith.addf %24, %31 : vector<64x128xf32>
    %c3_32 = arith.constant 3 : index
    %c0_33 = arith.constant 0 : index
    %c0_34 = arith.constant 0 : index
    %c0_35 = arith.constant 0 : index
    %c0_36 = arith.constant 0 : index
    %33 = vector.load %arg1[%c3_32, %c0_33, %c0_34, %c0_35, %c0_36] : memref<4x1x9x9x128xf32, #tpu.memory_space<vmem>>, vector<1x1x8x8x128xf32>
    %34 = vector.shape_cast %33 : vector<1x1x8x8x128xf32> to vector<8x8x128xf32>
    %35 = vector.shape_cast %34 : vector<8x8x128xf32> to vector<64x128xf32>
    %36 = arith.truncf %35 : vector<64x128xf32> to vector<64x128xbf16>
    %c4 = arith.constant 4 : index
    %c0_37 = arith.constant 0 : index
    %c0_38 = arith.constant 0 : index
    %37 = vector.load %arg2[%c4, %c0_37, %c0_38] : memref<9x128x128xbf16, #tpu.memory_space<vmem>>, vector<1x128x128xbf16>
    %38 = vector.shape_cast %37 : vector<1x128x128xbf16> to vector<128x128xbf16>
    %cst_39 = arith.constant dense<0.000000e+00> : vector<64x128xf32>
    %39 = tpu.matmul %36, %38, %cst_39 {dimension_numbers = #tpu.dot_dimension_numbers<[1], [0], [0], [1], [0, 0, 1, 1], [], []>} : vector<64x128xbf16>, vector<128x128xbf16>, vector<64x128xf32> -> vector<64x128xf32>
    %40 = arith.addf %32, %39 : vector<64x128xf32>
    %c2_40 = arith.constant 2 : index
    %c0_41 = arith.constant 0 : index
    %c0_42 = arith.constant 0 : index
    %c1_43 = arith.constant 1 : index
    %c0_44 = arith.constant 0 : index
    %41 = vector.load %arg1[%c2_40, %c0_41, %c0_42, %c1_43, %c0_44] : memref<4x1x9x9x128xf32, #tpu.memory_space<vmem>>, vector<1x1x8x8x128xf32>
    %42 = vector.shape_cast %41 : vector<1x1x8x8x128xf32> to vector<8x8x128xf32>
    %43 = vector.shape_cast %42 : vector<8x8x128xf32> to vector<64x128xf32>
    %44 = arith.truncf %43 : vector<64x128xf32> to vector<64x128xbf16>
    %c5 = arith.constant 5 : index
    %c0_45 = arith.constant 0 : index
    %c0_46 = arith.constant 0 : index
    %45 = vector.load %arg2[%c5, %c0_45, %c0_46] : memref<9x128x128xbf16, #tpu.memory_space<vmem>>, vector<1x128x128xbf16>
    %46 = vector.shape_cast %45 : vector<1x128x128xbf16> to vector<128x128xbf16>
    %cst_47 = arith.constant dense<0.000000e+00> : vector<64x128xf32>
    %47 = tpu.matmul %44, %46, %cst_47 {dimension_numbers = #tpu.dot_dimension_numbers<[1], [0], [0], [1], [0, 0, 1, 1], [], []>} : vector<64x128xbf16>, vector<128x128xbf16>, vector<64x128xf32> -> vector<64x128xf32>
    %48 = arith.addf %40, %47 : vector<64x128xf32>
    %c0_48 = arith.constant 0 : index
    %c0_49 = arith.constant 0 : index
    %c1_50 = arith.constant 1 : index
    %c0_51 = arith.constant 0 : index
    %c0_52 = arith.constant 0 : index
    %49 = vector.load %arg1[%c0_48, %c0_49, %c1_50, %c0_51, %c0_52] : memref<4x1x9x9x128xf32, #tpu.memory_space<vmem>>, vector<1x1x8x8x128xf32>
    %50 = vector.shape_cast %49 : vector<1x1x8x8x128xf32> to vector<8x8x128xf32>
    %51 = vector.shape_cast %50 : vector<8x8x128xf32> to vector<64x128xf32>
    %52 = arith.truncf %51 : vector<64x128xf32> to vector<64x128xbf16>
    %c6 = arith.constant 6 : index
    %c0_53 = arith.constant 0 : index
    %c0_54 = arith.constant 0 : index
    %53 = vector.load %arg2[%c6, %c0_53, %c0_54] : memref<9x128x128xbf16, #tpu.memory_space<vmem>>, vector<1x128x128xbf16>
    %54 = vector.shape_cast %53 : vector<1x128x128xbf16> to vector<128x128xbf16>
    %cst_55 = arith.constant dense<0.000000e+00> : vector<64x128xf32>
    %55 = tpu.matmul %52, %54, %cst_55 {dimension_numbers = #tpu.dot_dimension_numbers<[1], [0], [0], [1], [0, 0, 1, 1], [], []>} : vector<64x128xbf16>, vector<128x128xbf16>, vector<64x128xf32> -> vector<64x128xf32>
    %56 = arith.addf %48, %55 : vector<64x128xf32>
    %c1_56 = arith.constant 1 : index
    %c0_57 = arith.constant 0 : index
    %c1_58 = arith.constant 1 : index
    %c0_59 = arith.constant 0 : index
    %c0_60 = arith.constant 0 : index
    %57 = vector.load %arg1[%c1_56, %c0_57, %c1_58, %c0_59, %c0_60] : memref<4x1x9x9x128xf32, #tpu.memory_space<vmem>>, vector<1x1x8x8x128xf32>
    %58 = vector.shape_cast %57 : vector<1x1x8x8x128xf32> to vector<8x8x128xf32>
    %59 = vector.shape_cast %58 : vector<8x8x128xf32> to vector<64x128xf32>
    %60 = arith.truncf %59 : vector<64x128xf32> to vector<64x128xbf16>
    %c7 = arith.constant 7 : index
    %c0_61 = arith.constant 0 : index
    %c0_62 = arith.constant 0 : index
    %61 = vector.load %arg2[%c7, %c0_61, %c0_62] : memref<9x128x128xbf16, #tpu.memory_space<vmem>>, vector<1x128x128xbf16>
    %62 = vector.shape_cast %61 : vector<1x128x128xbf16> to vector<128x128xbf16>
    %cst_63 = arith.constant dense<0.000000e+00> : vector<64x128xf32>
    %63 = tpu.matmul %60, %62, %cst_63 {dimension_numbers = #tpu.dot_dimension_numbers<[1], [0], [0], [1], [0, 0, 1, 1], [], []>} : vector<64x128xbf16>, vector<128x128xbf16>, vector<64x128xf32> -> vector<64x128xf32>
    %64 = arith.addf %56, %63 : vector<64x128xf32>
    %c0_64 = arith.constant 0 : index
    %c0_65 = arith.constant 0 : index
    %c1_66 = arith.constant 1 : index
    %c1_67 = arith.constant 1 : index
    %c0_68 = arith.constant 0 : index
    %65 = vector.load %arg1[%c0_64, %c0_65, %c1_66, %c1_67, %c0_68] : memref<4x1x9x9x128xf32, #tpu.memory_space<vmem>>, vector<1x1x8x8x128xf32>
    %66 = vector.shape_cast %65 : vector<1x1x8x8x128xf32> to vector<8x8x128xf32>
    %67 = vector.shape_cast %66 : vector<8x8x128xf32> to vector<64x128xf32>
    %68 = arith.truncf %67 : vector<64x128xf32> to vector<64x128xbf16>
    %c8 = arith.constant 8 : index
    %c0_69 = arith.constant 0 : index
    %c0_70 = arith.constant 0 : index
    %69 = vector.load %arg2[%c8, %c0_69, %c0_70] : memref<9x128x128xbf16, #tpu.memory_space<vmem>>, vector<1x128x128xbf16>
    %70 = vector.shape_cast %69 : vector<1x128x128xbf16> to vector<128x128xbf16>
    %cst_71 = arith.constant dense<0.000000e+00> : vector<64x128xf32>
    %71 = tpu.matmul %68, %70, %cst_71 {dimension_numbers = #tpu.dot_dimension_numbers<[1], [0], [0], [1], [0, 0, 1, 1], [], []>} : vector<64x128xbf16>, vector<128x128xbf16>, vector<64x128xf32> -> vector<64x128xf32>
    %72 = arith.addf %64, %71 : vector<64x128xf32>
    %c0_72 = arith.constant 0 : index
    %c0_73 = arith.constant 0 : index
    %c0_74 = arith.constant 0 : index
    %73 = vector.load %arg3[%c0_72, %c0_73, %c0_74] : memref<1x64x128xf32, #tpu.memory_space<vmem>>, vector<1x64x128xf32>
    %74 = vector.shape_cast %73 : vector<1x64x128xf32> to vector<64x128xf32>
    %75 = vector.shape_cast %72 : vector<64x128xf32> to vector<1x64x128xf32>
    tpu.vector_store %arg3[%c0_72, %c0_73, %c0_74], %75 {strides = array<i32>} : memref<1x64x128xf32, #tpu.memory_space<vmem>>, vector<1x64x128xf32>,
    %cst_75 = arith.constant dense<0.000000e+00> : vector<128xf32>
    %76 = vector.multi_reduction <add>, %72, %cst_75 [0] : vector<64x128xf32> to vector<128xf32>
    %77 = vector.shape_cast %76 : vector<128xf32> to vector<1x128xf32>
    %c0_76 = arith.constant 0 : index
    %c0_77 = arith.constant 0 : index
    %c0_78 = arith.constant 0 : index
    %78 = vector.load %arg4[%c0_76, %c0_77, %c0_78] : memref<1x2x128xf32, #tpu.memory_space<vmem>>, vector<1x1x128xf32>
    %79 = vector.shape_cast %78 : vector<1x1x128xf32> to vector<1x128xf32>
    %80 = vector.shape_cast %77 : vector<1x128xf32> to vector<1x1x128xf32>
    tpu.vector_store %arg4[%c0_76, %c0_77, %c0_78], %80 {strides = array<i32>} : memref<1x2x128xf32, #tpu.memory_space<vmem>>, vector<1x1x128xf32>,
    %81 = arith.mulf %72, %72 : vector<64x128xf32>
    %cst_79 = arith.constant dense<0.000000e+00> : vector<128xf32>
    %82 = vector.multi_reduction <add>, %81, %cst_79 [0] : vector<64x128xf32> to vector<128xf32>
    %83 = vector.shape_cast %82 : vector<128xf32> to vector<1x128xf32>
    %c0_80 = arith.constant 0 : index
    %c1_81 = arith.constant 1 : index
    %c0_82 = arith.constant 0 : index
    %84 = vector.load %arg4[%c0_80, %c1_81, %c0_82] : memref<1x2x128xf32, #tpu.memory_space<vmem>>, vector<1x1x128xf32>
    %85 = vector.shape_cast %84 : vector<1x1x128xf32> to vector<1x128xf32>
    %86 = vector.shape_cast %83 : vector<1x128xf32> to vector<1x1x128xf32>
    tpu.vector_store %arg4[%c0_80, %c1_81, %c0_82], %86 {strides = array<i32>} : memref<1x2x128xf32, #tpu.memory_space<vmem>>, vector<1x1x128xf32>,
    return
  }
  func.func @transform_0(%arg0: i32) -> (i32, i32, i32, i32, i32) {
    %c0_i32 = arith.constant 0 : i32
    %c0_i32_0 = arith.constant 0 : i32
    %c0_i32_1 = arith.constant 0 : i32
    %c0_i32_2 = arith.constant 0 : i32
    %c0_i32_3 = arith.constant 0 : i32
    return %c0_i32, %arg0, %c0_i32_0, %c0_i32_1, %c0_i32_2 : i32, i32, i32, i32, i32
  }
  func.func @transform_1(%arg0: i32) -> (i32, i32, i32) {
    %c0_i32 = arith.constant 0 : i32
    %c0_i32_0 = arith.constant 0 : i32
    %c0_i32_1 = arith.constant 0 : i32
    %c0_i32_2 = arith.constant 0 : i32
    return %c0_i32, %c0_i32_0, %c0_i32_1 : i32, i32, i32
  }
  func.func @transform_2(%arg0: i32) -> (i32, i32, i32) {
    %c0_i32 = arith.constant 0 : i32
    %c0_i32_0 = arith.constant 0 : i32
    %c0_i32_1 = arith.constant 0 : i32
    return %arg0, %c0_i32, %c0_i32_0 : i32, i32, i32
  }
  func.func @transform_3(%arg0: i32) -> (i32, i32, i32) {
    %c0_i32 = arith.constant 0 : i32
    %c0_i32_0 = arith.constant 0 : i32
    %c0_i32_1 = arith.constant 0 : i32
    return %arg0, %c0_i32, %c0_i32_0 : i32, i32, i32
  }
}

module attributes {stable_mosaic.version = 11 : i64} {
  func.func @_conv3_ds_stats_kernel(%arg0: i32, %arg1: memref<128x128xf32, #tpu.memory_space<vmem>>, %arg2: memref<1x128xf32, #tpu.memory_space<vmem>>, %arg3: memref<1x128xf32, #tpu.memory_space<vmem>>, %arg4: memref<128x128xbf16, #tpu.memory_space<vmem>>, %arg5: memref<128x128xf32, #tpu.memory_space<vmem>>, %arg6: memref<128x128xbf16, #tpu.memory_space<vmem>>, %arg7: memref<128x128xf32, #tpu.memory_space<vmem>>, %arg8: memref<128x128xf32, #tpu.memory_space<vmem>>, %arg9: memref<1x2x128xf32, #tpu.memory_space<vmem>>, %arg10: memref<1x2x128xf32, #tpu.memory_space<vmem>>) attributes {dimension_semantics = [#tpu.dimension_semantics<parallel>], iteration_bounds = array<i64: 1>, scalar_prefetch = 0 : i64, scratch_operands = 0 : i64, tpu.core_type = #tpu.core_type<tc>, window_params = [{transform_indices = @transform_0, window_bounds = array<i64: 128, 128>}, {pipeline_mode = #tpu.pipeline_mode<synchronous>, transform_indices = @transform_1, window_bounds = array<i64: 1, 128>}, {pipeline_mode = #tpu.pipeline_mode<synchronous>, transform_indices = @transform_2, window_bounds = array<i64: 1, 128>}, {pipeline_mode = #tpu.pipeline_mode<synchronous>, transform_indices = @transform_3, window_bounds = array<i64: 128, 128>}, {transform_indices = @transform_4, window_bounds = array<i64: 128, 128>}, {pipeline_mode = #tpu.pipeline_mode<synchronous>, transform_indices = @transform_5, window_bounds = array<i64: 128, 128>}, {transform_indices = @transform_6, window_bounds = array<i64: 128, 128>}, {transform_indices = @transform_7, window_bounds = array<i64: 128, 128>}, {transform_indices = @transform_8, window_bounds = array<i64: 1, 2, 128>}, {transform_indices = @transform_9, window_bounds = array<i64: 1, 2, 128>}]} {
    %c0 = arith.constant 0 : index
    %c0_0 = arith.constant 0 : index
    %0 = vector.load %arg1[%c0, %c0_0] : memref<128x128xf32, #tpu.memory_space<vmem>>, vector<128x128xf32>
    %c0_1 = arith.constant 0 : index
    %c0_2 = arith.constant 0 : index
    %1 = vector.load %arg2[%c0_1, %c0_2] : memref<1x128xf32, #tpu.memory_space<vmem>>, vector<1x128xf32>
    %2 = vector.broadcast %1 : vector<1x128xf32> to vector<128x128xf32>
    %3 = arith.mulf %0, %2 : vector<128x128xf32>
    %c0_3 = arith.constant 0 : index
    %c0_4 = arith.constant 0 : index
    %4 = vector.load %arg3[%c0_3, %c0_4] : memref<1x128xf32, #tpu.memory_space<vmem>>, vector<1x128xf32>
    %5 = vector.broadcast %4 : vector<1x128xf32> to vector<128x128xf32>
    %6 = arith.addf %3, %5 : vector<128x128xf32>
    %cst = arith.constant 0.000000e+00 : f32
    %7 = vector.broadcast %cst : f32 to vector<128x128xf32>
    %8 = arith.maximumf %6, %7 : vector<128x128xf32>
    %9 = arith.truncf %8 : vector<128x128xf32> to vector<128x128xbf16>
    %c0_5 = arith.constant 0 : index
    %c0_6 = arith.constant 0 : index
    %10 = vector.load %arg4[%c0_5, %c0_6] : memref<128x128xbf16, #tpu.memory_space<vmem>>, vector<128x128xbf16>
    %cst_7 = arith.constant dense<0.000000e+00> : vector<128x128xf32>
    %11 = tpu.matmul %9, %10, %cst_7 {dimension_numbers = #tpu.dot_dimension_numbers<[1], [0], [0], [1], [0, 0, 1, 1], [], []>} : vector<128x128xbf16>, vector<128x128xbf16>, vector<128x128xf32> -> vector<128x128xf32>
    %c0_8 = arith.constant 0 : index
    %c0_9 = arith.constant 0 : index
    %12 = vector.load %arg5[%c0_8, %c0_9] : memref<128x128xf32, #tpu.memory_space<vmem>>, vector<128x128xf32>
    %13 = arith.truncf %12 : vector<128x128xf32> to vector<128x128xbf16>
    %c0_10 = arith.constant 0 : index
    %c0_11 = arith.constant 0 : index
    %14 = vector.load %arg6[%c0_10, %c0_11] : memref<128x128xbf16, #tpu.memory_space<vmem>>, vector<128x128xbf16>
    %cst_12 = arith.constant dense<0.000000e+00> : vector<128x128xf32>
    %15 = tpu.matmul %13, %14, %cst_12 {dimension_numbers = #tpu.dot_dimension_numbers<[1], [0], [0], [1], [0, 0, 1, 1], [], []>} : vector<128x128xbf16>, vector<128x128xbf16>, vector<128x128xf32> -> vector<128x128xf32>
    %c0_13 = arith.constant 0 : index
    %c0_14 = arith.constant 0 : index
    %16 = vector.load %arg7[%c0_13, %c0_14] : memref<128x128xf32, #tpu.memory_space<vmem>>, vector<128x128xf32>
    tpu.vector_store %arg7[%c0_13, %c0_14], %11 {strides = array<i32>} : memref<128x128xf32, #tpu.memory_space<vmem>>, vector<128x128xf32>,
    %c0_15 = arith.constant 0 : index
    %c0_16 = arith.constant 0 : index
    %17 = vector.load %arg8[%c0_15, %c0_16] : memref<128x128xf32, #tpu.memory_space<vmem>>, vector<128x128xf32>
    tpu.vector_store %arg8[%c0_15, %c0_16], %15 {strides = array<i32>} : memref<128x128xf32, #tpu.memory_space<vmem>>, vector<128x128xf32>,
    %cst_17 = arith.constant dense<0.000000e+00> : vector<128xf32>
    %18 = vector.multi_reduction <add>, %11, %cst_17 [0] : vector<128x128xf32> to vector<128xf32>
    %19 = vector.shape_cast %18 : vector<128xf32> to vector<1x128xf32>
    %c0_18 = arith.constant 0 : index
    %c0_19 = arith.constant 0 : index
    %c0_20 = arith.constant 0 : index
    %20 = vector.load %arg9[%c0_18, %c0_19, %c0_20] : memref<1x2x128xf32, #tpu.memory_space<vmem>>, vector<1x1x128xf32>
    %21 = vector.shape_cast %20 : vector<1x1x128xf32> to vector<1x128xf32>
    %22 = vector.shape_cast %19 : vector<1x128xf32> to vector<1x1x128xf32>
    tpu.vector_store %arg9[%c0_18, %c0_19, %c0_20], %22 {strides = array<i32>} : memref<1x2x128xf32, #tpu.memory_space<vmem>>, vector<1x1x128xf32>,
    %23 = arith.mulf %11, %11 : vector<128x128xf32>
    %cst_21 = arith.constant dense<0.000000e+00> : vector<128xf32>
    %24 = vector.multi_reduction <add>, %23, %cst_21 [0] : vector<128x128xf32> to vector<128xf32>
    %25 = vector.shape_cast %24 : vector<128xf32> to vector<1x128xf32>
    %c0_22 = arith.constant 0 : index
    %c1 = arith.constant 1 : index
    %c0_23 = arith.constant 0 : index
    %26 = vector.load %arg9[%c0_22, %c1, %c0_23] : memref<1x2x128xf32, #tpu.memory_space<vmem>>, vector<1x1x128xf32>
    %27 = vector.shape_cast %26 : vector<1x1x128xf32> to vector<1x128xf32>
    %28 = vector.shape_cast %25 : vector<1x128xf32> to vector<1x1x128xf32>
    tpu.vector_store %arg9[%c0_22, %c1, %c0_23], %28 {strides = array<i32>} : memref<1x2x128xf32, #tpu.memory_space<vmem>>, vector<1x1x128xf32>,
    %cst_24 = arith.constant dense<0.000000e+00> : vector<128xf32>
    %29 = vector.multi_reduction <add>, %15, %cst_24 [0] : vector<128x128xf32> to vector<128xf32>
    %30 = vector.shape_cast %29 : vector<128xf32> to vector<1x128xf32>
    %c0_25 = arith.constant 0 : index
    %c0_26 = arith.constant 0 : index
    %c0_27 = arith.constant 0 : index
    %31 = vector.load %arg10[%c0_25, %c0_26, %c0_27] : memref<1x2x128xf32, #tpu.memory_space<vmem>>, vector<1x1x128xf32>
    %32 = vector.shape_cast %31 : vector<1x1x128xf32> to vector<1x128xf32>
    %33 = vector.shape_cast %30 : vector<1x128xf32> to vector<1x1x128xf32>
    tpu.vector_store %arg10[%c0_25, %c0_26, %c0_27], %33 {strides = array<i32>} : memref<1x2x128xf32, #tpu.memory_space<vmem>>, vector<1x1x128xf32>,
    %34 = arith.mulf %15, %15 : vector<128x128xf32>
    %cst_28 = arith.constant dense<0.000000e+00> : vector<128xf32>
    %35 = vector.multi_reduction <add>, %34, %cst_28 [0] : vector<128x128xf32> to vector<128xf32>
    %36 = vector.shape_cast %35 : vector<128xf32> to vector<1x128xf32>
    %c0_29 = arith.constant 0 : index
    %c1_30 = arith.constant 1 : index
    %c0_31 = arith.constant 0 : index
    %37 = vector.load %arg10[%c0_29, %c1_30, %c0_31] : memref<1x2x128xf32, #tpu.memory_space<vmem>>, vector<1x1x128xf32>
    %38 = vector.shape_cast %37 : vector<1x1x128xf32> to vector<1x128xf32>
    %39 = vector.shape_cast %36 : vector<1x128xf32> to vector<1x1x128xf32>
    tpu.vector_store %arg10[%c0_29, %c1_30, %c0_31], %39 {strides = array<i32>} : memref<1x2x128xf32, #tpu.memory_space<vmem>>, vector<1x1x128xf32>,
    return
  }
  func.func @transform_0(%arg0: i32) -> (i32, i32) {
    %c0_i32 = arith.constant 0 : i32
    %c0_i32_0 = arith.constant 0 : i32
    return %arg0, %c0_i32 : i32, i32
  }
  func.func @transform_1(%arg0: i32) -> (i32, i32) {
    %c0_i32 = arith.constant 0 : i32
    %c0_i32_0 = arith.constant 0 : i32
    %c0_i32_1 = arith.constant 0 : i32
    return %c0_i32, %c0_i32_0 : i32, i32
  }
  func.func @transform_2(%arg0: i32) -> (i32, i32) {
    %c0_i32 = arith.constant 0 : i32
    %c0_i32_0 = arith.constant 0 : i32
    %c0_i32_1 = arith.constant 0 : i32
    return %c0_i32, %c0_i32_0 : i32, i32
  }
  func.func @transform_3(%arg0: i32) -> (i32, i32) {
    %c0_i32 = arith.constant 0 : i32
    %c0_i32_0 = arith.constant 0 : i32
    %c0_i32_1 = arith.constant 0 : i32
    return %c0_i32, %c0_i32_0 : i32, i32
  }
  func.func @transform_4(%arg0: i32) -> (i32, i32) {
    %c0_i32 = arith.constant 0 : i32
    %c0_i32_0 = arith.constant 0 : i32
    return %arg0, %c0_i32 : i32, i32
  }
  func.func @transform_5(%arg0: i32) -> (i32, i32) {
    %c0_i32 = arith.constant 0 : i32
    %c0_i32_0 = arith.constant 0 : i32
    %c0_i32_1 = arith.constant 0 : i32
    return %c0_i32, %c0_i32_0 : i32, i32
  }
  func.func @transform_6(%arg0: i32) -> (i32, i32) {
    %c0_i32 = arith.constant 0 : i32
    %c0_i32_0 = arith.constant 0 : i32
    return %arg0, %c0_i32 : i32, i32
  }
  func.func @transform_7(%arg0: i32) -> (i32, i32) {
    %c0_i32 = arith.constant 0 : i32
    %c0_i32_0 = arith.constant 0 : i32
    return %arg0, %c0_i32 : i32, i32
  }
  func.func @transform_8(%arg0: i32) -> (i32, i32, i32) {
    %c0_i32 = arith.constant 0 : i32
    %c0_i32_0 = arith.constant 0 : i32
    %c0_i32_1 = arith.constant 0 : i32
    return %arg0, %c0_i32, %c0_i32_0 : i32, i32, i32
  }
  func.func @transform_9(%arg0: i32) -> (i32, i32, i32) {
    %c0_i32 = arith.constant 0 : i32
    %c0_i32_0 = arith.constant 0 : i32
    %c0_i32_1 = arith.constant 0 : i32
    return %arg0, %c0_i32, %c0_i32_0 : i32, i32, i32
  }
}

module attributes {stable_mosaic.version = 11 : i64} {
  func.func @_bn_bn_add_relu_kernel(%arg0: i32, %arg1: memref<128x128xf32, #tpu.memory_space<vmem>>, %arg2: memref<1x128xf32, #tpu.memory_space<vmem>>, %arg3: memref<1x128xf32, #tpu.memory_space<vmem>>, %arg4: memref<128x128xf32, #tpu.memory_space<vmem>>, %arg5: memref<1x128xf32, #tpu.memory_space<vmem>>, %arg6: memref<1x128xf32, #tpu.memory_space<vmem>>, %arg7: memref<128x128xf32, #tpu.memory_space<vmem>>) attributes {dimension_semantics = [#tpu.dimension_semantics<parallel>], iteration_bounds = array<i64: 1>, scalar_prefetch = 0 : i64, scratch_operands = 0 : i64, tpu.core_type = #tpu.core_type<tc>, window_params = [{transform_indices = @transform_0, window_bounds = array<i64: 128, 128>}, {pipeline_mode = #tpu.pipeline_mode<synchronous>, transform_indices = @transform_1, window_bounds = array<i64: 1, 128>}, {pipeline_mode = #tpu.pipeline_mode<synchronous>, transform_indices = @transform_2, window_bounds = array<i64: 1, 128>}, {transform_indices = @transform_3, window_bounds = array<i64: 128, 128>}, {pipeline_mode = #tpu.pipeline_mode<synchronous>, transform_indices = @transform_4, window_bounds = array<i64: 1, 128>}, {pipeline_mode = #tpu.pipeline_mode<synchronous>, transform_indices = @transform_5, window_bounds = array<i64: 1, 128>}, {transform_indices = @transform_6, window_bounds = array<i64: 128, 128>}]} {
    %c0 = arith.constant 0 : index
    %c0_0 = arith.constant 0 : index
    %0 = vector.load %arg1[%c0, %c0_0] : memref<128x128xf32, #tpu.memory_space<vmem>>, vector<128x128xf32>
    %c0_1 = arith.constant 0 : index
    %c0_2 = arith.constant 0 : index
    %1 = vector.load %arg2[%c0_1, %c0_2] : memref<1x128xf32, #tpu.memory_space<vmem>>, vector<1x128xf32>
    %2 = vector.broadcast %1 : vector<1x128xf32> to vector<128x128xf32>
    %3 = arith.mulf %0, %2 : vector<128x128xf32>
    %c0_3 = arith.constant 0 : index
    %c0_4 = arith.constant 0 : index
    %4 = vector.load %arg3[%c0_3, %c0_4] : memref<1x128xf32, #tpu.memory_space<vmem>>, vector<1x128xf32>
    %5 = vector.broadcast %4 : vector<1x128xf32> to vector<128x128xf32>
    %6 = arith.addf %3, %5 : vector<128x128xf32>
    %c0_5 = arith.constant 0 : index
    %c0_6 = arith.constant 0 : index
    %7 = vector.load %arg4[%c0_5, %c0_6] : memref<128x128xf32, #tpu.memory_space<vmem>>, vector<128x128xf32>
    %c0_7 = arith.constant 0 : index
    %c0_8 = arith.constant 0 : index
    %8 = vector.load %arg5[%c0_7, %c0_8] : memref<1x128xf32, #tpu.memory_space<vmem>>, vector<1x128xf32>
    %9 = vector.broadcast %8 : vector<1x128xf32> to vector<128x128xf32>
    %10 = arith.mulf %7, %9 : vector<128x128xf32>
    %11 = arith.addf %6, %10 : vector<128x128xf32>
    %c0_9 = arith.constant 0 : index
    %c0_10 = arith.constant 0 : index
    %12 = vector.load %arg6[%c0_9, %c0_10] : memref<1x128xf32, #tpu.memory_space<vmem>>, vector<1x128xf32>
    %13 = vector.broadcast %12 : vector<1x128xf32> to vector<128x128xf32>
    %14 = arith.addf %11, %13 : vector<128x128xf32>
    %cst = arith.constant 0.000000e+00 : f32
    %15 = vector.broadcast %cst : f32 to vector<128x128xf32>
    %16 = arith.maximumf %14, %15 : vector<128x128xf32>
    %c0_11 = arith.constant 0 : index
    %c0_12 = arith.constant 0 : index
    %17 = vector.load %arg7[%c0_11, %c0_12] : memref<128x128xf32, #tpu.memory_space<vmem>>, vector<128x128xf32>
    tpu.vector_store %arg7[%c0_11, %c0_12], %16 {strides = array<i32>} : memref<128x128xf32, #tpu.memory_space<vmem>>, vector<128x128xf32>,
    return
  }
  func.func @transform_0(%arg0: i32) -> (i32, i32) {
    %c0_i32 = arith.constant 0 : i32
    %c0_i32_0 = arith.constant 0 : i32
    return %arg0, %c0_i32 : i32, i32
  }
  func.func @transform_1(%arg0: i32) -> (i32, i32) {
    %c0_i32 = arith.constant 0 : i32
    %c0_i32_0 = arith.constant 0 : i32
    %c0_i32_1 = arith.constant 0 : i32
    return %c0_i32, %c0_i32_0 : i32, i32
  }
  func.func @transform_2(%arg0: i32) -> (i32, i32) {
    %c0_i32 = arith.constant 0 : i32
    %c0_i32_0 = arith.constant 0 : i32
    %c0_i32_1 = arith.constant 0 : i32
    return %c0_i32, %c0_i32_0 : i32, i32
  }
  func.func @transform_3(%arg0: i32) -> (i32, i32) {
    %c0_i32 = arith.constant 0 : i32
    %c0_i32_0 = arith.constant 0 : i32
    return %arg0, %c0_i32 : i32, i32
  }
  func.func @transform_4(%arg0: i32) -> (i32, i32) {
    %c0_i32 = arith.constant 0 : i32
    %c0_i32_0 = arith.constant 0 : i32
    %c0_i32_1 = arith.constant 0 : i32
    return %c0_i32, %c0_i32_0 : i32, i32
  }
  func.func @transform_5(%arg0: i32) -> (i32, i32) {
    %c0_i32 = arith.constant 0 : i32
    %c0_i32_0 = arith.constant 0 : i32
    %c0_i32_1 = arith.constant 0 : i32
    return %c0_i32, %c0_i32_0 : i32, i32
  }
  func.func @transform_6(%arg0: i32) -> (i32, i32) {
    %c0_i32 = arith.constant 0 : i32
    %c0_i32_0 = arith.constant 0 : i32
    return %arg0, %c0_i32 : i32, i32
  }
}

</mosaic_0001>

<bundles_post_ra>
// kernel: bottleneck_forward.6
= control target key start
LH: loop header
LB: loop body
LE: loop exit
PB: predicated region body
PF: predicated region fallthrough
CT: control target
= control target key end

     0   :  { %8 = vsyncpa [#allocation3], 0  ;;  %s1148_s0 = inlined_call_operand.hbm [shape: f32[512,128], index: 0, kind: input, shape index: {}]   ;;  %s1149_s1 = inlined_call_operand.hbm [shape: f32[1,128], index: 1, kind: input, shape index: {}]   ;;  %s1150_s2 = inlined_call_operand.hbm [shape: f32[1,128], index: 2, kind: input, shape index: {}]   ;;  %s1151_s3 = inlined_call_operand.hbm [shape: f32[512,128], index: 3, kind: output, shape index: {}]  }
   0x1   :  { %10 = vsyncpa [#allocation3 + $0x1], 0 }
   0x2   :  { %11 = vsyncpa [#allocation6], 0 }
   0x3   :  { %12 = vsyncpa [#allocation4], 0 }
   0x4   :  { %14 = vsyncpa [#allocation4 + $0x1], 0  ;;  %s775_s12 = smov 0   ;;  %s777_s13 = smov 0  }
   0x5   :  { %s779_s14 = smov 0   ;;  %s781_s15 = smov 0  }
   0x6 LB: > { %s796_s16 = sadd.s32 4294967295, %s745_s15   ;;  %s496_s17 = sadd.s32 4294967294, %s745_s15   ;;  %s745_s15 = sphi %s781_s15, %s1176_s15   ;;  %s741_s14 = sphi %s779_s14, %s1175_s14   ;;  %s737_s13 = sphi %s777_s13, %s1174_s13   ;;  %s733_s12 = sphi %s775_s12, %s1173_s12  }
   0x7   : > { %s800_s18 = sadd.s32 1, %s745_s15   ;;  %s27_s19 = sadd.s32 1, %s741_s14 }
   0x8   : > { %s24_s20 = ssub.s32 %s745_s15, %s800_s18  ;;  %p34_p0 = scmp.ne.s32.totalorder %s741_s14, %s737_s13 }
   0x9   : > { %p25_p1 = scmp.eq.s32.totalorder %s24_s20, 0  ;;  %p35_p2 = scmp.eq.s32.totalorder %s745_s15, 0 }
   0xa   : > { %p40_p3 = scmp.ne.s32.totalorder %s737_s13, %s733_s12  ;;  %p1152_p4 = scmp.eq.s32.totalorder %s796_s16, 0 }
   0xb   : > { %s812_s21 = scalar_select %p25_p1, %s741_s14, %s27_s19  }
   0xc   : > { %p814_p5 = por %p35_p2, %p34_p0  ;;  %p820_p6 = por %p1152_p4, %p40_p3 }
   0xd   : > { %p106_p7 = scmp.eq.s32.totalorder %s796_s16, 1  ;;  %p112_p8 = scmp.eq.s32.totalorder %s496_s17, 1 }
   0xe   : > { %s1158_s23 = scalar_select %p820_p6, 1, 0 }
   0xf   : > { %p497_p9 = scmp.ge.s32.totalorder %s745_s15, 1  ;;  %p119_p10 = scmp.lt.s32.totalorder %s745_s15, 3 }
  0x10   : > { %p827_p11 = por %p106_p7, %p34_p0  ;;  %p831_p12 = por %p112_p8, %p40_p3 }
  0x11   : > { %p835_p13 = pnand %p497_p9, %p119_p10  ;;  %s747_s27 = smov [#allocation5]  }
  0x12   : > { %s1159_s24 = scalar_select %p827_p11, 1, 0 }
  0x13   : > { %s1160_s25 = scalar_select %p831_p12, 1, 0 }
  0x14   : > { %s1161_s26 = scalar_select %p835_p13, 1, 0 }
  0x15   : > { %p530_p2 = pneg %p835_p13  ;;  %s132_s28 = sshll.u32 %s747_s27, 4  ;;  %s133_s28 = int_to_ptr.vmem [resolvable:$true] %s132_s28 }
  0x16   : > { %p547_p4 = scmp.lt.s32.totalorder %s745_s15, 2  ;;  %p1162_p0 = scmp.eq.s32.totalorder %s796_s16, 0 }
  0x17   : > { %s748_s4 = smov [#allocation7]   ;;  %s589_s8 = scalar_lea.hbm %s1149_s1, 16 }
  0x18   : > { %p845_p7 = pnand %p530_p2, %p1162_p0  ;;  %p851_p3 = pnand %p547_p4, %p814_p5 }
  0x19   : > { %s143_s5 = sshll.u32 %s748_s4, 4  ;;  %p590_p8 = scmp.ne.s32.totalorder %s1149_s1, %s589_s8  ;;  %s855_s5 = int_to_ptr.vmem [resolvable:$true] %s143_s5 }
  0x1a   : > { %s1164_s30 = scalar_select %p851_p3, 1, 0 }
  0x1b   : > { %p591_p9 = pneg %p845_p7  ;;  %p596_p10 = scmp.lt.u32.totalorder %s589_s8, %s1149_s1 }
  0x1d   : > { %p592_p4 = pnand %p591_p9, %p590_p8 }
  0x1f   : > { %p593_p5 = pneg %p592_p4 }
  0x21   : > { %p598_p2 = pnand %p596_p10, %p593_p5 }
  0x23   : > { %601 = shalt.err (!%p598_p2)
}
  0x24   : > { %s602_s19 = scalar_lea.vmem %s133_s28, 16  ;;  %s609_s20 = scalar_lea.vmem %s133_s28, 32 }
  0x25   : > { %p603_p0 = scmp.ne.s32.totalorder %s133_s28, %s602_s19  ;;  %p610_p11 = scmp.lt.s32.totalorder %s133_s28, %s133_s28 }
  0x26   : > { %p611_p6 = scmp.lt.s32.totalorder %s609_s20, %s602_s19 }
  0x27   : > { %p605_p1 = pnand %p603_p0, %p591_p9 }
  0x28   : > { %p612_p13 = por %p611_p6, %p610_p11 }
  0x29   : > { %p606_p12 = pneg %p605_p1 }
  0x2b   : > { %p613_p3 = pnand %p612_p13, %p606_p12 }
  0x2d   : > { %616 = shalt.err (!%p613_p3)
}
  0x2e   : > { %533 = dma.hbm_to_vmem [thread:$0]  (!%p845_p7), %s1149_s1, 16, %s133_s28, [#allocation6]  }
  0x2f   : > { %s154_s4 = sand.u32 1, %s741_s14   ;;  %s617_s8 = scalar_lea.hbm %s1150_s2, 16 }
  0x30   : > { %p618_p1 = scmp.ne.s32.totalorder %s1150_s2, %s617_s8  ;;  %p624_p12 = scmp.lt.u32.totalorder %s617_s8, %s1150_s2 }
  0x32   : > { %p620_p6 = pnand %p618_p1, %p591_p9 }
  0x34   : > { %p621_p11 = pneg %p620_p6 }
  0x36   : > { %p626_p13 = pnand %p624_p12, %p621_p11 }
  0x38   : > { %629 = shalt.err (!%p626_p13)
}
  0x39   : > { %s630_s28 = scalar_lea.vmem %s855_s5, 16  ;;  %s637_s19 = scalar_lea.vmem %s855_s5, 32 }
  0x3a   : > { %p631_p3 = scmp.ne.s32.totalorder %s855_s5, %s630_s28  ;;  %p638_p5 = scmp.lt.s32.totalorder %s855_s5, %s855_s5 }
  0x3b   : > { %p639_p10 = scmp.lt.s32.totalorder %s637_s19, %s630_s28 }
  0x3c   : > { %p633_p8 = pnand %p631_p3, %p591_p9 }
  0x3d   : > { %p640_p2 = por %p639_p10, %p638_p5 }
  0x3e   : > { %p634_p4 = pneg %p633_p8 }
  0x40   : > { %p641_p0 = pnand %p640_p2, %p634_p4 }
  0x42   : > { %644 = shalt.err (!%p641_p0)
}
  0x43   : > { %536 = dma.hbm_to_vmem [thread:$0]  (!%p845_p7), %s1150_s2, 16, %s855_s5, [#allocation6]  }
  0x44   : > { %s501_s27 = sshll.u32 %s154_s4, 8  ;;  %s516_s6 = sshll.u32 %s745_s15, 12 }
  0x45   : > { %s910_s9 = scalar_lea.hbm %s1148_s0, %s516_s6  ;;  %s158_s29 = scalar_lea.vmem [#allocation2], %s501_s27 }
  0x46   : > { %s165_s10 = sshll.u32 %s158_s29, 4  ;;  %s914_s11 = scalar_lea.sflag [#allocation3], %s154_s4  ;;  %s912_s10 = int_to_ptr.vmem [resolvable:$true] %s165_s10 }
  0x47   : > { %s645_s17 = scalar_lea.hbm %s910_s9, 4096  ;;  %p1165_p7 = scmp.ne.s32.totalorder %s1164_s30, 0 }
  0x48   : > { %p646_p9 = scmp.ne.s32.totalorder %s910_s9, %s645_s17  ;;  %s650_s19 = scalar_lea.hbm %s1148_s0, 8192 }
  0x49   : > { %p647_p1 = pneg %p1165_p7  ;;  %p651_p12 = scmp.lt.u32.totalorder %s910_s9, %s1148_s0 }
  0x4a   : > { %p652_p13 = scmp.lt.u32.totalorder %s650_s19, %s645_s17  ;;  %p654_p8 = scmp.lt.u32.totalorder %s645_s17, %s910_s9 }
  0x4b   : > { %p648_p6 = pnand %p647_p1, %p646_p9 }
  0x4c   : > { %p653_p3 = por %p652_p13, %p651_p12 }
  0x4d   : > { %p649_p11 = pneg %p648_p6 }
  0x4e   : > { %p655_p4 = por %p654_p8, %p653_p3 }
  0x50   : > { %p656_p5 = pnand %p655_p4, %p649_p11 }
  0x52   : > { %659 = shalt.err (!%p656_p5)
}
  0x53   : > { %s660_s4 = scalar_lea.vmem %s912_s10, 4096  ;;  %s749_s27 = smov [#allocation2]  }
  0x54   : > { %p661_p10 = scmp.ne.s32.totalorder %s912_s10, %s660_s4  ;;  %s665_s6 = sshll.u32 %s749_s27, 4  ;;  %s666_s6 = int_to_ptr.vmem [resolvable:$false] %s665_s6 }
  0x55   : > { %s667_s7 = scalar_lea.vmem %s666_s6, 8192  ;;  %p668_p9 = scmp.lt.s32.totalorder %s912_s10, %s666_s6 }
  0x56   : > { %p663_p2 = pnand %p661_p10, %p647_p1  ;;  %p669_p6 = scmp.lt.s32.totalorder %s667_s7, %s660_s4 }
  0x58   : > { %p664_p0 = pneg %p663_p2  ;;  %p670_p12 = por %p669_p6, %p668_p9 }
  0x5a   : > { %p671_p13 = pnand %p670_p12, %p664_p0 }
  0x5c   : > { %674 = shalt.err (!%p671_p13)
}
  0x5d   : > { %s750_s8 = smov 128   ;;  %s751_s29 = smov 8  }
  0x5e   : > { %540 = dma.hbm_to_vmem [thread:$0]  (!%p1165_p7), %s910_s9, 4096, %s912_s10, %s914_s11, %s750_s8, %s750_s8, %s751_s29  }
  0x5f   : > { %p1166_p1 = scmp.ne.s32.totalorder %s1161_s26, 0 }
  0x60   : > { %s945_s17 = sand.u32 (!%p1166_p1), 1, %s737_s13   ;;  %p1167_p11 = scmp.ne.s32.totalorder (!%p1166_p1), %s1158_s23, 0 }
  0x61   : > { %177 = sbr.rel (%p1166_p1) target bundleno = 153 (0x99), region = 32  ;;  %s505_s5 = sshll.u32 (!%p1166_p1), %s945_s17, 8 }
  0x62   : > { %s180_s28 = scalar_lea.sflag (!%p1166_p1), [#allocation3], %s945_s17  ;;  %s951_s19 = scalar_lea.vmem (!%p1166_p1), [#allocation2], %s505_s5 }
  0x68   : > { %720 = dma.done.wait (%p1167_p11), %s180_s28, 4096  }
  0x69   : > { %722 = vsyncadd (%p1167_p11), %s180_s28, 4294963200  ;;  %p1168_p7 = scmp.eq.s32.totalorder %s796_s16, 0 }
  0x6b   : > { %724 = dma.done.wait (%p1168_p7), [#allocation6], 32   ;;  %p1169_p3 = pmov %p1168_p7 }
  0x6c   : > { %v216_v0 = vld [vmem:[%s951_s19] sm:$0xff]  ;;  %v217_v4 = vld [vmem:[%s951_s19 + $0x8] sm:$0xff]  ;;  %v218_v5 = vld [vmem:[%s951_s19 + $0x10] sm:$0xff]  ;;  %s998_s23 = scalar_lea.vmem [#allocation8], %s505_s5  ;;  %s517_s26 = sshll.u32 %s796_s16, 12 }
  0x6d   : > { %726 = vsyncadd (%p1169_p3), [#allocation6], 4294967264  ;;  %v962_v1 = vld [vmem:[#allocation5] ss:$0 sm:$0xff]  ;;  %v964_v2 = vld [vmem:[#allocation7] ss:$0 sm:$0xff]  ;;  %s1095_s10 = scalar_lea.hbm %s1151_s3, %s517_s26 }
  0x6e   : > { %v255_v3 = vmul.f32 %v962_v1, %v216_v0  ;;  %v219_v6 = vld [vmem:[%s951_s19 + $0x18] sm:$0xff]  ;;  %v256_v7 = vmul.f32 %v962_v1, %v217_v4  ;;  %v257_v8 = vmul.f32 %v962_v1, %v218_v5  ;;  %v220_v10 = vld [vmem:[%s951_s19 + $0x20] sm:$0xff]  ;;  %v221_v11 = vld [vmem:[%s951_s19 + $0x28] sm:$0xff]  ;;  %s404_s30 = sshll.u32 %s998_s23, 4  ;;  %s391_s11 = scalar_lea.sflag [#allocation4], %s945_s17  ;;  %s1097_s30 = int_to_ptr.vmem [resolvable:$true] %s404_s30 }
  0x6f   : > { %v258_v9 = vmul.f32 %v962_v1, %v219_v6  ;;  %v222_v12 = vld [vmem:[%s951_s19 + $0x30] sm:$0xff]  ;;  %v259_v14 = vmul.f32 %v962_v1, %v220_v10  ;;  %v260_v15 = vmul.f32 %v962_v1, %v221_v11  ;;  %v223_v17 = vld [vmem:[%s951_s19 + $0x38] sm:$0xff]  ;;  %v224_v22 = vld [vmem:[%s951_s19 + $0x40] sm:$0xff]  ;;  %s675_s20 = scalar_lea.vmem %s1097_s30, 4096  ;;  %p1170_p4 = scmp.ne.s32.totalorder %s1159_s24, 0 }
  0x70   : > { %v294_v13 = vadd.f32 %v964_v2, %v255_v3  ;;  %v261_v16 = vmul.f32 %v962_v1, %v222_v12  ;;  %v295_v18 = vadd.f32 %v964_v2, %v256_v7  ;;  %v296_v19 = vadd.f32 %v964_v2, %v257_v8  ;;  %v225_v27 = vld [vmem:[%s951_s19 + $0x48] sm:$0xff]  ;;  %v226_v28 = vld [vmem:[%s951_s19 + $0x50] sm:$0xff]  ;;  %v227_v29 = vld [vmem:[%s951_s19 + $0x58] sm:$0xff]  ;;  %p676_p8 = scmp.ne.s32.totalorder %s1097_s30, %s675_s20  ;;  %s752_s22 = smov [#allocation8]  }
  0x71   : > { %v297_v20 = vadd.f32 %v964_v2, %v258_v9  ;;  %v262_v21 = vmul.f32 %v962_v1, %v223_v17  ;;  %v298_v24 = vadd.f32 %v964_v2, %v259_v14  ;;  %v299_v25 = vadd.f32 %v964_v2, %v260_v15  ;;  %v228_v34 = vld [vmem:[%s951_s19 + $0x60] sm:$0xff]  ;;  %v229_v35 = vld [vmem:[%s951_s19 + $0x68] sm:$0xff]  ;;  %v230_v36 = vld [vmem:[%s951_s19 + $0x70] sm:$0xff]  ;;  %s679_s4 = sshll.u32 %s752_s22, 4  ;;  %s680_s4 = int_to_ptr.vmem [resolvable:$false] %s679_s4 }
  0x72   : > { %v326_v23 = vmax.f32 %v294_v13, 0.0  ;;  %v300_v26 = vadd.f32 %v964_v2, %v261_v16  ;;  %v327_v30 = vmax.f32 %v295_v18, 0.0  ;;  %v328_v31 = vmax.f32 %v296_v19, 0.0  ;;  %v231_v41 = vld [vmem:[%s951_s19 + $0x78] sm:$0xff]  ;;  %v232_v54 = vld [vmem:[%s951_s19 + $0x80] sm:$0xff]  ;;  %v233_v59 = vld [vmem:[%s951_s19 + $0x88] sm:$0xff]  ;;  %p677_p5 = pnand %p676_p8, %p1170_p4  ;;  %p682_p2 = scmp.lt.s32.totalorder %s1097_s30, %s680_s4 }
  0x73   : > { %v329_v32 = vmax.f32 %v297_v20, 0.0  ;;  %v301_v33 = vadd.f32 %v964_v2, %v262_v21  ;;  %v330_v37 = vmax.f32 %v298_v24, 0.0  ;;  %v331_v38 = vmax.f32 %v299_v25, 0.0  ;;  %v234_v60 = vld [vmem:[%s951_s19 + $0x90] sm:$0xff]  ;;  %v235_v61 = vld [vmem:[%s951_s19 + $0x98] sm:$0xff]  ;;  %v236_v4 = vld [vmem:[%s951_s19 + $0xa0] sm:$0xff] }
  0x74   : > { %358 = vst [vmem:[%s998_s23] sm:$0xff] %v326_v23  ;;  %v332_v39 = vmax.f32 %v300_v26, 0.0  ;;  %v263_v40 = vmul.f32 %v962_v1, %v224_v22  ;;  %359 = vst [vmem:[%s998_s23 + $0x8] sm:$0xff] %v327_v30  ;;  %v264_v43 = vmul.f32 %v962_v1, %v225_v27  ;;  %v265_v44 = vmul.f32 %v962_v1, %v226_v28  ;;  %v237_v5 = vld [vmem:[%s951_s19 + $0xa8] sm:$0xff]  ;;  %v238_v6 = vld [vmem:[%s951_s19 + $0xb0] sm:$0xff]  ;;  %p678_p10 = pneg %p677_p5  ;;  %s681_s27 = scalar_lea.vmem %s680_s4, 8192 }
  0x75   : > { %360 = vst [vmem:[%s998_s23 + $0x10] sm:$0xff] %v328_v31  ;;  %361 = vst [vmem:[%s998_s23 + $0x18] sm:$0xff] %v329_v32  ;;  %v333_v42 = vmax.f32 %v301_v33, 0.0  ;;  %v266_v45 = vmul.f32 %v962_v1, %v227_v29  ;;  %v267_v47 = vmul.f32 %v962_v1, %v228_v34  ;;  %v268_v48 = vmul.f32 %v962_v1, %v229_v35  ;;  %v239_v11 = vld [vmem:[%s951_s19 + $0xb8] sm:$0xff]  ;;  %v240_v24 = vld [vmem:[%s951_s19 + $0xc0] sm:$0xff]  ;;  %p683_p0 = scmp.lt.s32.totalorder %s681_s27, %s675_s20 }
  0x76   : > { %362 = vst [vmem:[%s998_s23 + $0x20] sm:$0xff] %v330_v37  ;;  %363 = vst [vmem:[%s998_s23 + $0x28] sm:$0xff] %v331_v38  ;;  %v302_v46 = vadd.f32 %v964_v2, %v263_v40  ;;  %v269_v49 = vmul.f32 %v962_v1, %v230_v36  ;;  %v303_v50 = vadd.f32 %v964_v2, %v264_v43  ;;  %v241_v29 = vld [vmem:[%s951_s19 + $0xc8] sm:$0xff]  ;;  %v242_v30 = vld [vmem:[%s951_s19 + $0xd0] sm:$0xff] }
  0x77   : > { %364 = vst [vmem:[%s998_s23 + $0x30] sm:$0xff] %v332_v39  ;;  %365 = vst [vmem:[%s998_s23 + $0x38] sm:$0xff] %v333_v42  ;;  %v304_v51 = vadd.f32 %v964_v2, %v265_v44  ;;  %v305_v52 = vadd.f32 %v964_v2, %v266_v45  ;;  %v270_v53 = vmul.f32 %v962_v1, %v231_v41  ;;  %v243_v31 = vld [vmem:[%s951_s19 + $0xd8] sm:$0xff]  ;;  %v244_v36 = vld [vmem:[%s951_s19 + $0xe0] sm:$0xff]  ;;  %p684_p9 = por %p683_p0, %p682_p2 }
  0x78   : > { %v334_v55 = vmax.f32 %v302_v46, 0.0  ;;  %v306_v56 = vadd.f32 %v964_v2, %v267_v47  ;;  %v307_v57 = vadd.f32 %v964_v2, %v268_v48  ;;  %v308_v58 = vadd.f32 %v964_v2, %v269_v49  ;;  %v245_v37 = vld [vmem:[%s951_s19 + $0xe8] sm:$0xff]  ;;  %v246_v38 = vld [vmem:[%s951_s19 + $0xf0] sm:$0xff]  ;;  %v247_v43 = vld [vmem:[%s951_s19 + $0xf8] sm:$0xff] }
  0x79   : > { %v335_v62 = vmax.f32 %v303_v50, 0.0  ;;  %v336_v63 = vmax.f32 %v304_v51, 0.0  ;;  %v337_v0 = vmax.f32 %v305_v52, 0.0  ;;  %v309_v3 = vadd.f32 %v964_v2, %v270_v53  ;;  %p685_p6 = pnand %p684_p9, %p678_p10 }
  0x7a   : > { %366 = vst [vmem:[%s998_s23 + $0x40] sm:$0xff] %v334_v55  ;;  %v338_v7 = vmax.f32 %v306_v56, 0.0  ;;  %v339_v8 = vmax.f32 %v307_v57, 0.0  ;;  %v340_v9 = vmax.f32 %v308_v58, 0.0  ;;  %v271_v10 = vmul.f32 %v962_v1, %v232_v54 }
  0x7b   : > { %367 = vst [vmem:[%s998_s23 + $0x48] sm:$0xff] %v335_v62  ;;  %368 = vst [vmem:[%s998_s23 + $0x50] sm:$0xff] %v336_v63  ;;  %v341_v12 = vmax.f32 %v309_v3, 0.0  ;;  %v272_v13 = vmul.f32 %v962_v1, %v233_v59  ;;  %v273_v14 = vmul.f32 %v962_v1, %v234_v60  ;;  %v274_v15 = vmul.f32 %v962_v1, %v235_v61 }
  0x7c   : > { %369 = vst [vmem:[%s998_s23 + $0x58] sm:$0xff] %v337_v0  ;;  %370 = vst [vmem:[%s998_s23 + $0x60] sm:$0xff] %v338_v7  ;;  %v310_v16 = vadd.f32 %v964_v2, %v271_v10  ;;  %v275_v17 = vmul.f32 %v962_v1, %v236_v4  ;;  %v276_v18 = vmul.f32 %v962_v1, %v237_v5 }
  0x7d   : > { %371 = vst [vmem:[%s998_s23 + $0x68] sm:$0xff] %v339_v8  ;;  %372 = vst [vmem:[%s998_s23 + $0x70] sm:$0xff] %v340_v9  ;;  %v277_v19 = vmul.f32 %v962_v1, %v238_v6  ;;  %v311_v20 = vadd.f32 %v964_v2, %v272_v13  ;;  %v312_v21 = vadd.f32 %v964_v2, %v273_v14 }
  0x7e   : > { %373 = vst [vmem:[%s998_s23 + $0x78] sm:$0xff] %v341_v12  ;;  %v313_v22 = vadd.f32 %v964_v2, %v274_v15  ;;  %v278_v23 = vmul.f32 %v962_v1, %v239_v11  ;;  %v342_v25 = vmax.f32 %v310_v16, 0.0  ;;  %v314_v26 = vadd.f32 %v964_v2, %v275_v17 }
  0x7f   : > { %v315_v27 = vadd.f32 %v964_v2, %v276_v18  ;;  %v316_v28 = vadd.f32 %v964_v2, %v277_v19  ;;  %v343_v32 = vmax.f32 %v311_v20, 0.0  ;;  %v344_v33 = vmax.f32 %v312_v21, 0.0 }
  0x80   : > { %v345_v34 = vmax.f32 %v313_v22, 0.0  ;;  %v317_v35 = vadd.f32 %v964_v2, %v278_v23  ;;  %374 = vst [vmem:[%s998_s23 + $0x80] sm:$0xff] %v342_v25  ;;  %v346_v39 = vmax.f32 %v314_v26, 0.0  ;;  %v279_v42 = vmul.f32 %v962_v1, %v240_v24 }
  0x81   : > { %v347_v40 = vmax.f32 %v315_v27, 0.0  ;;  %v348_v41 = vmax.f32 %v316_v28, 0.0  ;;  %375 = vst [vmem:[%s998_s23 + $0x88] sm:$0xff] %v343_v32  ;;  %376 = vst [vmem:[%s998_s23 + $0x90] sm:$0xff] %v344_v33  ;;  %v280_v45 = vmul.f32 %v962_v1, %v241_v29  ;;  %v281_v46 = vmul.f32 %v962_v1, %v242_v30 }
  0x82   : > { %377 = vst [vmem:[%s998_s23 + $0x98] sm:$0xff] %v345_v34  ;;  %v349_v44 = vmax.f32 %v317_v35, 0.0  ;;  %v282_v47 = vmul.f32 %v962_v1, %v243_v31  ;;  %378 = vst [vmem:[%s998_s23 + $0xa0] sm:$0xff] %v346_v39  ;;  %v318_v48 = vadd.f32 %v964_v2, %v279_v42  ;;  %v283_v49 = vmul.f32 %v962_v1, %v244_v36 }
  0x83   : > { %379 = vst [vmem:[%s998_s23 + $0xa8] sm:$0xff] %v347_v40  ;;  %380 = vst [vmem:[%s998_s23 + $0xb0] sm:$0xff] %v348_v41  ;;  %v284_v50 = vmul.f32 %v962_v1, %v245_v37  ;;  %v285_v51 = vmul.f32 %v962_v1, %v246_v38  ;;  %v319_v52 = vadd.f32 %v964_v2, %v280_v45 }
  0x84   : > { %381 = vst [vmem:[%s998_s23 + $0xb8] sm:$0xff] %v349_v44  ;;  %v320_v53 = vadd.f32 %v964_v2, %v281_v46  ;;  %v321_v54 = vadd.f32 %v964_v2, %v282_v47  ;;  %v286_v55 = vmul.f32 %v962_v1, %v247_v43  ;;  %v350_v56 = vmax.f32 %v318_v48, 0.0 }
  0x85   : > { %v322_v57 = vadd.f32 %v964_v2, %v283_v49  ;;  %v323_v58 = vadd.f32 %v964_v2, %v284_v50  ;;  %v324_v59 = vadd.f32 %v964_v2, %v285_v51  ;;  %v351_v60 = vmax.f32 %v319_v52, 0.0 }
  0x86   : > { %v352_v61 = vmax.f32 %v320_v53, 0.0  ;;  %v353_v62 = vmax.f32 %v321_v54, 0.0  ;;  %v325_v1 = vadd.f32 %v964_v2, %v286_v55  ;;  %382 = vst [vmem:[%s998_s23 + $0xc0] sm:$0xff] %v350_v56 }
  0x87   : > { %v354_v63 = vmax.f32 %v322_v57, 0.0  ;;  %v355_v0 = vmax.f32 %v323_v58, 0.0  ;;  %v356_v3 = vmax.f32 %v324_v59, 0.0  ;;  %383 = vst [vmem:[%s998_s23 + $0xc8] sm:$0xff] %v351_v60 }
  0x88   : > { %384 = vst [vmem:[%s998_s23 + $0xd0] sm:$0xff] %v352_v61  ;;  %385 = vst [vmem:[%s998_s23 + $0xd8] sm:$0xff] %v353_v62  ;;  %v357_v4 = vmax.f32 %v325_v1, 0.0 }
  0x89   : > { %386 = vst [vmem:[%s998_s23 + $0xe0] sm:$0xff] %v354_v63  ;;  %387 = vst [vmem:[%s998_s23 + $0xe8] sm:$0xff] %v355_v0 }
  0x8a   : > { %388 = vst [vmem:[%s998_s23 + $0xf0] sm:$0xff] %v356_v3  ;;  %389 = vst [vmem:[%s998_s23 + $0xf8] sm:$0xff] %v357_v4 }
  0x8b   : > { %688 = shalt.err (!%p685_p6)
}
  0x8c   : > { %s689_s6 = scalar_lea.hbm %s1095_s10, 4096  ;;  %s693_s29 = scalar_lea.hbm %s1151_s3, 8192 }
  0x8d   : > { %p690_p12 = scmp.ne.s32.totalorder %s1095_s10, %s689_s6  ;;  %p694_p11 = scmp.lt.u32.totalorder %s1095_s10, %s1151_s3 }
  0x8e   : > { %p695_p7 = scmp.lt.u32.totalorder %s693_s29, %s689_s6  ;;  %p697_p8 = scmp.lt.u32.totalorder %s689_s6, %s1095_s10 }
  0x8f   : > { %p691_p13 = pnand %p690_p12, %p1170_p4 }
  0x90   : > { %p696_p3 = por %p695_p7, %p694_p11 }
  0x91   : > { %p692_p1 = pneg %p691_p13 }
  0x92   : > { %p698_p5 = por %p697_p8, %p696_p3 }
  0x94   : > { %p699_p10 = pnand %p698_p5, %p692_p1 }
  0x96   : > { %702 = shalt.err (!%p699_p10)
}
  0x97   : > { %s753_s19 = smov 128   ;;  %s754_s23 = smov 8  }
  0x98   : > { %528 = dma.vmem_to_hbm [thread:$0]  (%p1170_p4), %s1097_s30, 4096, %s1095_s10, %s391_s11, %s753_s19, %s753_s19, %s754_s23  }
  0x99 PF: > { %s419_s26 = sand.u32 1, %s733_s12   ;;  %p1171_p2 = scmp.ne.s32.totalorder %s1160_s25, 0 }
  0x9a   : > { %p1172_p0 = scmp.ge.s32.totalorder %s745_s15, 2  ;;  %s420_s16 = scalar_lea.sflag [#allocation4], %s419_s26 }
  0x9c   : > { %p542_p9 = pnand %p1172_p0, %p1171_p2 }
  0x9e   : > { %728 = dma.done.wait (!%p542_p9), %s420_s16, 4096  }
  0x9f   : > { %730 = vsyncadd (!%p542_p9), %s420_s16, 4294963200  ;;  %p17_p6 = scmp.ge.s32.totalorder %s800_s18, 4   ;;  %s1173_s12 = smov %s737_s13 }
  0xa0   : > { %s1174_s13 = smov %s741_s14  ;;  %s1175_s14 = smov %s812_s21 }
  0xa1   : > { %s1176_s15 = smov %s800_s18  ;;  %19 = sbr.rel (!%p17_p6) target bundleno = 6 (0x6), region = 85 }
  0xa8   :  { %425 = vsyncpa [#allocation3], 1 }
  0xa9   :  { %427 = vsyncpa [#allocation3 + $0x1], 1 }
  0xaa   :  { %428 = vsyncpa [#allocation6], 1 }
  0xab   :  { %429 = vsyncpa [#allocation4], 1 }
  0xac   :  { %431 = vsyncpa [#allocation4 + $0x1], 1 }

// kernel: bottleneck_forward.5
= control target key start
LH: loop header
LB: loop body
LE: loop exit
PB: predicated region body
PF: predicated region fallthrough
CT: control target
= control target key end

     0   :  { %9 = vsyncpa [#allocation3], 0  ;;  %s1564_s0 = inlined_call_operand.hbm [shape: f32[512,128], index: 0, kind: input, shape index: {}]   ;;  %s1565_s1 = inlined_call_operand.hbm [shape: bf16[128,128], index: 1, kind: input, shape index: {}]   ;;  %s1566_s2 = inlined_call_operand.hbm [shape: f32[512,128], index: 2, kind: output, shape index: {0}]   ;;  %s1567_s3 = inlined_call_operand.hbm [shape: f32[2,2,128], index: 3, kind: output, shape index: {1}]  }
   0x1   :  { %11 = vsyncpa [#allocation3 + $0x1], 0 }
   0x2   :  { %12 = vsyncpa [#allocation6], 0 }
   0x3   :  { %13 = vsyncpa [#allocation4], 0 }
   0x4   :  { %15 = vsyncpa [#allocation4 + $0x1], 0 }
   0x5   :  { %16 = vsyncpa [#allocation9], 0 }
   0x6   :  { %18 = vsyncpa [#allocation9 + $0x1], 0  ;;  %s1163_s12 = smov 0   ;;  %s1165_s13 = smov 0  }
   0x7   :  { %s1167_s14 = smov 0   ;;  %s1169_s15 = smov 0  }
   0x8 LB: > { %s1184_s16 = sadd.s32 4294967295, %s1131_s15   ;;  %s778_s17 = sadd.s32 4294967294, %s1131_s15   ;;  %s1131_s15 = sphi %s1169_s15, %s1587_s15   ;;  %s1127_s14 = sphi %s1167_s14, %s1586_s14   ;;  %s1123_s13 = sphi %s1165_s13, %s1585_s13   ;;  %s1119_s12 = sphi %s1163_s12, %s1584_s12  }
   0x9   : > { %p44_p0 = scmp.ne.s32.totalorder %s1123_s13, %s1119_s12  ;;  %p1568_p1 = scmp.eq.s32.totalorder %s1184_s16, 0 }
   0xa   : > { %p95_p3 = scmp.eq.s32.totalorder %s778_s17, 1  ;;  %p779_p5 = scmp.ge.s32.totalorder %s1131_s15, 1 }
   0xb   : > { %p1193_p4 = por %p1568_p1, %p44_p0  ;;  %p128_p7 = scmp.lt.s32.totalorder %s1131_s15, 3 }
   0xc   : > { %p1198_p6 = por %p95_p3, %p44_p0  ;;  %s1133_s21 = smov [#allocation5]  }
   0xd   : > { %s1571_s18 = scalar_select %p1193_p4, 1, 0 }
   0xe   : > { %s1572_s19 = scalar_select %p1198_p6, 1, 0 }
   0xf   : > { %p1203_p8 = pnand %p779_p5, %p128_p7  ;;  %s140_s22 = sshll.u32 %s1133_s21, 4  ;;  %s1207_s22 = int_to_ptr.vmem [resolvable:$true] %s140_s22 }
  0x10   : > { %s1219_s24 = sadd.s32 1, %s1131_s15   ;;  %s31_s25 = sadd.s32 1, %s1127_s14 }
  0x11   : > { %s1573_s20 = scalar_select %p1203_p8, 1, 0 }
  0x12   : > { %p905_p9 = pneg %p1203_p8  ;;  %s28_s26 = ssub.s32 %s1131_s15, %s1219_s24 }
  0x13   : > { %s971_s29 = scalar_lea.hbm %s1565_s1, 1024 }
  0x14   : > { %p1214_p11 = pnand %p905_p9, %p1568_p1  ;;  %p972_p12 = scmp.ne.s32.totalorder %s1565_s1, %s971_s29 }
  0x15   : > { %p978_p5 = scmp.lt.u32.totalorder %s971_s29, %s1565_s1 }
  0x16   : > { %p973_p13 = pneg %p1214_p11 }
  0x18   : > { %p974_p0 = pnand %p973_p13, %p972_p12 }
  0x1a   : > { %p975_p3 = pneg %p974_p0 }
  0x1c   : > { %p980_p7 = pnand %p978_p5, %p975_p3 }
  0x1e   : > { %983 = shalt.err (!%p980_p7)
}
  0x1f   : > { %s984_s7 = scalar_lea.vmem %s1207_s22, 1024  ;;  %p992_p2 = scmp.lt.s32.totalorder %s1207_s22, %s1207_s22 }
  0x20   : > { %p985_p9 = scmp.ne.s32.totalorder %s1207_s22, %s984_s7  ;;  %p993_p6 = scmp.lt.s32.totalorder %s984_s7, %s984_s7 }
  0x22   : > { %p987_p10 = pnand %p985_p9, %p973_p13  ;;  %p994_p4 = por %p993_p6, %p992_p2 }
  0x24   : > { %p988_p1 = pneg %p987_p10 }
  0x26   : > { %p995_p8 = pnand %p994_p4, %p988_p1 }
  0x28   : > { %998 = shalt.err (!%p995_p8)
}
  0x29   : > { %s1134_s8 = smov 64   ;;  %s1135_s9 = smov 4  }
  0x2a   : > { %908 = dma.hbm_to_vmem [thread:$0]  (!%p1214_p11), %s1565_s1, 1024, %s1207_s22, [#allocation6], %s1134_s8, %s1134_s8, %s1135_s9  }
  0x2b   : > { %p29_p2 = scmp.eq.s32.totalorder %s28_s26, 0  ;;  %p38_p1 = scmp.ne.s32.totalorder %s1127_s14, %s1123_s13 }
  0x2c   : > { %p39_p4 = scmp.eq.s32.totalorder %s1131_s15, 0  ;;  %p921_p6 = scmp.lt.s32.totalorder %s1131_s15, 2 }
  0x2d   : > { %s1250_s17 = scalar_select %p29_p2, %s1127_s14, %s31_s25  }
  0x2e   : > { %p40_p8 = por %p39_p4, %p38_p1  ;;  %p1575_p10 = scmp.eq.s32.totalorder %s1184_s16, 1 }
  0x2f   : > { %s154_s27 = sand.u32 1, %s1127_s14   ;;  %s805_s28 = sshll.u32 %s1131_s15, 12 }
  0x30   : > { %p1254_p12 = por %p1575_p10, %p38_p1  ;;  %s782_s29 = sshll.u32 %s154_s27, 8 }
  0x31   : > { %s1263_s4 = scalar_lea.hbm %s1564_s0, %s805_s28  ;;  %s158_s22 = scalar_lea.vmem [#allocation2], %s782_s29 }
  0x32   : > { %s165_s25 = sshll.u32 %s158_s22, 4  ;;  %p1265_p11 = pnand %p921_p6, %p40_p8  ;;  %s1269_s25 = int_to_ptr.vmem [resolvable:$true] %s165_s25 }
  0x33   : > { %s1271_s5 = scalar_lea.sflag [#allocation3], %s154_s27  ;;  %s999_s6 = scalar_lea.hbm %s1263_s4, 4096 }
  0x34   : > { %p1000_p13 = scmp.ne.s32.totalorder %s1263_s4, %s999_s6  ;;  %p1001_p0 = pneg %p1265_p11 }
  0x35   : > { %s1004_s9 = scalar_lea.hbm %s1564_s0, 8192  ;;  %p1005_p7 = scmp.lt.u32.totalorder %s1263_s4, %s1564_s0 }
  0x36   : > { %p1002_p3 = pnand %p1001_p0, %p1000_p13  ;;  %p1006_p9 = scmp.lt.u32.totalorder %s1004_s9, %s999_s6 }
  0x37   : > { %p1008_p1 = scmp.lt.u32.totalorder %s999_s6, %s1263_s4 }
  0x38   : > { %p1003_p5 = pneg %p1002_p3  ;;  %p1007_p2 = por %p1006_p9, %p1005_p7 }
  0x3a   : > { %p1009_p4 = por %p1008_p1, %p1007_p2 }
  0x3c   : > { %p1010_p6 = pnand %p1009_p4, %p1003_p5 }
  0x3e   : > { %1013 = shalt.err (!%p1010_p6)
}
  0x3f   : > { %s1014_s27 = scalar_lea.vmem %s1269_s25, 4096  ;;  %s1136_s28 = smov [#allocation2]  }
  0x40   : > { %p1015_p8 = scmp.ne.s32.totalorder %s1269_s25, %s1014_s27  ;;  %s1019_s29 = sshll.u32 %s1136_s28, 4  ;;  %s1020_s29 = int_to_ptr.vmem [resolvable:$false] %s1019_s29 }
  0x41   : > { %s1021_s23 = scalar_lea.vmem %s1020_s29, 8192  ;;  %p1022_p3 = scmp.lt.s32.totalorder %s1269_s25, %s1020_s29 }
  0x42   : > { %p1017_p10 = pnand %p1015_p8, %p1001_p0  ;;  %p1023_p7 = scmp.lt.s32.totalorder %s1021_s23, %s1014_s27 }
  0x44   : > { %p1018_p13 = pneg %p1017_p10  ;;  %p1024_p9 = por %p1023_p7, %p1022_p3 }
  0x46   : > { %p1025_p2 = pnand %p1024_p9, %p1018_p13 }
  0x48   : > { %1028 = shalt.err (!%p1025_p2)
}
  0x49   : > { %s1137_s30 = smov 128   ;;  %s1138_s22 = smov 8  }
  0x4a   : > { %912 = dma.hbm_to_vmem [thread:$0]  (!%p1265_p11), %s1263_s4, 4096, %s1269_s25, %s1271_s5, %s1137_s30, %s1137_s30, %s1138_s22  }
  0x4b   : > { %p1578_p0 = scmp.ne.s32.totalorder %s1573_s20, 0 }
  0x4c   : > { %s1302_s6 = sand.u32 (!%p1578_p0), 1, %s1123_s13   ;;  %p1579_p5 = scmp.ne.s32.totalorder (!%p1578_p0), %s1571_s18, 0 }
  0x4d   : > { %177 = sbr.rel (%p1578_p0) target bundleno = 437 (0x1b5), region = 28  ;;  %s786_s7 = sshll.u32 (!%p1578_p0), %s1302_s6, 8 }
  0x4e   : > { %s180_s8 = scalar_lea.sflag (!%p1578_p0), [#allocation3], %s1302_s6  ;;  %s1308_s9 = scalar_lea.vmem (!%p1578_p0), [#allocation2], %s786_s7 }
  0x54   : > { %1102 = dma.done.wait (%p1579_p5), %s180_s8, 4096  }
  0x55   : > { %1104 = vsyncadd (%p1579_p5), %s180_s8, 4294963200  ;;  %p1580_p11 = scmp.eq.s32.totalorder %s1184_s16, 0 }
  0x57   : > { %1106 = dma.done.wait (%p1580_p11), [#allocation6], 1024   ;;  %p1581_p1 = pmov %p1580_p11 }
  0x58   : > { %v963_v0 = vld [vmem:[#allocation5] sm:$0xff]   ;;  %v964_v1 = vld [vmem:[#allocation5 + $0x8] sm:$0xff]   ;;  %v965_v2 = vld [vmem:[#allocation5 + $0x10] sm:$0xff]   ;;  %s1352_s18 = scalar_lea.vmem [#allocation7], %s786_s7  ;;  %s806_s20 = sshll.u32 %s1184_s16, 12 }
  0x59   : > { %1108 = vsyncadd (%p1581_p1), [#allocation6], 4294966272  ;;  %831 = vmatprep.subr.bf16.mxu0 %v963_v0  ;;  %879 = vmatprep.subr.bf16.mxu1 %v963_v0  ;;  %v966_v3 = vld [vmem:[#allocation5 + $0x18] sm:$0xff]   ;;  %v218_v4 = vld [vmem:[%s1308_s9] sm:$0xff]  ;;  %s650_s4 = sshll.u32 %s1352_s18, 4  ;;  %s1427_s5 = scalar_lea.hbm %s1566_s2, %s806_s20  ;;  %s1429_s4 = int_to_ptr.vmem [resolvable:$true] %s650_s4 }
  0x5a   : > { %832 = vmatpush3.bf16.msra.mxu0 %v963_v0  ;;  %887 = vmatpush3.bf16.msra.mxu1 %v963_v0  ;;  %v219_v5 = vld [vmem:[%s1308_s9 + $0x8] sm:$0xff]  ;;  %v967_v7 = vld [vmem:[#allocation5 + $0x20] sm:$0xff]   ;;  %v969_v12 = vld [vmem:[#allocation5 + $0x30] sm:$0xff]   ;;  %s632_s10 = scalar_lea.sflag [#allocation4], %s1302_s6  ;;  %s1029_s11 = scalar_lea.vmem %s1429_s4, 4096 }
  0x5b   : > { %833 = vmatprep.subr.bf16.mxu0 %v964_v1  ;;  %880 = vmatprep.subr.bf16.mxu1 %v964_v1  ;;  %v250_v6 = vpack.c.bf16 %v219_v5, %v218_v4  ;;  %v234_v8 = vld [vmem:[%s1308_s9 + $0x80] sm:$0xff]  ;;  %v235_v9 = vld [vmem:[%s1308_s9 + $0x88] sm:$0xff]  ;;  %v970_v13 = vld [vmem:[#allocation5 + $0x38] sm:$0xff]   ;;  %p1030_p4 = scmp.ne.s32.totalorder %s1429_s4, %s1029_s11  ;;  %s1139_s27 = smov [#allocation7]  }
  0x5c   : > { %v258_v10 = vpack.c.bf16 %v235_v9, %v234_v8  ;;  %v968_v11 = vld [vmem:[#allocation5 + $0x28] sm:$0xff]   ;;  %v220_v14 = vld [vmem:[%s1308_s9 + $0x10] sm:$0xff]  ;;  %v221_v15 = vld [vmem:[%s1308_s9 + $0x18] sm:$0xff]  ;;  %s1033_s28 = sshll.u32 %s1139_s27, 4  ;;  %s1034_s28 = int_to_ptr.vmem [resolvable:$false] %s1033_s28 }
  0x5d   : > { %847 = vmatprep.mubr.bf16.mxu0 %v250_v6  ;;  %v222_v16 = vld [vmem:[%s1308_s9 + $0x20] sm:$0xff]  ;;  %v223_v17 = vld [vmem:[%s1308_s9 + $0x28] sm:$0xff]  ;;  %v236_v18 = vld [vmem:[%s1308_s9 + $0x90] sm:$0xff]  ;;  %v251_v22 = vpack.c.bf16 %v221_v15, %v220_v14  ;;  %p1031_p6 = pnand %p1030_p4, %p1254_p12  ;;  %s1035_s29 = scalar_lea.vmem %s1034_s28, 8192 }
  0x5e   : > { %834 = vmatpush3.bf16.msra.mxu0 %v964_v1  ;;  %888 = vmatpush3.bf16.msra.mxu1 %v964_v1  ;;  %v237_v19 = vld [vmem:[%s1308_s9 + $0x98] sm:$0xff]  ;;  %v238_v20 = vld [vmem:[%s1308_s9 + $0xa0] sm:$0xff]  ;;  %v239_v21 = vld [vmem:[%s1308_s9 + $0xa8] sm:$0xff]  ;;  %v252_v23 = vpack.c.bf16 %v223_v17, %v222_v16  ;;  %p1036_p10 = scmp.lt.s32.totalorder %s1429_s4, %s1034_s28  ;;  %p1037_p13 = scmp.lt.s32.totalorder %s1035_s29, %s1029_s11 }
  0x5f   : > { %835 = vmatprep.subr.bf16.mxu0 %v965_v2  ;;  %881 = vmatprep.subr.bf16.mxu1 %v965_v2  ;;  %v259_v24 = vpack.c.bf16 %v237_v19, %v236_v18  ;;  %v260_v25 = vpack.c.bf16 %v239_v21, %v238_v20  ;;  %v224_v26 = vld [vmem:[%s1308_s9 + $0x30] sm:$0xff]  ;;  %v225_v27 = vld [vmem:[%s1308_s9 + $0x38] sm:$0xff]  ;;  %v226_v28 = vld [vmem:[%s1308_s9 + $0x40] sm:$0xff]  ;;  %p1032_p8 = pneg %p1031_p6 }
  0x60   : > { %863 = vmatprep.mubr.bf16.mxu1 %v258_v10  ;;  %v227_v29 = vld [vmem:[%s1308_s9 + $0x48] sm:$0xff]  ;;  %v240_v30 = vld [vmem:[%s1308_s9 + $0xb0] sm:$0xff]  ;;  %v241_v31 = vld [vmem:[%s1308_s9 + $0xb8] sm:$0xff]  ;;  %v253_v34 = vpack.c.bf16 %v225_v27, %v224_v26  ;;  %p1038_p3 = por %p1037_p13, %p1036_p10 }
  0x61   : > { %v242_v32 = vld [vmem:[%s1308_s9 + $0xc0] sm:$0xff]  ;;  %v243_v33 = vld [vmem:[%s1308_s9 + $0xc8] sm:$0xff]  ;;  %v254_v35 = vpack.c.bf16 %v227_v29, %v226_v28  ;;  %v261_v36 = vpack.c.bf16 %v241_v31, %v240_v30  ;;  %v228_v38 = vld [vmem:[%s1308_s9 + $0x50] sm:$0xff] }
  0x62   : > { %836 = vmatpush3.bf16.msra.mxu0 %v965_v2  ;;  %889 = vmatpush3.bf16.msra.mxu1 %v965_v2  ;;  %v262_v37 = vpack.c.bf16 %v243_v33, %v242_v32  ;;  %v229_v39 = vld [vmem:[%s1308_s9 + $0x58] sm:$0xff]  ;;  %v230_v40 = vld [vmem:[%s1308_s9 + $0x60] sm:$0xff]  ;;  %v231_v41 = vld [vmem:[%s1308_s9 + $0x68] sm:$0xff]  ;;  %p1039_p7 = pnand %p1038_p3, %p1032_p8 }
  0x63   : > { %837 = vmatprep.subr.bf16.mxu0 %v966_v3  ;;  %882 = vmatprep.subr.bf16.mxu1 %v966_v3  ;;  %v244_v42 = vld [vmem:[%s1308_s9 + $0xd0] sm:$0xff]  ;;  %v245_v43 = vld [vmem:[%s1308_s9 + $0xd8] sm:$0xff]  ;;  %v246_v44 = vld [vmem:[%s1308_s9 + $0xe0] sm:$0xff]  ;;  %v255_v46 = vpack.c.bf16 %v229_v39, %v228_v38  ;;  %v256_v47 = vpack.c.bf16 %v231_v41, %v230_v40 }
  0x64   : > { %v247_v45 = vld [vmem:[%s1308_s9 + $0xe8] sm:$0xff]  ;;  %v263_v48 = vpack.c.bf16 %v245_v43, %v244_v42  ;;  %v232_v50 = vld [vmem:[%s1308_s9 + $0x70] sm:$0xff]  ;;  %v233_v51 = vld [vmem:[%s1308_s9 + $0x78] sm:$0xff] }
  0x65   : > { %v264_v49 = vpack.c.bf16 %v247_v45, %v246_v44  ;;  %v248_v52 = vld [vmem:[%s1308_s9 + $0xf0] sm:$0xff]  ;;  %v249_v53 = vld [vmem:[%s1308_s9 + $0xf8] sm:$0xff]  ;;  %v257_v54 = vpack.c.bf16 %v233_v51, %v232_v50 }
  0x66   : > { %838 = vmatpush3.bf16.msra.mxu0 %v966_v3  ;;  %890 = vmatpush3.bf16.msra.mxu1 %v966_v3  ;;  %v265_v55 = vpack.c.bf16 %v249_v53, %v248_v52 }
  0x67   : > { %839 = vmatprep.subr.bf16.mxu0 %v967_v7  ;;  %883 = vmatprep.subr.bf16.mxu1 %v967_v7 }
  0x6a   : > { %840 = vmatpush3.bf16.msra.mxu0 %v967_v7  ;;  %891 = vmatpush3.bf16.msra.mxu1 %v967_v7 }
  0x6b   : > { %841 = vmatprep.subr.bf16.mxu0 %v968_v11  ;;  %884 = vmatprep.subr.bf16.mxu1 %v968_v11 }
  0x6e   : > { %842 = vmatpush3.bf16.msra.mxu0 %v968_v11  ;;  %892 = vmatpush3.bf16.msra.mxu1 %v968_v11 }
  0x6f   : > { %843 = vmatprep.subr.bf16.mxu0 %v969_v12  ;;  %885 = vmatprep.subr.bf16.mxu1 %v969_v12 }
  0x72   : > { %844 = vmatpush3.bf16.msra.mxu0 %v969_v12  ;;  %893 = vmatpush3.bf16.msra.mxu1 %v969_v12 }
  0x73   : > { %845 = vmatprep.subr.bf16.mxu0 %v970_v13  ;;  %886 = vmatprep.subr.bf16.mxu1 %v970_v13 }
  0x76   : > { %846 = vmatpush3.bf16.msra.mxu0 %v970_v13  ;;  %894 = vmatpush3.bf16.msra.mxu1 %v970_v13 }
  0x79   : > { %848 = vmatmul.mubr.bf16.vlgmr.msra.gmra.mrb[0].mxu0 %v251_v22  ;;  %864 = vmatmul.mubr.bf16.vlgmr.msra.gmra.mrb[0].mxu1 %v259_v24 }
  0x7a   : > { %851 = vmatprep.mubr.bf16.mxu0 %v252_v23  ;;  %867 = vmatprep.mubr.bf16.mxu1 %v260_v25 }
  0x81   : > { %852 = vmatmul.mubr.bf16.gmra.mrb[4].mxu0 %v253_v34  ;;  %868 = vmatmul.mubr.bf16.gmra.mrb[4].mxu1 %v261_v36 }
  0x82   : > { %855 = vmatprep.mubr.bf16.mxu0 %v254_v35  ;;  %871 = vmatprep.mubr.bf16.mxu1 %v262_v37 }
  0x89   : > { %856 = vmatmul.mubr.bf16.gmra.mrb[8].mxu0 %v255_v46  ;;  %872 = vmatmul.mubr.bf16.gmra.mrb[8].mxu1 %v263_v48 }
  0x8a   : > { %859 = vmatprep.mubr.bf16.mxu0 %v256_v47  ;;  %875 = vmatprep.mubr.bf16.mxu1 %v264_v49 }
  0x91   : > { %860 = vmatmul.mubr.bf16.gmra.mrb[12].mxu0 %v257_v54  ;;  %876 = vmatmul.mubr.bf16.gmra.mrb[12].mxu1 %v265_v55 }
 0x14c   : > { %v849_v56 = vpop.f32.mrb[0].mxu0  ;;  %v1355_v58 = vpop.f32.mrb[0].mxu1 }
 0x14d   : > { %493 = vst [vmem:[%s1352_s18 + $0x10] sm:$0xff] %v849_v56  ;;  %v364_v57 = vpop.f32.mrb[1].mxu0  ;;  %509 = vst [vmem:[%s1352_s18 + $0x90] sm:$0xff] %v1355_v58  ;;  %v1360_v60 = vpop.f32.mrb[1].mxu1  ;;  %v563_v3 = vmul.f32 %v849_v56, %v849_v56 }
 0x14e   : > { %491 = vst [vmem:[%s1352_s18] sm:$0xff] %v364_v57  ;;  %v850_v59 = vpop.f32.mrb[2].mxu0  ;;  %507 = vst [vmem:[%s1352_s18 + $0x80] sm:$0xff] %v1360_v60  ;;  %v1365_v62 = vpop.f32.mrb[2].mxu1  ;;  %v561_v63 = vmul.f32 %v364_v57, %v364_v57 }
 0x14f   : > { %494 = vst [vmem:[%s1352_s18 + $0x18] sm:$0xff] %v850_v59  ;;  %v367_v61 = vpop.f32.mrb[3].mxu0  ;;  %510 = vst [vmem:[%s1352_s18 + $0x98] sm:$0xff] %v1365_v62  ;;  %v1370_v2 = vpop.f32.mrb[3].mxu1  ;;  %v564_v6 = vmul.f32 %v850_v59, %v850_v59 }
 0x150   : > { %492 = vst [vmem:[%s1352_s18 + $0x8] sm:$0xff] %v367_v61  ;;  %v523_v0 = vadd.f32 %v367_v61, %v364_v57  ;;  %v562_v1 = vmul.f32 %v367_v61, %v367_v61  ;;  %508 = vst [vmem:[%s1352_s18 + $0x88] sm:$0xff] %v1370_v2 }
 0x152   : > { %v524_v4 = vadd.f32 %v849_v56, %v523_v0  ;;  %v593_v5 = vadd.f32 %v562_v1, %v561_v63 }
 0x154   : > { %v594_v7 = vadd.f32 %v593_v5, %v563_v3  ;;  %v853_v8 = vpop.f32.mrb[4].mxu0  ;;  %v525_v9 = vadd.f32 %v850_v59, %v524_v4  ;;  %v1375_v11 = vpop.f32.mrb[4].mxu1 }
 0x155   : > { %497 = vst [vmem:[%s1352_s18 + $0x30] sm:$0xff] %v853_v8  ;;  %v380_v10 = vpop.f32.mrb[5].mxu0  ;;  %513 = vst [vmem:[%s1352_s18 + $0xb0] sm:$0xff] %v1375_v11  ;;  %v1380_v16 = vpop.f32.mrb[5].mxu1  ;;  %v567_v23 = vmul.f32 %v853_v8, %v853_v8 }
 0x156   : > { %495 = vst [vmem:[%s1352_s18 + $0x20] sm:$0xff] %v380_v10  ;;  %v526_v12 = vadd.f32 %v525_v9, %v380_v10  ;;  %v565_v13 = vmul.f32 %v380_v10, %v380_v10  ;;  %v595_v14 = vadd.f32 %v594_v7, %v564_v6  ;;  %v854_v15 = vpop.f32.mrb[6].mxu0  ;;  %511 = vst [vmem:[%s1352_s18 + $0xa0] sm:$0xff] %v1380_v16  ;;  %v1385_v18 = vpop.f32.mrb[6].mxu1 }
 0x157   : > { %498 = vst [vmem:[%s1352_s18 + $0x38] sm:$0xff] %v854_v15  ;;  %v383_v17 = vpop.f32.mrb[7].mxu0  ;;  %514 = vst [vmem:[%s1352_s18 + $0xb8] sm:$0xff] %v1385_v18  ;;  %v1390_v22 = vpop.f32.mrb[7].mxu1  ;;  %v568_v26 = vmul.f32 %v854_v15, %v854_v15 }
 0x158   : > { %v596_v19 = vadd.f32 %v595_v14, %v565_v13  ;;  %496 = vst [vmem:[%s1352_s18 + $0x28] sm:$0xff] %v383_v17  ;;  %v527_v20 = vadd.f32 %v526_v12, %v383_v17  ;;  %v566_v21 = vmul.f32 %v383_v17, %v383_v17  ;;  %512 = vst [vmem:[%s1352_s18 + $0xa8] sm:$0xff] %v1390_v22 }
 0x15a   : > { %v528_v24 = vadd.f32 %v853_v8, %v527_v20  ;;  %v597_v25 = vadd.f32 %v596_v19, %v566_v21 }
 0x15c   : > { %v598_v27 = vadd.f32 %v597_v25, %v567_v23  ;;  %v857_v28 = vpop.f32.mrb[8].mxu0  ;;  %v529_v29 = vadd.f32 %v854_v15, %v528_v24  ;;  %v1395_v31 = vpop.f32.mrb[8].mxu1 }
 0x15d   : > { %501 = vst [vmem:[%s1352_s18 + $0x50] sm:$0xff] %v857_v28  ;;  %v396_v30 = vpop.f32.mrb[9].mxu0  ;;  %517 = vst [vmem:[%s1352_s18 + $0xd0] sm:$0xff] %v1395_v31  ;;  %v1400_v36 = vpop.f32.mrb[9].mxu1  ;;  %v571_v43 = vmul.f32 %v857_v28, %v857_v28 }
 0x15e   : > { %499 = vst [vmem:[%s1352_s18 + $0x40] sm:$0xff] %v396_v30  ;;  %v530_v32 = vadd.f32 %v529_v29, %v396_v30  ;;  %v569_v33 = vmul.f32 %v396_v30, %v396_v30  ;;  %v599_v34 = vadd.f32 %v598_v27, %v568_v26  ;;  %v858_v35 = vpop.f32.mrb[10].mxu0  ;;  %515 = vst [vmem:[%s1352_s18 + $0xc0] sm:$0xff] %v1400_v36  ;;  %v1405_v38 = vpop.f32.mrb[10].mxu1 }
 0x15f   : > { %502 = vst [vmem:[%s1352_s18 + $0x58] sm:$0xff] %v858_v35  ;;  %v399_v37 = vpop.f32.mrb[11].mxu0  ;;  %518 = vst [vmem:[%s1352_s18 + $0xd8] sm:$0xff] %v1405_v38  ;;  %v1410_v42 = vpop.f32.mrb[11].mxu1  ;;  %v572_v46 = vmul.f32 %v858_v35, %v858_v35 }
 0x160   : > { %v600_v39 = vadd.f32 %v599_v34, %v569_v33  ;;  %500 = vst [vmem:[%s1352_s18 + $0x48] sm:$0xff] %v399_v37  ;;  %v531_v40 = vadd.f32 %v530_v32, %v399_v37  ;;  %v570_v41 = vmul.f32 %v399_v37, %v399_v37  ;;  %516 = vst [vmem:[%s1352_s18 + $0xc8] sm:$0xff] %v1410_v42 }
 0x162   : > { %v532_v44 = vadd.f32 %v857_v28, %v531_v40  ;;  %v601_v45 = vadd.f32 %v600_v39, %v570_v41 }
 0x164   : > { %v602_v47 = vadd.f32 %v601_v45, %v571_v43  ;;  %v861_v48 = vpop.f32.mrb[12].mxu0  ;;  %v533_v49 = vadd.f32 %v858_v35, %v532_v44  ;;  %v1417_v51 = vpop.f32.mrb[12].mxu1 }
 0x165   : > { %505 = vst [vmem:[%s1352_s18 + $0x70] sm:$0xff] %v861_v48  ;;  %v412_v50 = vpop.f32.mrb[13].mxu0  ;;  %521 = vst [vmem:[%s1352_s18 + $0xf0] sm:$0xff] %v1417_v51  ;;  %v1422_v56 = vpop.f32.mrb[13].mxu1  ;;  %v575_v3 = vmul.f32 %v861_v48, %v861_v48 }
 0x166   : > { %503 = vst [vmem:[%s1352_s18 + $0x60] sm:$0xff] %v412_v50  ;;  %v534_v52 = vadd.f32 %v533_v49, %v412_v50  ;;  %v573_v53 = vmul.f32 %v412_v50, %v412_v50  ;;  %v603_v54 = vadd.f32 %v602_v47, %v572_v46  ;;  %v862_v55 = vpop.f32.mrb[14].mxu0  ;;  %519 = vst [vmem:[%s1352_s18 + $0xe0] sm:$0xff] %v1422_v56  ;;  %v1434_v59 = vpop.f32.mrb[14].mxu1 }
 0x167   : > { %506 = vst [vmem:[%s1352_s18 + $0x78] sm:$0xff] %v862_v55  ;;  %v415_v57 = vpop.f32.mrb[15].mxu0  ;;  %522 = vst [vmem:[%s1352_s18 + $0xf8] sm:$0xff] %v1434_v59  ;;  %v1439_v1 = vpop.f32.mrb[15].mxu1 }
 0x168   : > { %v604_v61 = vadd.f32 %v603_v54, %v573_v53  ;;  %504 = vst [vmem:[%s1352_s18 + $0x68] sm:$0xff] %v415_v57  ;;  %v535_v63 = vadd.f32 %v534_v52, %v415_v57  ;;  %v574_v0 = vmul.f32 %v415_v57, %v415_v57  ;;  %520 = vst [vmem:[%s1352_s18 + $0xe8] sm:$0xff] %v1439_v1 }
 0x16a   : > { %v536_v4 = vadd.f32 %v861_v48, %v535_v63  ;;  %v605_v5 = vadd.f32 %v604_v61, %v574_v0 }
 0x16b   : > { %1042 = shalt.err (!%p1039_p7)
}
 0x16c   : > { %s1043_s23 = scalar_lea.hbm %s1427_s5, 4096  ;;  %s1047_s7 = scalar_lea.hbm %s1566_s2, 8192 }
 0x16d   : > { %p1044_p9 = scmp.ne.s32.totalorder %s1427_s5, %s1043_s23  ;;  %p1048_p5 = scmp.lt.u32.totalorder %s1427_s5, %s1566_s2 }
 0x16e   : > { %p1049_p11 = scmp.lt.u32.totalorder %s1047_s7, %s1043_s23  ;;  %p1051_p4 = scmp.lt.u32.totalorder %s1043_s23, %s1427_s5 }
 0x16f   : > { %p1045_p2 = pnand %p1044_p9, %p1254_p12 }
 0x170   : > { %p1050_p1 = por %p1049_p11, %p1048_p5 }
 0x171   : > { %p1046_p0 = pneg %p1045_p2 }
 0x172   : > { %p1052_p6 = por %p1051_p4, %p1050_p1 }
 0x174   : > { %p1053_p8 = pnand %p1052_p6, %p1046_p0 }
 0x176   : > { %1056 = shalt.err (!%p1053_p8)
}
 0x177   : > { %s1140_s18 = smov 128   ;;  %s1141_s20 = smov 8   ;;  %v576_v6 = vmul.f32 %v862_v55, %v862_v55  ;;  %v606_v7 = vadd.f32 %v605_v5, %v575_v3  ;;  %v537_v8 = vadd.f32 %v862_v55, %v536_v4  ;;  %v577_v9 = vmul.f32 %v1360_v60, %v1360_v60 }
 0x178   : > { %901 = dma.vmem_to_hbm [thread:$0]  (%p1254_p12), %s1429_s4, 4096, %s1427_s5, %s632_s10, %s1140_s18, %s1140_s18, %s1141_s20   ;;  %v578_v15 = vmul.f32 %v1370_v2, %v1370_v2  ;;  %v579_v17 = vmul.f32 %v1355_v58, %v1355_v58  ;;  %v580_v21 = vmul.f32 %v1365_v62, %v1365_v62  ;;  %v582_v28 = vmul.f32 %v1390_v22, %v1390_v22 }
 0x179   : > { %v538_v10 = vadd.f32 %v537_v8, %v1360_v60  ;;  %v607_v12 = vadd.f32 %v606_v7, %v576_v6  ;;  %v581_v60 = vmul.f32 %v1380_v16, %v1380_v16  ;;  %v586_v39 = vmul.f32 %v1410_v42, %v1410_v42  ;;  %s789_s4 = sshll.u32 %s1302_s6, 1  ;;  %s802_s25 = sshll.u32 %s1184_s16, 5 }
 0x17a   : > { %v591_v48 = vmul.f32 %v1417_v51, %v1417_v51  ;;  %v592_v50 = vmul.f32 %v1434_v59, %v1434_v59  ;;  %s214_s26 = scalar_lea.vmem [#allocation8], %s789_s4  ;;  %s1520_s27 = scalar_lea.hbm %s1567_s3, %s802_s25 }
 0x17b   : > { %v608_v13 = vadd.f32 %v607_v12, %v577_v9  ;;  %v539_v14 = vadd.f32 %v538_v10, %v1370_v2  ;;  %s666_s5 = sshll.u32 %s214_s26, 4  ;;  %s637_s28 = scalar_lea.sflag [#allocation9], %s1302_s6  ;;  %s1522_s5 = int_to_ptr.vmem [resolvable:$true] %s666_s5 }
 0x17c   : > { %s1057_s29 = scalar_lea.vmem %s1522_s5, 32  ;;  %s1142_s16 = smov [#allocation8]  }
 0x17d   : > { %v540_v19 = vadd.f32 %v1355_v58, %v539_v14  ;;  %v609_v20 = vadd.f32 %v608_v13, %v578_v15  ;;  %v583_v58 = vmul.f32 %v1375_v11, %v1375_v11  ;;  %p1058_p10 = scmp.ne.s32.totalorder %s1522_s5, %s1057_s29  ;;  %s1061_s23 = sshll.u32 %s1142_s16, 4  ;;  %s1062_s23 = int_to_ptr.vmem [resolvable:$false] %s1061_s23 }
 0x17e   : > { %s1063_s30 = scalar_lea.vmem %s1062_s23, 64  ;;  %p1064_p7 = scmp.lt.s32.totalorder %s1522_s5, %s1062_s23 }
 0x17f   : > { %v610_v23 = vadd.f32 %v609_v20, %v579_v17  ;;  %v541_v24 = vadd.f32 %v1365_v62, %v540_v19  ;;  %v584_v62 = vmul.f32 %v1385_v18, %v1385_v18  ;;  %p1059_p13 = pnand %p1058_p10, %p1254_p12  ;;  %p1065_p9 = scmp.lt.s32.totalorder %s1063_s30, %s1057_s29 }
 0x181   : > { %v542_v25 = vadd.f32 %v541_v24, %v1380_v16  ;;  %v611_v26 = vadd.f32 %v610_v23, %v580_v21  ;;  %v585_v16 = vmul.f32 %v1400_v36, %v1400_v36  ;;  %p1060_p3 = pneg %p1059_p13  ;;  %p1066_p2 = por %p1065_p9, %p1064_p7 }
 0x183   : > { %v612_v27 = vadd.f32 %v611_v26, %v581_v60  ;;  %v543_v2 = vadd.f32 %v542_v25, %v1390_v22  ;;  %p1067_p0 = pnand %p1066_p2, %p1060_p3 }
 0x185   : > { %v544_v29 = vadd.f32 %v1375_v11, %v543_v2  ;;  %v613_v30 = vadd.f32 %v612_v27, %v582_v28  ;;  %v587_v11 = vmul.f32 %v1395_v31, %v1395_v31 }
 0x187   : > { %v614_v32 = vadd.f32 %v613_v30, %v583_v58  ;;  %v545_v33 = vadd.f32 %v1385_v18, %v544_v29  ;;  %v588_v18 = vmul.f32 %v1405_v38, %v1405_v38 }
 0x189   : > { %v546_v34 = vadd.f32 %v545_v33, %v1400_v36  ;;  %v615_v35 = vadd.f32 %v614_v32, %v584_v62  ;;  %v589_v36 = vmul.f32 %v1422_v56, %v1422_v56 }
 0x18b   : > { %v616_v37 = vadd.f32 %v615_v35, %v585_v16  ;;  %v547_v22 = vadd.f32 %v546_v34, %v1410_v42 }
 0x18d   : > { %v548_v40 = vadd.f32 %v1395_v31, %v547_v22  ;;  %v617_v41 = vadd.f32 %v616_v37, %v586_v39  ;;  %v590_v31 = vmul.f32 %v1439_v1, %v1439_v1 }
 0x18f   : > { %v618_v43 = vadd.f32 %v617_v41, %v587_v11  ;;  %v549_v44 = vadd.f32 %v1405_v38, %v548_v40 }
 0x191   : > { %v550_v45 = vadd.f32 %v549_v44, %v1422_v56  ;;  %v619_v46 = vadd.f32 %v618_v43, %v588_v18 }
 0x193   : > { %v620_v42 = vadd.f32 %v619_v46, %v589_v36  ;;  %v551_v47 = vadd.f32 %v550_v45, %v1439_v1 }
 0x195   : > { %v552_v49 = vadd.f32 %v1417_v51, %v551_v47  ;;  %v621_v38 = vadd.f32 %v620_v42, %v590_v31 }
 0x197   : > { %v553_v52 = vadd.f32 %v1434_v59, %v552_v49  ;;  %v622_v53 = vadd.f32 %v621_v38, %v591_v48 }
 0x199   : > { %v554_v54 = vrot.slane %v553_v52, 4  ;;  %v623_v55 = vadd.f32 %v622_v53, %v592_v50 }
 0x19b   : > { %v555_v56 = vadd.f32 %v554_v54, %v553_v52  ;;  %v624_v57 = vrot.slane %v623_v55, 4 }
 0x19d   : > { %v556_v61 = vrot.slane %v555_v56, 2  ;;  %v625_v63 = vadd.f32 %v624_v57, %v623_v55 }
 0x19f   : > { %v557_v0 = vadd.f32 %v556_v61, %v555_v56  ;;  %v626_v1 = vrot.slane %v625_v63, 2 }
 0x1a1   : > { %v558_v51 = vrot.slane %v557_v0, 1  ;;  %v627_v3 = vadd.f32 %v626_v1, %v625_v63 }
 0x1a3   : > { %v559_v4 = vadd.f32 %v558_v51, %v557_v0  ;;  %v628_v5 = vrot.slane %v627_v3, 1 }
 0x1a5   : > { %560 = vst [vmem:[%s214_s26] sm:$0x1] %v559_v4  ;;  %v629_v59 = vadd.f32 %v628_v5, %v627_v3 }
 0x1a7   : > { %630 = vst [vmem:[%s214_s26 + $0x1] sm:$0x1] %v629_v59 }
 0x1a8   : > { %1070 = shalt.err (!%p1067_p0)
}
 0x1a9   : > { %s1071_s6 = scalar_lea.hbm %s1520_s27, 32  ;;  %s1075_s8 = scalar_lea.hbm %s1567_s3, 64 }
 0x1aa   : > { %p1072_p5 = scmp.ne.s32.totalorder %s1520_s27, %s1071_s6  ;;  %p1076_p4 = scmp.lt.u32.totalorder %s1520_s27, %s1567_s3 }
 0x1ab   : > { %p1077_p6 = scmp.lt.u32.totalorder %s1075_s8, %s1071_s6  ;;  %p1079_p10 = scmp.lt.u32.totalorder %s1071_s6, %s1520_s27 }
 0x1ac   : > { %p1073_p11 = pnand %p1072_p5, %p1254_p12 }
 0x1ad   : > { %p1078_p8 = por %p1077_p6, %p1076_p4 }
 0x1ae   : > { %p1074_p1 = pneg %p1073_p11 }
 0x1af   : > { %p1080_p13 = por %p1079_p10, %p1078_p8 }
 0x1b1   : > { %p1081_p3 = pnand %p1080_p13, %p1074_p1 }
 0x1b3   : > { %1084 = shalt.err (!%p1081_p3)
}
 0x1b4   : > { %902 = dma.vmem_to_hbm [thread:$0]  (%p1254_p12), %s1522_s5, 32, %s1520_s27, %s637_s28  }
 0x1b5 PF: > { %s678_s20 = sand.u32 1, %s1119_s12   ;;  %p1582_p7 = scmp.ne.s32.totalorder %s1572_s19, 0 }
 0x1b6   : > { %p1583_p9 = scmp.ge.s32.totalorder %s1131_s15, 2  ;;  %s679_s4 = scalar_lea.sflag [#allocation4], %s678_s20 }
 0x1b8   : > { %p914_p2 = pnand %p1583_p9, %p1582_p7 }
 0x1ba   : > { %1110 = dma.done.wait (!%p914_p2), %s679_s4, 4096  }
 0x1bb   : > { %1112 = vsyncadd (!%p914_p2), %s679_s4, 4294963200  ;;  %s688_s25 = scalar_lea.sflag [#allocation9], %s678_s20 }
 0x1bc   : > { %1114 = dma.done.wait (!%p914_p2), %s688_s25, 32  }
 0x1bd   : > { %1116 = vsyncadd (!%p914_p2), %s688_s25, 4294967264  ;;  %p21_p12 = scmp.ge.s32.totalorder %s1219_s24, 4   ;;  %s1584_s12 = smov %s1123_s13 }
 0x1be   : > { %s1585_s13 = smov %s1127_s14  ;;  %s1586_s14 = smov %s1250_s17 }
 0x1bf   : > { %s1587_s15 = smov %s1219_s24  ;;  %23 = sbr.rel (!%p21_p12) target bundleno = 8 (0x8), region = 94 }
 0x1c6   :  { %693 = vsyncpa [#allocation3], 1 }
 0x1c7   :  { %695 = vsyncpa [#allocation3 + $0x1], 1 }
 0x1c8   :  { %696 = vsyncpa [#allocation6], 1 }
 0x1c9   :  { %697 = vsyncpa [#allocation4], 1 }
 0x1ca   :  { %699 = vsyncpa [#allocation4 + $0x1], 1 }
 0x1cb   :  { %700 = vsyncpa [#allocation9], 1 }
 0x1cc   :  { %702 = vsyncpa [#allocation9 + $0x1], 1 }

// kernel: bottleneck_forward.7
= control target key start
LH: loop header
LB: loop body
LE: loop exit
PB: predicated region body
PF: predicated region fallthrough
CT: control target
= control target key end

     0   :  { %9 = vsyncpa [#allocation3], 0  ;;  %s2992_s0 = inlined_call_operand.hbm [shape: f32[4,2,9,9,128], index: 0, kind: input, shape index: {}]   ;;  %s2993_s1 = inlined_call_operand.hbm [shape: bf16[9,128,128], index: 1, kind: input, shape index: {}]   ;;  %s2994_s2 = inlined_call_operand.hbm [shape: f32[2,64,128], index: 2, kind: output, shape index: {0}]   ;;  %s2995_s3 = inlined_call_operand.hbm [shape: f32[2,2,128], index: 3, kind: output, shape index: {1}]  }
   0x1   :  { %11 = vsyncpa [#allocation3 + $0x1], 0 }
   0x2   :  { %12 = vsyncpa [#allocation6], 0 }
   0x3   :  { %13 = vsyncpa [#allocation4], 0 }
   0x4   :  { %15 = vsyncpa [#allocation4 + $0x1], 0 }
   0x5   :  { %16 = vsyncpa [#allocation9], 0 }
   0x6   :  { %18 = vsyncpa [#allocation9 + $0x1], 0  ;;  %s2635_s12 = smov 0   ;;  %s2637_s13 = smov 0  }
   0x7   :  { %s2639_s14 = smov 0   ;;  %s2641_s15 = smov 0  }
   0x8 LB: > { %s2656_s16 = sadd.s32 4294967295, %s2600_s15   ;;  %s1770_s17 = sadd.s32 4294967294, %s2600_s15   ;;  %s2600_s15 = sphi %s2641_s15, %s3017_s15   ;;  %s2596_s14 = sphi %s2639_s14, %s3016_s14   ;;  %s2592_s13 = sphi %s2637_s13, %s3015_s13   ;;  %s2588_s12 = sphi %s2635_s12, %s3014_s12  }
   0x9   : > { %s2660_s18 = sadd.s32 1, %s2600_s15   ;;  %s31_s19 = sadd.s32 1, %s2596_s14 }
   0xa   : > { %s28_s20 = ssub.s32 %s2600_s15, %s2660_s18  ;;  %p38_p0 = scmp.ne.s32.totalorder %s2596_s14, %s2592_s13 }
   0xb   : > { %p29_p1 = scmp.eq.s32.totalorder %s28_s20, 0  ;;  %p39_p2 = scmp.eq.s32.totalorder %s2600_s15, 0 }
   0xc   : > { %p44_p3 = scmp.ne.s32.totalorder %s2592_s13, %s2588_s12  ;;  %p2996_p4 = scmp.eq.s32.totalorder %s2656_s16, 0 }
   0xd   : > { %s2672_s21 = scalar_select %p29_p1, %s2596_s14, %s31_s19  }
   0xe   : > { %p2674_p5 = por %p39_p2, %p38_p0  ;;  %p2680_p6 = por %p2996_p4, %p44_p3 }
   0xf   : > { %p89_p7 = scmp.eq.s32.totalorder %s2656_s16, 1  ;;  %p95_p8 = scmp.eq.s32.totalorder %s1770_s17, 1 }
  0x10   : > { %s3001_s22 = scalar_select %p2674_p5, 1, 0 }
  0x11   : > { %s3002_s23 = scalar_select %p2680_p6, 1, 0 }
  0x12   : > { %p1771_p9 = scmp.ge.s32.totalorder %s2600_s15, 1  ;;  %p128_p10 = scmp.lt.s32.totalorder %s2600_s15, 3 }
  0x13   : > { %p2687_p11 = por %p89_p7, %p38_p0  ;;  %p2691_p12 = por %p95_p8, %p44_p3 }
  0x14   : > { %p2695_p13 = pnand %p1771_p9, %p128_p10  ;;  %s2602_s27 = smov [#allocation5]  }
  0x15   : > { %s3003_s24 = scalar_select %p2687_p11, 1, 0 }
  0x16   : > { %s3004_s25 = scalar_select %p2691_p12, 1, 0 }
  0x17   : > { %s3005_s26 = scalar_select %p2695_p13, 1, 0 }
  0x18   : > { %p2341_p1 = pneg %p2695_p13  ;;  %s140_s28 = sshll.u32 %s2602_s27, 4  ;;  %s141_s28 = int_to_ptr.vmem [resolvable:$true] %s140_s28 }
  0x19   : > { %s2470_s5 = scalar_lea.hbm %s2993_s1, 9216 }
  0x1a   : > { %p2703_p2 = pnand %p2341_p1, %p2996_p4  ;;  %p2471_p0 = scmp.ne.s32.totalorder %s2993_s1, %s2470_s5 }
  0x1b   : > { %p2477_p9 = scmp.lt.u32.totalorder %s2470_s5, %s2993_s1 }
  0x1c   : > { %p2472_p3 = pneg %p2703_p2 }
  0x1e   : > { %p2473_p7 = pnand %p2472_p3, %p2471_p0 }
  0x20   : > { %p2474_p8 = pneg %p2473_p7 }
  0x22   : > { %p2479_p10 = pnand %p2477_p9, %p2474_p8 }
  0x24   : > { %2482 = shalt.err (!%p2479_p10)
}
  0x25   : > { %s2483_s10 = scalar_lea.vmem %s141_s28, 9216  ;;  %p2491_p11 = scmp.lt.s32.totalorder %s141_s28, %s141_s28 }
  0x26   : > { %p2484_p1 = scmp.ne.s32.totalorder %s141_s28, %s2483_s10  ;;  %p2492_p6 = scmp.lt.s32.totalorder %s2483_s10, %s2483_s10 }
  0x28   : > { %p2486_p4 = pnand %p2484_p1, %p2472_p3  ;;  %p2493_p13 = por %p2492_p6, %p2491_p11 }
  0x2a   : > { %p2487_p12 = pneg %p2486_p4 }
  0x2c   : > { %p2494_p5 = pnand %p2493_p13, %p2487_p12 }
  0x2e   : > { %2497 = shalt.err (!%p2494_p5)
}
  0x2f   : > { %s2603_s11 = smov 64   ;;  %s2604_s17 = smov 4  }
  0x30   : > { %2344 = dma.hbm_to_vmem [thread:$0]  (!%p2703_p2), %s2993_s1, 9216, %s141_s28, [#allocation6], %s2603_s11, %s2603_s11, %s2604_s17  }
  0x31   : > { %p1773_p0 = scmp.ge.s32.totalorder %s2600_s15, 2 }
  0x33   : > { %150 = sbr.rel (%p1773_p0) target bundleno = 74 (0x4a), region = 20 }
  0x3a   : > { %s154_s27 = sand.u32 1, %s2596_s14   ;;  %s2322_s30 = smul.u32 2304, %s2600_s15 }
  0x3b   : > { %s2321_s29 = smul.u32 576, %s154_s27  ;;  %s2605_s4 = smov 4608  }
  0x3c   : > { %p3007_p4 = scmp.ne.s32.totalorder %s3001_s22, 0  ;;  %s164_s7 = scalar_lea.hbm %s2992_s0, %s2322_s30 }
  0x3d   : > { %s158_s9 = scalar_lea.vmem [#allocation2], %s2321_s29  ;;  %s2606_s11 = smov 2304  }
  0x3e   : > { %2327 = sst [smem:[#allocation11]] (%p3007_p4), %s2605_s4  ;;  %s177_s10 = sshll.u32 %s158_s9, 4  ;;  %s178_s10 = int_to_ptr.vmem [resolvable:$true] %s177_s10 }
  0x3f   : > { %s2326_s28 = scalar_select %p3007_p4, [#allocation0], [#allocation12] }
  0x40   : > { %2328 = sst [smem:[#allocation11 + $0x1]] (%p3007_p4), %s2606_s11  ;;  %s2607_s17 = smov 18  }
  0x41   : > { %s169_s8 = sld [smem:[%s2326_s28]]   ;;  %s2608_s19 = smov 128  }
  0x42   : > { %2329 = sst [smem:[#allocation11 + $0x2]] (%p3007_p4), %s2607_s17  ;;  %s2609_s20 = smov 8  }
  0x43   : > { %2330 = sst [smem:[#allocation11 + $0x3]] (%p3007_p4), %s2608_s19  ;;  %s155_s29 = scalar_lea.sflag [#allocation3], %s154_s27 }
  0x44   : > { %2331 = sst [smem:[#allocation11 + $0x4]] (%p3007_p4), %s2608_s19  ;;  %s2610_s28 = smov [#allocation10]  }
  0x45   : > { %2332 = sst [smem:[#allocation11 + $0x5]] (%p3007_p4), %s2609_s20 }
  0x47   : > { %s1775_s30 = sshll.u32 %s169_s8, 26 }
  0x48   : > { %s1776_s4 = sadd.s32 134217728, %s1775_s30 }
  0x49   : > { %2333 = dma.general (%p3007_p4), %s164_s7, 9216, %s178_s10, %s155_s29, %s2610_s28, [#allocation11], %s1776_s4, 0  }
  0x4a PF: > { %p3008_p5 = scmp.ne.s32.totalorder %s3005_s26, 0 }
  0x4b   : > { %s2750_s5 = sand.u32 (!%p3008_p5), 1, %s2592_s13   ;;  %p3009_p6 = scmp.ne.s32.totalorder (!%p3008_p5), %s3002_s23, 0 }
  0x4c   : > { %202 = sbr.rel (%p3008_p5) target bundleno = 519 (0x207), region = 28  ;;  %s205_s9 = scalar_lea.sflag (!%p3008_p5), [#allocation3], %s2750_s5 }
  0x4d   : > { %s2323_s6 = smul.u32 (!%p3008_p5), 576, %s2750_s5 }
  0x4f   : > { %s2754_s11 = scalar_lea.vmem (!%p3008_p5), [#allocation2], %s2323_s6 }
  0x53   : > { %2571 = dma.done.wait (%p3009_p6), %s205_s9, 9216  }
  0x54   : > { %2573 = vsyncadd (%p3009_p6), %s205_s9, 4294958080  ;;  %p3010_p11 = scmp.eq.s32.totalorder %s2656_s16, 0 }
  0x56   : > { %2575 = dma.done.wait (%p3010_p11), [#allocation6], 9216   ;;  %p3011_p12 = pmov %p3010_p11 }
  0x57   : > { %v2398_v0 = vld [vmem:[#allocation5 + $0x40] sm:$0xff]   ;;  %v2400_v2 = vld [vmem:[#allocation5 + $0x48] sm:$0xff]   ;;  %v2402_v4 = vld [vmem:[#allocation5 + $0x50] sm:$0xff]   ;;  %s1779_s22 = sshll.u32 %s2750_s5, 6  ;;  %s1916_s27 = sshll.u32 %s2656_s16, 10 }
  0x58   : > { %2577 = vsyncadd (%p3011_p12), [#allocation6], 4294958080  ;;  %v2399_v1 = vld [vmem:[#allocation5 + $0x100] sm:$0xff]   ;;  %2025 = vmatprep.subr.bf16.mxu1 %v2398_v0  ;;  %v2401_v3 = vld [vmem:[#allocation5 + $0x108] sm:$0xff]   ;;  %s232_s23 = scalar_lea.vmem [#allocation7], %s1779_s22  ;;  %s2914_s10 = scalar_lea.hbm %s2994_s2, %s1916_s27 }
  0x59   : > { %2121 = vmatprep.subr.bf16.mxu0 %v2399_v1  ;;  %2026 = vmatpush3.bf16.msra.mxu1 %v2398_v0  ;;  %v2403_v5 = vld [vmem:[#allocation5 + $0x110] sm:$0xff]   ;;  %v2404_v6 = vld [vmem:[#allocation5 + $0x58] sm:$0xff]   ;;  %v2406_v8 = vld [vmem:[#allocation5 + $0x60] sm:$0xff]   ;;  %s1642_s26 = sshll.u32 %s232_s23, 4  ;;  %s1624_s17 = scalar_lea.sflag [#allocation4], %s2750_s5  ;;  %s2908_s26 = int_to_ptr.vmem [resolvable:$true] %s1642_s26 }
  0x5a   : > { %2122 = vmatpush3.bf16.msra.mxu0 %v2399_v1  ;;  %2027 = vmatprep.subr.bf16.mxu1 %v2400_v2  ;;  %v2405_v7 = vld [vmem:[#allocation5 + $0x118] sm:$0xff]   ;;  %v2407_v9 = vld [vmem:[#allocation5 + $0x120] sm:$0xff]   ;;  %v2408_v10 = vld [vmem:[#allocation5 + $0x68] sm:$0xff]   ;;  %s2498_s19 = scalar_lea.vmem %s2908_s26, 1024  ;;  %p3012_p2 = scmp.ne.s32.totalorder %s3003_s24, 0 }
  0x5b   : > { %2123 = vmatprep.subr.bf16.mxu0 %v2401_v3  ;;  %v1781_v11 = vld [vmem:[%s2754_s11 + $0x90] sm:$0xff]  ;;  %v2766_v12 = vld [vmem:[%s2754_s11 + $0xa0] sm:$0xff]  ;;  %v2409_v13 = vld [vmem:[#allocation5 + $0x128] sm:$0xff]   ;;  %p2499_p13 = scmp.ne.s32.totalorder %s2908_s26, %s2498_s19  ;;  %s2611_s20 = smov [#allocation7]  }
  0x5c   : > { %v278_v14 = vpack.c.bf16 %v2766_v12, %v1781_v11  ;;  %v1829_v15 = vld [vmem:[%s2754_s11 + $0x1b0] sm:$0xff]  ;;  %v1830_v16 = vld [vmem:[%s2754_s11 + $0x1c0] sm:$0xff]  ;;  %v2412_v22 = vld [vmem:[#allocation5 + $0x78] sm:$0xff]   ;;  %s2502_s30 = sshll.u32 %s2611_s20, 4  ;;  %s2503_s30 = int_to_ptr.vmem [resolvable:$false] %s2502_s30 }
  0x5d   : > { %2028 = vmatpush3.bf16.msra.mxu1 %v2400_v2  ;;  %v835_v17 = vpack.c.bf16 %v1830_v16, %v1829_v15  ;;  %v2772_v18 = vld [vmem:[%s2754_s11 + $0xb0] sm:$0xff]  ;;  %v2413_v23 = vld [vmem:[#allocation5 + $0x138] sm:$0xff]   ;;  %v2414_v24 = vld [vmem:[#allocation5] sm:$0xff]   ;;  %p2500_p3 = pnand %p2499_p13, %p3012_p2  ;;  %s2504_s4 = scalar_lea.vmem %s2503_s30, 2048 }
  0x5e   : > { %2124 = vmatpush3.bf16.msra.mxu0 %v2401_v3  ;;  %2029 = vmatprep.subr.bf16.mxu1 %v2402_v4  ;;  %v2410_v19 = vld [vmem:[#allocation5 + $0x70] sm:$0xff]   ;;  %v1287_v20 = vpack.c.bf16 %v2772_v18, %v2766_v12  ;;  %v2777_v25 = vld [vmem:[%s2754_s11 + $0xc0] sm:$0xff]  ;;  %v2416_v34 = vld [vmem:[#allocation5 + $0x8] sm:$0xff]   ;;  %p2505_p8 = scmp.lt.s32.totalorder %s2908_s26, %s2503_s30  ;;  %p2506_p9 = scmp.lt.s32.totalorder %s2504_s4, %s2498_s19 }
  0x5f   : > { %2125 = vmatprep.subr.bf16.mxu0 %v2403_v5  ;;  %2041 = vmatprep.mubr.bf16.mxu1 %v278_v14  ;;  %v2411_v21 = vld [vmem:[#allocation5 + $0x130] sm:$0xff]   ;;  %v1832_v27 = vld [vmem:[%s2754_s11 + $0x1e0] sm:$0xff]  ;;  %v279_v29 = vpack.c.bf16 %v2777_v25, %v2772_v18  ;;  %v2417_v37 = vld [vmem:[#allocation5 + $0x148] sm:$0xff]   ;;  %p2501_p7 = pneg %p2500_p3 }
  0x60   : > { %2137 = vmatprep.mubr.bf16.mxu0 %v835_v17  ;;  %v1831_v26 = vld [vmem:[%s2754_s11 + $0x1d0] sm:$0xff]  ;;  %v2415_v28 = vld [vmem:[#allocation5 + $0x140] sm:$0xff]   ;;  %v2420_v53 = vld [vmem:[#allocation5 + $0x18] sm:$0xff]   ;;  %p2507_p10 = por %p2506_p9, %p2505_p8 }
  0x61   : > { %2030 = vmatpush3.bf16.msra.mxu1 %v2402_v4  ;;  %v2784_v30 = vld [vmem:[%s2754_s11 + $0xd0] sm:$0xff]  ;;  %v836_v31 = vpack.c.bf16 %v1832_v27, %v1831_v26  ;;  %v2787_v32 = vld [vmem:[%s2754_s11 + $0xe0] sm:$0xff]  ;;  %v2421_v54 = vld [vmem:[#allocation5 + $0x158] sm:$0xff]  }
  0x62   : > { %2126 = vmatpush3.bf16.msra.mxu0 %v2403_v5  ;;  %2031 = vmatprep.subr.bf16.mxu1 %v2404_v6  ;;  %v1288_v33 = vpack.c.bf16 %v2784_v30, %v2777_v25  ;;  %v1833_v35 = vld [vmem:[%s2754_s11 + $0x1f0] sm:$0xff]  ;;  %v1834_v36 = vld [vmem:[%s2754_s11 + $0x200] sm:$0xff]  ;;  %v280_v38 = vpack.c.bf16 %v2787_v32, %v2784_v30  ;;  %v2424_v59 = vld [vmem:[#allocation5 + $0x28] sm:$0xff]   ;;  %p2508_p1 = pnand %p2507_p10, %p2501_p7 }
  0x63   : > { %2127 = vmatprep.subr.bf16.mxu0 %v2405_v7  ;;  %v2418_v39 = vld [vmem:[#allocation5 + $0x10] sm:$0xff]   ;;  %v837_v40 = vpack.c.bf16 %v1834_v36, %v1833_v35  ;;  %v2799_v42 = vld [vmem:[%s2754_s11 + $0x100] sm:$0xff]  ;;  %v2425_v60 = vld [vmem:[#allocation5 + $0x168] sm:$0xff]  }
  0x64   : > { %v2796_v41 = vld [vmem:[%s2754_s11 + $0xf0] sm:$0xff]  ;;  %v1836_v45 = vld [vmem:[%s2754_s11 + $0x220] sm:$0xff]  ;;  %v2428_v63 = vld [vmem:[#allocation5 + $0x38] sm:$0xff]  }
  0x65   : > { %2032 = vmatpush3.bf16.msra.mxu1 %v2404_v6  ;;  %v1835_v43 = vld [vmem:[%s2754_s11 + $0x210] sm:$0xff]  ;;  %v1289_v44 = vpack.c.bf16 %v2796_v41, %v2787_v32  ;;  %v241_v47 = vld [vmem:[%s2754_s11] sm:$0xff]  ;;  %v281_v48 = vpack.c.bf16 %v2799_v42, %v2796_v41  ;;  %v2429_v0 = vld [vmem:[#allocation5 + $0x178] sm:$0xff]  }
  0x66   : > { %2128 = vmatpush3.bf16.msra.mxu0 %v2405_v7  ;;  %2033 = vmatprep.subr.bf16.mxu1 %v2406_v8  ;;  %v2419_v46 = vld [vmem:[#allocation5 + $0x150] sm:$0xff]   ;;  %v838_v50 = vpack.c.bf16 %v1836_v45, %v1835_v43  ;;  %v1845_v51 = vld [vmem:[%s2754_s11 + $0x121] sm:$0xff]  ;;  %v2437_v35 = vld [vmem:[#allocation5 + $0x198] sm:$0xff]  }
  0x67   : > { %2129 = vmatprep.subr.bf16.mxu0 %v2407_v9  ;;  %v2809_v49 = vld [vmem:[%s2754_s11 + $0x10] sm:$0xff]  ;;  %v2422_v57 = vld [vmem:[#allocation5 + $0x20] sm:$0xff]   ;;  %v2433_v15 = vld [vmem:[#allocation5 + $0x188] sm:$0xff]  }
  0x68   : > { %v1846_v52 = vld [vmem:[%s2754_s11 + $0x131] sm:$0xff]  ;;  %v249_v55 = vpack.c.bf16 %v2809_v49, %v241_v47  ;;  %v2423_v58 = vld [vmem:[#allocation5 + $0x160] sm:$0xff]   ;;  %v2441_v43 = vld [vmem:[#allocation5 + $0x1a8] sm:$0xff]  }
  0x69   : > { %2034 = vmatpush3.bf16.msra.mxu1 %v2406_v8  ;;  %v985_v56 = vpack.c.bf16 %v1846_v52, %v1845_v51  ;;  %v2426_v61 = vld [vmem:[#allocation5 + $0x30] sm:$0xff]   ;;  %v2430_v1 = vld [vmem:[#allocation5 + $0x80] sm:$0xff]   ;;  %v2444_v47 = vld [vmem:[#allocation5 + $0xb8] sm:$0xff]  }
  0x6a   : > { %2130 = vmatpush3.bf16.msra.mxu0 %v2407_v9  ;;  %2035 = vmatprep.subr.bf16.mxu1 %v2408_v10  ;;  %v2427_v62 = vld [vmem:[#allocation5 + $0x170] sm:$0xff]   ;;  %v243_v2 = vld [vmem:[%s2754_s11 + $0x20] sm:$0xff]  ;;  %v2460_v12 = vld [vmem:[#allocation5 + $0xf8] sm:$0xff]  }
  0x6b   : > { %2131 = vmatprep.subr.bf16.mxu0 %v2409_v13  ;;  %v2816_v3 = vld [vmem:[%s2754_s11 + $0x30] sm:$0xff]  ;;  %v1847_v4 = vld [vmem:[%s2754_s11 + $0x141] sm:$0xff]  ;;  %v2461_v18 = vld [vmem:[#allocation5 + $0x1f8] sm:$0xff]  }
  0x6c   : > { %v1848_v5 = vld [vmem:[%s2754_s11 + $0x151] sm:$0xff]  ;;  %v2431_v6 = vld [vmem:[#allocation5 + $0x180] sm:$0xff]   ;;  %v250_v9 = vpack.c.bf16 %v2816_v3, %v243_v2  ;;  %v2467_v41 = vld [vmem:[#allocation5 + $0x228] sm:$0xff]  }
  0x6d   : > { %2036 = vmatpush3.bf16.msra.mxu1 %v2408_v10  ;;  %v2821_v7 = vld [vmem:[%s2754_s11 + $0x40] sm:$0xff]  ;;  %v2824_v8 = vld [vmem:[%s2754_s11 + $0x50] sm:$0xff]  ;;  %v2432_v10 = vld [vmem:[#allocation5 + $0x88] sm:$0xff]  }
  0x6e   : > { %2132 = vmatpush3.bf16.msra.mxu0 %v2409_v13  ;;  %2037 = vmatprep.subr.bf16.mxu1 %v2410_v19  ;;  %v1849_v11 = vld [vmem:[%s2754_s11 + $0x161] sm:$0xff]  ;;  %v986_v13 = vpack.c.bf16 %v1848_v5, %v1847_v4  ;;  %v1850_v14 = vld [vmem:[%s2754_s11 + $0x171] sm:$0xff]  ;;  %v251_v16 = vpack.c.bf16 %v2824_v8, %v2821_v7 }
  0x6f   : > { %2133 = vmatprep.subr.bf16.mxu0 %v2411_v21  ;;  %v2832_v17 = vld [vmem:[%s2754_s11 + $0x60] sm:$0xff]  ;;  %v1852_v26 = vld [vmem:[%s2754_s11 + $0x191] sm:$0xff] }
  0x70   : > { %v525_v27 = vld [vmem:[%s2754_s11 + $0x1] sm:$0xff]  ;;  %v2442_v45 = vld [vmem:[#allocation5 + $0xb0] sm:$0xff]   ;;  %v2465_v25 = vld [vmem:[#allocation5 + $0x218] sm:$0xff]  }
  0x71   : > { %2038 = vmatpush3.bf16.msra.mxu1 %v2410_v19  ;;  %v2434_v19 = vld [vmem:[#allocation5 + $0x90] sm:$0xff]   ;;  %v2446_v51 = vld [vmem:[#allocation5 + $0xc0] sm:$0xff]  }
  0x72   : > { %2134 = vmatpush3.bf16.msra.mxu0 %v2411_v21  ;;  %2039 = vmatprep.subr.bf16.mxu1 %v2412_v22  ;;  %v987_v21 = vpack.c.bf16 %v1850_v14, %v1849_v11  ;;  %v2447_v52 = vld [vmem:[#allocation5 + $0x1c0] sm:$0xff]   ;;  %v1814_v4 = vld [vmem:[%s2754_s11 + $0x130] sm:$0xff]  ;;  %v2456_v11 = vld [vmem:[#allocation5 + $0xe8] sm:$0xff]  }
  0x73   : > { %2135 = vmatprep.subr.bf16.mxu0 %v2413_v23  ;;  %v2458_v14 = vld [vmem:[#allocation5 + $0xf0] sm:$0xff]   ;;  %v2466_v32 = vld [vmem:[#allocation5 + $0x220] sm:$0xff]  }
  0x75   : > { %2040 = vmatpush3.bf16.msra.mxu1 %v2412_v22  ;;  %v2835_v22 = vld [vmem:[%s2754_s11 + $0x70] sm:$0xff] }
  0x76   : > { %2136 = vmatpush3.bf16.msra.mxu0 %v2413_v23  ;;  %2049 = vmatprep.subr.bf16.mxu1 %v2414_v24  ;;  %v2435_v23 = vld [vmem:[#allocation5 + $0x190] sm:$0xff]  }
  0x77   : > { %2145 = vmatprep.subr.bf16.mxu0 %v2415_v28 }
  0x78   : > { %2042 = vmatmul.mubr.bf16.vlgmr.msra.gmra.mrb[0].mxu1 %v279_v29  ;;  %v2843_v29 = vld [vmem:[%s2754_s11 + $0x11] sm:$0xff] }
  0x79   : > { %2050 = vmatpush3.bf16.msra.mxu1 %v2414_v24  ;;  %2138 = vmatmul.mubr.bf16.vlgmr.msra.gmra.mrb[0].mxu0 %v836_v31  ;;  %v1851_v24 = vld [vmem:[%s2754_s11 + $0x181] sm:$0xff]  ;;  %v533_v36 = vpack.c.bf16 %v2843_v29, %v525_v27  ;;  %v1820_v27 = vld [vmem:[%s2754_s11 + $0x190] sm:$0xff] }
  0x7a   : > { %2146 = vmatpush3.bf16.msra.mxu0 %v2415_v28  ;;  %2051 = vmatprep.subr.bf16.mxu1 %v2416_v34  ;;  %v252_v28 = vpack.c.bf16 %v2835_v22, %v2832_v17  ;;  %v988_v31 = vpack.c.bf16 %v1852_v26, %v1851_v24  ;;  %v1819_v26 = vld [vmem:[%s2754_s11 + $0x180] sm:$0xff] }
  0x7b   : > { %2147 = vmatprep.subr.bf16.mxu0 %v2417_v37  ;;  %2045 = vmatprep.mubr.bf16.mxu1 %v280_v38  ;;  %v2438_v38 = vld [vmem:[#allocation5 + $0xa0] sm:$0xff]  }
  0x7c   : > { %2141 = vmatprep.mubr.bf16.mxu0 %v837_v40  ;;  %v2440_v40 = vld [vmem:[#allocation5 + $0xa8] sm:$0xff]  }
  0x7d   : > { %2052 = vmatpush3.bf16.msra.mxu1 %v2416_v34  ;;  %v2436_v34 = vld [vmem:[#allocation5 + $0x98] sm:$0xff]  }
  0x7e   : > { %2148 = vmatpush3.bf16.msra.mxu0 %v2417_v37  ;;  %2053 = vmatprep.subr.bf16.mxu1 %v2418_v39  ;;  %v1136_v37 = vpack.c.bf16 %v243_v2, %v2809_v49  ;;  %v2848_v49 = vld [vmem:[%s2754_s11 + $0x21] sm:$0xff] }
  0x7f   : > { %2149 = vmatprep.subr.bf16.mxu0 %v2419_v46  ;;  %v1437_v30 = vpack.c.bf16 %v2848_v49, %v2843_v29  ;;  %v1900_v29 = vld [vmem:[%s2754_s11 + $0x81] sm:$0xff] }
  0x80   : > { %2046 = vmatmul.mubr.bf16.gmra.mrb[4].mxu1 %v281_v48  ;;  %v2445_v48 = vld [vmem:[#allocation5 + $0x1b8] sm:$0xff]  }
  0x81   : > { %2054 = vmatpush3.bf16.msra.mxu1 %v2418_v39  ;;  %2142 = vmatmul.mubr.bf16.gmra.mrb[4].mxu0 %v838_v50  ;;  %v2439_v39 = vld [vmem:[#allocation5 + $0x1a0] sm:$0xff]   ;;  %v2851_v50 = vld [vmem:[%s2754_s11 + $0x31] sm:$0xff] }
  0x82   : > { %2150 = vmatpush3.bf16.msra.mxu0 %v2419_v46  ;;  %2055 = vmatprep.subr.bf16.mxu1 %v2420_v53  ;;  %v2443_v46 = vld [vmem:[#allocation5 + $0x1b0] sm:$0xff]  }
  0x83   : > { %2151 = vmatprep.subr.bf16.mxu0 %v2421_v54  ;;  %2065 = vmatprep.mubr.bf16.mxu1 %v249_v55  ;;  %v2859_v55 = vld [vmem:[%s2754_s11 + $0x51] sm:$0xff] }
  0x84   : > { %2161 = vmatprep.mubr.bf16.mxu0 %v985_v56  ;;  %v1137_v56 = vpack.c.bf16 %v2821_v7, %v2816_v3  ;;  %v1813_v3 = vld [vmem:[%s2754_s11 + $0x120] sm:$0xff]  ;;  %v2453_v7 = vld [vmem:[#allocation5 + $0x1d8] sm:$0xff]  }
  0x85   : > { %2056 = vmatpush3.bf16.msra.mxu1 %v2420_v53  ;;  %v534_v53 = vpack.c.bf16 %v2851_v50, %v2848_v49 }
  0x86   : > { %2152 = vmatpush3.bf16.msra.mxu0 %v2421_v54  ;;  %2057 = vmatprep.subr.bf16.mxu1 %v2422_v57  ;;  %v2856_v54 = vld [vmem:[%s2754_s11 + $0x41] sm:$0xff] }
  0x87   : > { %2153 = vmatprep.subr.bf16.mxu0 %v2423_v58 }
  0x89   : > { %2058 = vmatpush3.bf16.msra.mxu1 %v2422_v57  ;;  %v2448_v57 = vld [vmem:[#allocation5 + $0xc8] sm:$0xff]  }
  0x8a   : > { %2154 = vmatpush3.bf16.msra.mxu0 %v2423_v58  ;;  %2059 = vmatprep.subr.bf16.mxu1 %v2424_v59  ;;  %v2449_v58 = vld [vmem:[#allocation5 + $0x1c8] sm:$0xff]  }
  0x8b   : > { %2155 = vmatprep.subr.bf16.mxu0 %v2425_v60 }
  0x8d   : > { %2060 = vmatpush3.bf16.msra.mxu1 %v2424_v59  ;;  %v535_v59 = vpack.c.bf16 %v2859_v55, %v2856_v54 }
  0x8e   : > { %2156 = vmatpush3.bf16.msra.mxu0 %v2425_v60  ;;  %2061 = vmatprep.subr.bf16.mxu1 %v2426_v61  ;;  %v1138_v60 = vpack.c.bf16 %v2832_v17, %v2824_v8  ;;  %v684_v8 = vpack.c.bf16 %v1814_v4, %v1813_v3  ;;  %v2462_v17 = vld [vmem:[#allocation5 + $0x200] sm:$0xff]  }
  0x8f   : > { %2157 = vmatprep.subr.bf16.mxu0 %v2427_v62 }
  0x91   : > { %2062 = vmatpush3.bf16.msra.mxu1 %v2426_v61  ;;  %v2868_v61 = vld [vmem:[%s2754_s11 + $0x61] sm:$0xff] }
  0x92   : > { %2158 = vmatpush3.bf16.msra.mxu0 %v2427_v62  ;;  %2063 = vmatprep.subr.bf16.mxu1 %v2428_v63  ;;  %v2871_v62 = vld [vmem:[%s2754_s11 + $0x71] sm:$0xff] }
  0x93   : > { %2159 = vmatprep.subr.bf16.mxu0 %v2429_v0  ;;  %v536_v2 = vpack.c.bf16 %v2871_v62, %v2868_v61 }
  0x95   : > { %2064 = vmatpush3.bf16.msra.mxu1 %v2428_v63  ;;  %v2450_v63 = vld [vmem:[#allocation5 + $0xd0] sm:$0xff]  }
  0x96   : > { %2160 = vmatpush3.bf16.msra.mxu0 %v2429_v0  ;;  %2073 = vmatprep.subr.bf16.mxu1 %v2430_v1  ;;  %v1868_v0 = vld [vmem:[%s2754_s11 + $0x80] sm:$0xff] }
  0x97   : > { %2169 = vmatprep.subr.bf16.mxu0 %v2431_v6  ;;  %v1139_v5 = vpack.c.bf16 %v1868_v0, %v2835_v22  ;;  %v1818_v22 = vld [vmem:[%s2754_s11 + $0x170] sm:$0xff] }
  0x98   : > { %2066 = vmatmul.mubr.bf16.vlgmr.msra.gmra.mrb[0].mxu1 %v250_v9  ;;  %v2454_v9 = vld [vmem:[#allocation5 + $0xe0] sm:$0xff]  }
  0x99   : > { %2074 = vmatpush3.bf16.msra.mxu1 %v2430_v1  ;;  %2162 = vmatmul.mubr.bf16.vlgmr.msra.gmra.mrb[0].mxu0 %v986_v13  ;;  %v2451_v1 = vld [vmem:[#allocation5 + $0x1d0] sm:$0xff]   ;;  %v2457_v13 = vld [vmem:[#allocation5 + $0x1e8] sm:$0xff]  }
  0x9a   : > { %2170 = vmatpush3.bf16.msra.mxu0 %v2431_v6  ;;  %2075 = vmatprep.subr.bf16.mxu1 %v2432_v10  ;;  %v2452_v6 = vld [vmem:[#allocation5 + $0xd8] sm:$0xff]  }
  0x9b   : > { %2171 = vmatprep.subr.bf16.mxu0 %v2433_v15  ;;  %2069 = vmatprep.mubr.bf16.mxu1 %v251_v16  ;;  %v1816_v16 = vld [vmem:[%s2754_s11 + $0x150] sm:$0xff] }
  0x9c   : > { %2165 = vmatprep.mubr.bf16.mxu0 %v987_v21  ;;  %v1817_v21 = vld [vmem:[%s2754_s11 + $0x160] sm:$0xff] }
  0x9d   : > { %2076 = vmatpush3.bf16.msra.mxu1 %v2432_v10  ;;  %v2455_v10 = vld [vmem:[#allocation5 + $0x1e0] sm:$0xff]   ;;  %v686_v24 = vpack.c.bf16 %v1818_v22, %v1817_v21 }
  0x9e   : > { %2172 = vmatpush3.bf16.msra.mxu0 %v2433_v15  ;;  %2077 = vmatprep.subr.bf16.mxu1 %v2434_v19  ;;  %v2459_v15 = vld [vmem:[#allocation5 + $0x1f0] sm:$0xff]  }
  0x9f   : > { %2173 = vmatprep.subr.bf16.mxu0 %v2435_v23 }
  0xa0   : > { %2070 = vmatmul.mubr.bf16.gmra.mrb[4].mxu1 %v252_v28  ;;  %v1884_v28 = vld [vmem:[%s2754_s11 + $0x110] sm:$0xff] }
  0xa1   : > { %2078 = vmatpush3.bf16.msra.mxu1 %v2434_v19  ;;  %2166 = vmatmul.mubr.bf16.gmra.mrb[4].mxu0 %v988_v31  ;;  %v2464_v31 = vld [vmem:[#allocation5 + $0x210] sm:$0xff]  }
  0xa2   : > { %2174 = vmatpush3.bf16.msra.mxu0 %v2435_v23  ;;  %2079 = vmatprep.subr.bf16.mxu1 %v2436_v34  ;;  %v2463_v23 = vld [vmem:[#allocation5 + $0x208] sm:$0xff]  }
  0xa3   : > { %2175 = vmatprep.subr.bf16.mxu0 %v2437_v35  ;;  %2089 = vmatprep.mubr.bf16.mxu1 %v533_v36  ;;  %v1440_v36 = vpack.c.bf16 %v1900_v29, %v2871_v62 }
  0xa4   : > { %2185 = vmatprep.mubr.bf16.mxu0 %v1136_v37  ;;  %v1438_v37 = vpack.c.bf16 %v2856_v54, %v2851_v50 }
  0xa5   : > { %2080 = vmatpush3.bf16.msra.mxu1 %v2436_v34  ;;  %v687_v34 = vpack.c.bf16 %v1820_v27, %v1819_v26 }
  0xa6   : > { %2176 = vmatpush3.bf16.msra.mxu0 %v2437_v35  ;;  %2081 = vmatprep.subr.bf16.mxu1 %v2438_v38  ;;  %v1290_v35 = vpack.c.bf16 %v1884_v28, %v2799_v42  ;;  %v2468_v42 = vld [vmem:[#allocation5 + $0x230] sm:$0xff]  }
  0xa7   : > { %2177 = vmatprep.subr.bf16.mxu0 %v2439_v39 }
  0xa9   : > { %2082 = vmatpush3.bf16.msra.mxu1 %v2438_v38 }
  0xaa   : > { %2178 = vmatpush3.bf16.msra.mxu0 %v2439_v39  ;;  %2083 = vmatprep.subr.bf16.mxu1 %v2440_v40 }
  0xab   : > { %2179 = vmatprep.subr.bf16.mxu0 %v2441_v43 }
  0xad   : > { %2084 = vmatpush3.bf16.msra.mxu1 %v2440_v40 }
  0xae   : > { %2180 = vmatpush3.bf16.msra.mxu0 %v2441_v43  ;;  %2085 = vmatprep.subr.bf16.mxu1 %v2442_v45 }
  0xaf   : > { %2181 = vmatprep.subr.bf16.mxu0 %v2443_v46 }
  0xb1   : > { %2086 = vmatpush3.bf16.msra.mxu1 %v2442_v45 }
  0xb2   : > { %2182 = vmatpush3.bf16.msra.mxu0 %v2443_v46  ;;  %2087 = vmatprep.subr.bf16.mxu1 %v2444_v47 }
  0xb3   : > { %2183 = vmatprep.subr.bf16.mxu0 %v2445_v48 }
  0xb5   : > { %2088 = vmatpush3.bf16.msra.mxu1 %v2444_v47 }
  0xb6   : > { %2184 = vmatpush3.bf16.msra.mxu0 %v2445_v48  ;;  %2097 = vmatprep.subr.bf16.mxu1 %v2446_v51 }
  0xb7   : > { %2193 = vmatprep.subr.bf16.mxu0 %v2447_v52 }
  0xb8   : > { %2090 = vmatmul.mubr.bf16.vlgmr.msra.gmra.mrb[0].mxu1 %v534_v53 }
  0xb9   : > { %2098 = vmatpush3.bf16.msra.mxu1 %v2446_v51  ;;  %2186 = vmatmul.mubr.bf16.vlgmr.msra.gmra.mrb[0].mxu0 %v1137_v56 }
  0xba   : > { %2194 = vmatpush3.bf16.msra.mxu0 %v2447_v52  ;;  %2099 = vmatprep.subr.bf16.mxu1 %v2448_v57 }
  0xbb   : > { %2195 = vmatprep.subr.bf16.mxu0 %v2449_v58  ;;  %2093 = vmatprep.mubr.bf16.mxu1 %v535_v59 }
  0xbc   : > { %2189 = vmatprep.mubr.bf16.mxu0 %v1138_v60 }
  0xbd   : > { %2100 = vmatpush3.bf16.msra.mxu1 %v2448_v57 }
  0xbe   : > { %2196 = vmatpush3.bf16.msra.mxu0 %v2449_v58  ;;  %2101 = vmatprep.subr.bf16.mxu1 %v2450_v63 }
  0xbf   : > { %2197 = vmatprep.subr.bf16.mxu0 %v2451_v1 }
  0xc0   : > { %2094 = vmatmul.mubr.bf16.gmra.mrb[4].mxu1 %v536_v2 }
  0xc1   : > { %2102 = vmatpush3.bf16.msra.mxu1 %v2450_v63  ;;  %2190 = vmatmul.mubr.bf16.gmra.mrb[4].mxu0 %v1139_v5 }
  0xc2   : > { %2198 = vmatpush3.bf16.msra.mxu0 %v2451_v1  ;;  %2103 = vmatprep.subr.bf16.mxu1 %v2452_v6 }
  0xc3   : > { %2199 = vmatprep.subr.bf16.mxu0 %v2453_v7  ;;  %2113 = vmatprep.mubr.bf16.mxu1 %v684_v8 }
  0xc4   : > { %2209 = vmatprep.mubr.bf16.mxu0 %v1287_v20  ;;  %v1815_v20 = vld [vmem:[%s2754_s11 + $0x140] sm:$0xff] }
  0xc5   : > { %2104 = vmatpush3.bf16.msra.mxu1 %v2452_v6  ;;  %v685_v19 = vpack.c.bf16 %v1816_v16, %v1815_v20 }
  0xc6   : > { %2200 = vmatpush3.bf16.msra.mxu0 %v2453_v7  ;;  %2105 = vmatprep.subr.bf16.mxu1 %v2454_v9 }
  0xc7   : > { %2201 = vmatprep.subr.bf16.mxu0 %v2455_v10 }
  0xc9   : > { %2106 = vmatpush3.bf16.msra.mxu1 %v2454_v9 }
  0xca   : > { %2202 = vmatpush3.bf16.msra.mxu0 %v2455_v10  ;;  %2107 = vmatprep.subr.bf16.mxu1 %v2456_v11 }
  0xcb   : > { %2203 = vmatprep.subr.bf16.mxu0 %v2457_v13 }
  0xcd   : > { %2108 = vmatpush3.bf16.msra.mxu1 %v2456_v11 }
  0xce   : > { %2204 = vmatpush3.bf16.msra.mxu0 %v2457_v13  ;;  %2109 = vmatprep.subr.bf16.mxu1 %v2458_v14 }
  0xcf   : > { %2205 = vmatprep.subr.bf16.mxu0 %v2459_v15 }
  0xd1   : > { %2110 = vmatpush3.bf16.msra.mxu1 %v2458_v14 }
  0xd2   : > { %2206 = vmatpush3.bf16.msra.mxu0 %v2459_v15  ;;  %2111 = vmatprep.subr.bf16.mxu1 %v2460_v12 }
  0xd3   : > { %2207 = vmatprep.subr.bf16.mxu0 %v2461_v18 }
  0xd5   : > { %2112 = vmatpush3.bf16.msra.mxu1 %v2460_v12 }
  0xd6   : > { %2208 = vmatpush3.bf16.msra.mxu0 %v2461_v18  ;;  %2241 = vmatprep.subr.bf16.mxu1 %v2462_v17 }
  0xd7   : > { %2217 = vmatprep.subr.bf16.mxu0 %v2462_v17 }
  0xd8   : > { %2114 = vmatmul.mubr.bf16.vlgmr.msra.gmra.mrb[0].mxu1 %v685_v19 }
  0xd9   : > { %2210 = vmatmul.mubr.bf16.vlgmr.msra.gmra.mrb[0].mxu0 %v1288_v33  ;;  %2249 = vmatpush3.bf16.msra.mxu1 %v2462_v17  ;;  %v1439_v33 = vpack.c.bf16 %v2868_v61, %v2859_v55 }
  0xda   : > { %2218 = vmatpush3.bf16.msra.mxu0 %v2462_v17  ;;  %2242 = vmatprep.subr.bf16.mxu1 %v2463_v23 }
  0xdb   : > { %2219 = vmatprep.subr.bf16.mxu0 %v2463_v23  ;;  %2117 = vmatprep.mubr.bf16.mxu1 %v686_v24 }
  0xdc   : > { %2213 = vmatprep.mubr.bf16.mxu0 %v1289_v44  ;;  %v2469_v44 = vld [vmem:[#allocation5 + $0x238] sm:$0xff]  }
  0xdd   : > { %2250 = vmatpush3.bf16.msra.mxu1 %v2463_v23 }
  0xde   : > { %2220 = vmatpush3.bf16.msra.mxu0 %v2463_v23  ;;  %2243 = vmatprep.subr.bf16.mxu1 %v2464_v31 }
  0xdf   : > { %2221 = vmatprep.subr.bf16.mxu0 %v2464_v31 }
  0xe0   : > { %2118 = vmatmul.mubr.bf16.gmra.mrb[4].mxu1 %v687_v34 }
  0xe1   : > { %2214 = vmatmul.mubr.bf16.gmra.mrb[4].mxu0 %v1290_v35  ;;  %2251 = vmatpush3.bf16.msra.mxu1 %v2464_v31 }
  0xe2   : > { %2222 = vmatpush3.bf16.msra.mxu0 %v2464_v31  ;;  %2244 = vmatprep.subr.bf16.mxu1 %v2465_v25 }
  0xe3   : > { %2223 = vmatprep.subr.bf16.mxu0 %v2465_v25  ;;  %2233 = vmatprep.mubr.bf16.mxu0 %v1437_v30 }
  0xe4   : > { %2237 = vmatprep.mubr.bf16.mxu1 %v1439_v33 }
  0xe5   : > { %2252 = vmatpush3.bf16.msra.mxu1 %v2465_v25 }
  0xe6   : > { %2224 = vmatpush3.bf16.msra.mxu0 %v2465_v25  ;;  %2245 = vmatprep.subr.bf16.mxu1 %v2466_v32 }
  0xe7   : > { %2225 = vmatprep.subr.bf16.mxu0 %v2466_v32 }
  0xe9   : > { %2253 = vmatpush3.bf16.msra.mxu1 %v2466_v32 }
  0xea   : > { %2226 = vmatpush3.bf16.msra.mxu0 %v2466_v32  ;;  %2246 = vmatprep.subr.bf16.mxu1 %v2467_v41 }
  0xeb   : > { %2227 = vmatprep.subr.bf16.mxu0 %v2467_v41 }
  0xed   : > { %2254 = vmatpush3.bf16.msra.mxu1 %v2467_v41 }
  0xee   : > { %2228 = vmatpush3.bf16.msra.mxu0 %v2467_v41  ;;  %2247 = vmatprep.subr.bf16.mxu1 %v2468_v42 }
  0xef   : > { %2229 = vmatprep.subr.bf16.mxu0 %v2468_v42 }
  0xf1   : > { %2255 = vmatpush3.bf16.msra.mxu1 %v2468_v42 }
  0xf2   : > { %2230 = vmatpush3.bf16.msra.mxu0 %v2468_v42  ;;  %2248 = vmatprep.subr.bf16.mxu1 %v2469_v44 }
  0xf3   : > { %2231 = vmatprep.subr.bf16.mxu0 %v2469_v44 }
  0xf5   : > { %2256 = vmatpush3.bf16.msra.mxu1 %v2469_v44 }
  0xf6   : > { %2232 = vmatpush3.bf16.msra.mxu0 %v2469_v44 }
  0xf8   : > { %2238 = vmatmul.mubr.bf16.vlgmr.msra.gmra.mrb[8].mxu1 %v1440_v36 }
  0xf9   : > { %2234 = vmatmul.mubr.bf16.vlgmr.msra.gmra.mrb[0].mxu0 %v1438_v37 }
 0x1ab   : > { %v2115_v38 = vpop.f32.mrb[0].mxu1 }
 0x1ac   : > { %v787_v39 = vpop.f32.mrb[1].mxu1 }
 0x1ad   : > { %v2116_v40 = vpop.f32.mrb[2].mxu1 }
 0x1ae   : > { %v790_v43 = vpop.f32.mrb[3].mxu1 }
 0x1b3   : > { %v2119_v45 = vpop.f32.mrb[4].mxu1 }
 0x1b4   : > { %v2215_v46 = vpop.f32.mrb[4].mxu0  ;;  %v803_v47 = vpop.f32.mrb[5].mxu1 }
 0x1b5   : > { %v2261_v48 = vadd.f32 %v2215_v46, %v2119_v45  ;;  %v1406_v49 = vpop.f32.mrb[5].mxu0  ;;  %v2120_v51 = vpop.f32.mrb[6].mxu1 }
 0x1b6   : > { %v2263_v52 = vadd.f32 %v1406_v49, %v803_v47  ;;  %v2216_v53 = vpop.f32.mrb[6].mxu0  ;;  %v806_v55 = vpop.f32.mrb[7].mxu1 }
 0x1b7   : > { %v2265_v56 = vadd.f32 %v2216_v53, %v2120_v51  ;;  %v1409_v50 = vpop.f32.mrb[7].mxu0 }
 0x1b8   : > { %v2267_v54 = vadd.f32 %v1409_v50, %v806_v55 }
 0x1cb   : > { %v2239_v57 = vpop.f32.mrb[8].mxu1 }
 0x1cc   : > { %v2235_v58 = vpop.f32.mrb[0].mxu0  ;;  %v2905_v59 = vadd.f32 %v2261_v48, %v2239_v57  ;;  %v1556_v60 = vpop.f32.mrb[9].mxu1 }
 0x1cd   : > { %v2257_v61 = vadd.f32 %v2235_v58, %v2115_v38  ;;  %v1540_v62 = vpop.f32.mrb[1].mxu0  ;;  %v2264_v63 = vadd.f32 %v2263_v52, %v1556_v60  ;;  %v2240_v0 = vpop.f32.mrb[10].mxu1 }
 0x1ce   : > { %1585 = vst [vmem:[%s232_s23 + $0x30] sm:$0xff] %v2905_v59  ;;  %v2258_v1 = vadd.f32 %v1540_v62, %v787_v39  ;;  %v2236_v2 = vpop.f32.mrb[2].mxu0  ;;  %v2266_v3 = vadd.f32 %v2265_v56, %v2240_v0  ;;  %v1559_v4 = vpop.f32.mrb[11].mxu1 }
 0x1cf   : > { %1581 = vst [vmem:[%s232_s23 + $0x10] sm:$0xff] %v2257_v61  ;;  %1583 = vst [vmem:[%s232_s23 + $0x20] sm:$0xff] %v2264_v63  ;;  %v2259_v5 = vadd.f32 %v2236_v2, %v2116_v40  ;;  %v1543_v6 = vpop.f32.mrb[3].mxu0  ;;  %v2268_v7 = vadd.f32 %v2267_v54, %v1559_v4 }
 0x1d0   : > { %1579 = vst [vmem:[%s232_s23] sm:$0xff] %v2258_v1  ;;  %1586 = vst [vmem:[%s232_s23 + $0x38] sm:$0xff] %v2266_v3  ;;  %v2260_v8 = vadd.f32 %v1543_v6, %v790_v43  ;;  %v1601_v9 = vmul.f32 %v2258_v1, %v2258_v1 }
 0x1d1   : > { %1582 = vst [vmem:[%s232_s23 + $0x18] sm:$0xff] %v2259_v5  ;;  %1584 = vst [vmem:[%s232_s23 + $0x28] sm:$0xff] %v2268_v7 }
 0x1d2   : > { %1580 = vst [vmem:[%s232_s23 + $0x8] sm:$0xff] %v2260_v8  ;;  %v1587_v10 = vadd.f32 %v2260_v8, %v2258_v1  ;;  %v1602_v11 = vmul.f32 %v2260_v8, %v2260_v8 }
 0x1d3   : > { %2511 = shalt.err (!%p2508_p1)
}
 0x1d4   : > { %s2512_s29 = scalar_lea.hbm %s2914_s10, 1024  ;;  %s2516_s9 = scalar_lea.hbm %s2994_s2, 2048 }
 0x1d5   : > { %p2513_p4 = scmp.ne.s32.totalorder %s2914_s10, %s2512_s29  ;;  %p2517_p11 = scmp.lt.u32.totalorder %s2914_s10, %s2994_s2 }
 0x1d6   : > { %p2518_p12 = scmp.lt.u32.totalorder %s2516_s9, %s2512_s29  ;;  %p2520_p3 = scmp.lt.u32.totalorder %s2512_s29, %s2914_s10 }
 0x1d7   : > { %p2514_p5 = pnand %p2513_p4, %p3012_p2 }
 0x1d8   : > { %p2519_p13 = por %p2518_p12, %p2517_p11 }
 0x1d9   : > { %p2515_p6 = pneg %p2514_p5 }
 0x1da   : > { %p2521_p7 = por %p2520_p3, %p2519_p13 }
 0x1dc   : > { %p2522_p8 = pnand %p2521_p7, %p2515_p6 }
 0x1de   : > { %2525 = shalt.err (!%p2522_p8)
}
 0x1df   : > { %s2612_s23 = smov 128   ;;  %s2613_s27 = smov 8   ;;  %v1603_v13 = vmul.f32 %v2257_v61, %v2257_v61  ;;  %v1588_v14 = vadd.f32 %v2257_v61, %v1587_v10  ;;  %v1609_v15 = vadd.f32 %v1602_v11, %v1601_v9  ;;  %v1604_v12 = vmul.f32 %v2259_v5, %v2259_v5 }
 0x1e0   : > { %2337 = dma.vmem_to_hbm [thread:$0]  (%p3012_p2), %s2908_s26, 1024, %s2914_s10, %s1624_s17, %s2612_s23, %s2612_s23, %s2613_s27   ;;  %v1605_v16 = vmul.f32 %v2264_v63, %v2264_v63  ;;  %v1606_v22 = vmul.f32 %v2268_v7, %v2268_v7  ;;  %v1607_v24 = vmul.f32 %v2905_v59, %v2905_v59  ;;  %v1608_v28 = vmul.f32 %v2266_v3, %v2266_v3 }
 0x1e1   : > { %v1610_v18 = vadd.f32 %v1609_v15, %v1603_v13  ;;  %v1589_v20 = vadd.f32 %v2259_v5, %v1588_v14  ;;  %s1780_s26 = sshll.u32 %s2750_s5, 1  ;;  %s1913_s7 = sshll.u32 %s2656_s16, 5 }
 0x1e2   : > { %s239_s8 = scalar_lea.vmem [#allocation8], %s1780_s26  ;;  %s2948_s20 = scalar_lea.hbm %s2995_s3, %s1913_s7 }
 0x1e3   : > { %v1590_v17 = vadd.f32 %v2264_v63, %v1589_v20  ;;  %v1611_v19 = vadd.f32 %v1610_v18, %v1604_v12  ;;  %s1658_s10 = sshll.u32 %s239_s8, 4  ;;  %s1629_s30 = scalar_lea.sflag [#allocation9], %s2750_s5  ;;  %s2950_s10 = int_to_ptr.vmem [resolvable:$true] %s1658_s10 }
 0x1e4   : > { %s2526_s4 = scalar_lea.vmem %s2950_s10, 32  ;;  %s2614_s16 = smov [#allocation8]  }
 0x1e5   : > { %v1591_v21 = vadd.f32 %v2268_v7, %v1590_v17  ;;  %v1612_v23 = vadd.f32 %v1611_v19, %v1605_v16  ;;  %p2527_p9 = scmp.ne.s32.totalorder %s2950_s10, %s2526_s4  ;;  %s2530_s29 = sshll.u32 %s2614_s16, 4  ;;  %s2531_s29 = int_to_ptr.vmem [resolvable:$false] %s2530_s29 }
 0x1e6   : > { %s2532_s28 = scalar_lea.vmem %s2531_s29, 64  ;;  %p2533_p4 = scmp.lt.s32.totalorder %s2950_s10, %s2531_s29 }
 0x1e7   : > { %v1592_v26 = vadd.f32 %v2905_v59, %v1591_v21  ;;  %v1613_v27 = vadd.f32 %v1612_v23, %v1606_v22  ;;  %p2528_p10 = pnand %p2527_p9, %p3012_p2  ;;  %p2534_p5 = scmp.lt.s32.totalorder %s2532_s28, %s2526_s4 }
 0x1e9   : > { %v1593_v31 = vadd.f32 %v2266_v3, %v1592_v26  ;;  %v1614_v34 = vadd.f32 %v1613_v27, %v1607_v24  ;;  %p2529_p1 = pneg %p2528_p10  ;;  %p2535_p6 = por %p2534_p5, %p2533_p4 }
 0x1eb   : > { %v1594_v35 = vrot.slane %v1593_v31, 4  ;;  %v1615_v25 = vadd.f32 %v1614_v34, %v1608_v28  ;;  %p2536_p11 = pnand %p2535_p6, %p2529_p1 }
 0x1ed   : > { %v1595_v30 = vadd.f32 %v1594_v35, %v1593_v31  ;;  %v1616_v33 = vrot.slane %v1615_v25, 4 }
 0x1ef   : > { %v1596_v32 = vrot.slane %v1595_v30, 2  ;;  %v1617_v41 = vadd.f32 %v1616_v33, %v1615_v25 }
 0x1f1   : > { %v1597_v42 = vadd.f32 %v1596_v32, %v1595_v30  ;;  %v1618_v44 = vrot.slane %v1617_v41, 2 }
 0x1f3   : > { %v1598_v29 = vrot.slane %v1597_v42, 1  ;;  %v1619_v36 = vadd.f32 %v1618_v44, %v1617_v41 }
 0x1f5   : > { %v1599_v37 = vadd.f32 %v1598_v29, %v1597_v42  ;;  %v1620_v38 = vrot.slane %v1619_v36, 1 }
 0x1f7   : > { %1600 = vst [vmem:[%s239_s8] sm:$0x1] %v1599_v37  ;;  %v1621_v39 = vadd.f32 %v1620_v38, %v1619_v36 }
 0x1f9   : > { %1622 = vst [vmem:[%s239_s8 + $0x1] sm:$0x1] %v1621_v39 }
 0x1fa   : > { %2539 = shalt.err (!%p2536_p11)
}
 0x1fb   : > { %s2540_s5 = scalar_lea.hbm %s2948_s20, 32  ;;  %s2544_s11 = scalar_lea.hbm %s2995_s3, 64 }
 0x1fc   : > { %p2541_p12 = scmp.ne.s32.totalorder %s2948_s20, %s2540_s5  ;;  %p2545_p7 = scmp.lt.u32.totalorder %s2948_s20, %s2995_s3 }
 0x1fd   : > { %p2546_p8 = scmp.lt.u32.totalorder %s2544_s11, %s2540_s5  ;;  %p2548_p10 = scmp.lt.u32.totalorder %s2540_s5, %s2948_s20 }
 0x1fe   : > { %p2542_p13 = pnand %p2541_p12, %p3012_p2 }
 0x1ff   : > { %p2547_p9 = por %p2546_p8, %p2545_p7 }
 0x200   : > { %p2543_p3 = pneg %p2542_p13 }
 0x201   : > { %p2549_p1 = por %p2548_p10, %p2547_p9 }
 0x203   : > { %p2550_p4 = pnand %p2549_p1, %p2543_p3 }
 0x205   : > { %2553 = shalt.err (!%p2550_p4)
}
 0x206   : > { %2338 = dma.vmem_to_hbm [thread:$0]  (%p3012_p2), %s2950_s10, 32, %s2948_s20, %s1629_s30  }
 0x207 PF: > { %s1670_s27 = sand.u32 1, %s2588_s12   ;;  %p3013_p5 = scmp.ne.s32.totalorder %s3004_s25, 0 }
 0x208   : > { %s1671_s26 = scalar_lea.sflag [#allocation4], %s1670_s27 }
 0x209   : > { %p2346_p6 = pnand %p1773_p0, %p3013_p5 }
 0x20b   : > { %2579 = dma.done.wait (!%p2346_p6), %s1671_s26, 1024  }
 0x20c   : > { %2581 = vsyncadd (!%p2346_p6), %s1671_s26, 4294966272  ;;  %s1680_s7 = scalar_lea.sflag [#allocation9], %s1670_s27 }
 0x20d   : > { %2583 = dma.done.wait (!%p2346_p6), %s1680_s7, 32  }
 0x20e   : > { %2585 = vsyncadd (!%p2346_p6), %s1680_s7, 4294967264  ;;  %p21_p2 = scmp.ge.s32.totalorder %s2660_s18, 4   ;;  %s3014_s12 = smov %s2592_s13 }
 0x20f   : > { %s3015_s13 = smov %s2596_s14  ;;  %s3016_s14 = smov %s2672_s21 }
 0x210   : > { %s3017_s15 = smov %s2660_s18  ;;  %23 = sbr.rel (!%p21_p2) target bundleno = 8 (0x8), region = 112 }
 0x217   :  { %1685 = vsyncpa [#allocation3], 1 }
 0x218   :  { %1687 = vsyncpa [#allocation3 + $0x1], 1 }
 0x219   :  { %1688 = vsyncpa [#allocation6], 1 }
 0x21a   :  { %1689 = vsyncpa [#allocation4], 1 }
 0x21b   :  { %1691 = vsyncpa [#allocation4 + $0x1], 1 }
 0x21c   :  { %1692 = vsyncpa [#allocation9], 1 }
 0x21d   :  { %1694 = vsyncpa [#allocation9 + $0x1], 1 }

// kernel: bottleneck_forward.8
= control target key start
LH: loop header
LB: loop body
LE: loop exit
PB: predicated region body
PF: predicated region fallthrough
CT: control target
= control target key end

     0   :  { %15 = vsyncpa [#allocation3], 0  ;;  %s1393_s0 = inlined_call_operand.hbm [shape: f32[128,128], index: 0, kind: input, shape index: {}]   ;;  %s1394_s1 = inlined_call_operand.hbm [shape: f32[1,128], index: 1, kind: input, shape index: {}]   ;;  %s1395_s2 = inlined_call_operand.hbm [shape: f32[1,128], index: 2, kind: input, shape index: {}]   ;;  %s1396_s3 = inlined_call_operand.hbm [shape: bf16[128,128], index: 3, kind: input, shape index: {}]   ;;  %s1397_s4 = inlined_call_operand.hbm [shape: f32[128,128], index: 4, kind: input, shape index: {}]   ;;  %s1398_s5 = inlined_call_operand.hbm [shape: bf16[128,128], index: 5, kind: input, shape index: {}]   ;;  %s1399_s6 = inlined_call_operand.hbm [shape: f32[128,128], index: 6, kind: output, shape index: {0}]   ;;  %s1400_s7 = inlined_call_operand.hbm [shape: f32[128,128], index: 7, kind: output, shape index: {1}]   ;;  %s1401_s8 = inlined_call_operand.hbm [shape: f32[1,2,128], index: 8, kind: output, shape index: {2}]   ;;  %s1402_s9 = inlined_call_operand.hbm [shape: f32[1,2,128], index: 9, kind: output, shape index: {3}]  }
   0x1   :  { %16 = vsyncpa [#allocation6], 0 }
   0x2   :  { %17 = vsyncpa [#allocation9], 0 }
   0x3   :  { %18 = vsyncpa [#allocation12], 0 }
   0x4   :  { %19 = vsyncpa [#allocation4], 0 }
   0x5   :  { %20 = vsyncpa [#allocation15], 0 }
   0x6   :  { %21 = vsyncpa [#allocation18], 0  ;;  %s1134_s30 = smov [#allocation5]   ;;  %s1135_s11 = smov [#allocation8]  }
   0x7   :  { %s40_s10 = sshll.u32 %s1134_s30, 4  ;;  %s59_s12 = sshll.u32 %s1135_s11, 4  ;;  %s41_s10 = int_to_ptr.vmem [resolvable:$true] %s40_s10  ;;  %s1198_s12 = int_to_ptr.vmem [resolvable:$true] %s59_s12 }
   0x8   :  { %s900_s15 = scalar_lea.hbm %s1394_s1, 16 }
   0x9   :  { %p901_p0 = scmp.ne.s32.totalorder %s1394_s1, %s900_s15  ;;  %p904_p1 = scmp.lt.u32.totalorder %s900_s15, %s1394_s1 }
   0xb   :  { %p906_p2 = pnand %p904_p1, %p901_p0 }
   0xd   :  { %909 = shalt.err (!%p906_p2)
}
   0xe   :  { %s910_s20 = scalar_lea.vmem %s41_s10, 16  ;;  %s914_s21 = scalar_lea.vmem %s41_s10, 32 }
   0xf   :  { %p911_p3 = scmp.ne.s32.totalorder %s41_s10, %s910_s20  ;;  %p915_p4 = scmp.lt.s32.totalorder %s41_s10, %s41_s10 }
  0x10   :  { %p916_p5 = scmp.lt.s32.totalorder %s914_s21, %s910_s20 }
  0x12   :  { %p917_p6 = por %p916_p5, %p915_p4 }
  0x14   :  { %p918_p7 = pnand %p917_p6, %p911_p3 }
  0x16   :  { %921 = shalt.err (!%p918_p7)
}
  0x17   :  { %43 = dma.hbm_to_vmem [thread:$0]  %s1394_s1, 16, %s41_s10, [#allocation6]  }
  0x18   :  { %s922_s26 = scalar_lea.hbm %s1396_s3, 1024 }
  0x19   :  { %p923_p8 = scmp.ne.s32.totalorder %s1396_s3, %s922_s26  ;;  %p926_p9 = scmp.lt.u32.totalorder %s922_s26, %s1396_s3 }
  0x1b   :  { %p928_p10 = pnand %p926_p9, %p923_p8 }
  0x1d   :  { %931 = shalt.err (!%p928_p10)
}
  0x1e   :  { %s932_s11 = scalar_lea.vmem %s1198_s12, 1024  ;;  %p937_p12 = scmp.lt.s32.totalorder %s1198_s12, %s1198_s12 }
  0x1f   :  { %p933_p11 = scmp.ne.s32.totalorder %s1198_s12, %s932_s11  ;;  %p938_p13 = scmp.lt.s32.totalorder %s932_s11, %s932_s11 }
  0x21   :  { %p939_p0 = por %p938_p13, %p937_p12 }
  0x23   :  { %p940_p1 = pnand %p939_p0, %p933_p11 }
  0x25   :  { %943 = shalt.err (!%p940_p1)
}
  0x26   :  { %s1136_s1 = smov 64   ;;  %s1137_s10 = smov 4  }
  0x27   :  { %65 = dma.hbm_to_vmem [thread:$0]  %s1396_s3, 1024, %s1198_s12, [#allocation9], %s1136_s1, %s1136_s1, %s1137_s10  }
  0x28   :  { %s1138_s15 = smov [#allocation2]   ;;  %s944_s19 = scalar_lea.hbm %s1393_s0, 2048 }
  0x29   :  { %s27_s16 = sshll.u32 %s1138_s15, 4  ;;  %p945_p2 = scmp.ne.s32.totalorder %s1393_s0, %s944_s19  ;;  %s28_s16 = int_to_ptr.vmem [resolvable:$true] %s27_s16 }
  0x2a   :  { %p948_p3 = scmp.lt.u32.totalorder %s944_s19, %s1393_s0 }
  0x2c   :  { %p950_p4 = pnand %p948_p3, %p945_p2 }
  0x2e   :  { %953 = shalt.err (!%p950_p4)
}
  0x2f   :  { %s954_s24 = scalar_lea.vmem %s28_s16, 2048  ;;  %p959_p6 = scmp.lt.s32.totalorder %s28_s16, %s28_s16 }
  0x30   :  { %p955_p5 = scmp.ne.s32.totalorder %s28_s16, %s954_s24  ;;  %p960_p7 = scmp.lt.s32.totalorder %s954_s24, %s954_s24 }
  0x32   :  { %p961_p8 = por %p960_p7, %p959_p6 }
  0x34   :  { %p962_p9 = pnand %p961_p8, %p955_p5 }
  0x36   :  { %965 = shalt.err (!%p962_p9)
}
  0x37   :  { %s1139_s3 = smov 128   ;;  %s1140_s12 = smov 8  }
  0x38   :  { %33 = dma.hbm_to_vmem [thread:$0]  %s1393_s0, 2048, %s28_s16, [#allocation3], %s1139_s3, %s1139_s3, %s1140_s12  }
  0x39   :  { %s1141_s27 = smov [#allocation7]   ;;  %s1142_s29 = smov [#allocation10]  }
  0x3a   :  { %s50_s28 = sshll.u32 %s1141_s27, 4  ;;  %s71_s30 = sshll.u32 %s1142_s29, 4  ;;  %s51_s28 = int_to_ptr.vmem [resolvable:$true] %s50_s28  ;;  %s72_s30 = int_to_ptr.vmem [resolvable:$true] %s71_s30 }
  0x3b   :  { %s966_s14 = scalar_lea.hbm %s1395_s2, 16 }
  0x3c   :  { %p967_p10 = scmp.ne.s32.totalorder %s1395_s2, %s966_s14  ;;  %p970_p11 = scmp.lt.u32.totalorder %s966_s14, %s1395_s2 }
  0x3e   :  { %p972_p12 = pnand %p970_p11, %p967_p10 }
  0x40   :  { %975 = shalt.err (!%p972_p12)
}
  0x41   :  { %s976_s0 = scalar_lea.vmem %s51_s28, 16  ;;  %s980_s16 = scalar_lea.vmem %s51_s28, 32 }
  0x42   :  { %p977_p13 = scmp.ne.s32.totalorder %s51_s28, %s976_s0  ;;  %p981_p0 = scmp.lt.s32.totalorder %s51_s28, %s51_s28 }
  0x43   :  { %p982_p1 = scmp.lt.s32.totalorder %s980_s16, %s976_s0 }
  0x45   :  { %p983_p2 = por %p982_p1, %p981_p0 }
  0x47   :  { %p984_p3 = pnand %p983_p2, %p977_p13 }
  0x49   :  { %987 = shalt.err (!%p984_p3)
}
  0x4a   :  { %53 = dma.hbm_to_vmem [thread:$0]  %s1395_s2, 16, %s51_s28, [#allocation6]  }
  0x4b   :  { %s988_s24 = scalar_lea.hbm %s1397_s4, 2048 }
  0x4c   :  { %p989_p4 = scmp.ne.s32.totalorder %s1397_s4, %s988_s24  ;;  %p992_p5 = scmp.lt.u32.totalorder %s988_s24, %s1397_s4 }
  0x4e   :  { %p994_p6 = pnand %p992_p5, %p989_p4 }
  0x50   :  { %997 = shalt.err (!%p994_p6)
}
  0x51   :  { %s998_s11 = scalar_lea.vmem %s72_s30, 2048  ;;  %p1003_p8 = scmp.lt.s32.totalorder %s72_s30, %s72_s30 }
  0x52   :  { %p999_p7 = scmp.ne.s32.totalorder %s72_s30, %s998_s11  ;;  %p1004_p9 = scmp.lt.s32.totalorder %s998_s11, %s998_s11 }
  0x54   :  { %p1005_p10 = por %p1004_p9, %p1003_p8 }
  0x56   :  { %p1006_p11 = pnand %p1005_p10, %p999_p7 }
  0x58   :  { %1009 = shalt.err (!%p1006_p11)
}
  0x59   :  { %77 = dma.hbm_to_vmem [thread:$0]  %s1397_s4, 2048, %s72_s30, [#allocation9], %s1139_s3, %s1139_s3, %s1140_s12  }
  0x5a   :  { %s1143_s13 = smov [#allocation11]   ;;  %s1010_s18 = scalar_lea.hbm %s1398_s5, 1024 }
  0x5b   :  { %s83_s14 = sshll.u32 %s1143_s13, 4  ;;  %p1011_p12 = scmp.ne.s32.totalorder %s1398_s5, %s1010_s18  ;;  %s84_s14 = int_to_ptr.vmem [resolvable:$true] %s83_s14 }
  0x5c   :  { %p1014_p13 = scmp.lt.u32.totalorder %s1010_s18, %s1398_s5 }
  0x5e   :  { %p1016_p0 = pnand %p1014_p13, %p1011_p12 }
  0x60   :  { %1019 = shalt.err (!%p1016_p0)
}
  0x61   :  { %s1020_s21 = scalar_lea.vmem %s84_s14, 1024  ;;  %p1025_p2 = scmp.lt.s32.totalorder %s84_s14, %s84_s14 }
  0x62   :  { %p1021_p1 = scmp.ne.s32.totalorder %s84_s14, %s1020_s21  ;;  %p1026_p3 = scmp.lt.s32.totalorder %s1020_s21, %s1020_s21 }
  0x64   :  { %p1027_p4 = por %p1026_p3, %p1025_p2 }
  0x66   :  { %p1028_p5 = pnand %p1027_p4, %p1021_p1 }
  0x68   :  { %1031 = shalt.err (!%p1028_p5)
}
  0x69   :  { %89 = dma.hbm_to_vmem [thread:$0]  %s1398_s5, 1024, %s84_s14, [#allocation12], %s1136_s1, %s1136_s1, %s1137_s10  }
  0x6a   :  { %1120 = dma.done.wait [#allocation3], 2048  }
  0x6b   :  { %1121 = vsyncadd [#allocation3], 4294965248 }
  0x6c   :  { %1122 = dma.done.wait [#allocation6], 32  }
  0x6d   :  { %1123 = vsyncadd [#allocation6], 4294967264 }
  0x6e   :  { %1124 = dma.done.wait [#allocation9], 3072  }
  0x6f   :  { %1125 = vsyncadd [#allocation9], 4294964224 }
  0x70   :  { %1126 = dma.done.wait [#allocation12], 1024  }
  0x71   :  { %1127 = vsyncadd [#allocation12], 4294966272  ;;  %v884_v0 = vld [vmem:[#allocation8] sm:$0xff]   ;;  %v886_v2 = vld [vmem:[#allocation8 + $0x8] sm:$0xff]   ;;  %s1144_s5 = smov [#allocation13]   ;;  %s1145_s10 = smov [#allocation14]  }
  0x72   :  { %v885_v1 = vld [vmem:[#allocation11] sm:$0xff]   ;;  %806 = vmatprep.subr.bf16.mxu0 %v884_v0  ;;  %v887_v3 = vld [vmem:[#allocation11 + $0x8] sm:$0xff]   ;;  %v888_v4 = vld [vmem:[#allocation8 + $0x10] sm:$0xff]   ;;  %s698_s1 = sshll.u32 %s1144_s5, 4  ;;  %s710_s22 = sshll.u32 %s1145_s10, 4  ;;  %s1325_s1 = int_to_ptr.vmem [resolvable:$true] %s698_s1  ;;  %s1327_s22 = int_to_ptr.vmem [resolvable:$true] %s710_s22 }
  0x73   :  { %838 = vmatprep.subr.bf16.mxu1 %v885_v1  ;;  %807 = vmatpush3.bf16.msra.mxu0 %v884_v0  ;;  %v889_v5 = vld [vmem:[#allocation11 + $0x10] sm:$0xff]   ;;  %v890_v6 = vld [vmem:[#allocation8 + $0x18] sm:$0xff]   ;;  %v892_v8 = vld [vmem:[#allocation8 + $0x20] sm:$0xff]   ;;  %s1032_s23 = scalar_lea.vmem %s1325_s1, 2048  ;;  %p1037_p7 = scmp.lt.s32.totalorder %s1325_s1, %s1325_s1 }
  0x74   :  { %839 = vmatpush3.bf16.msra.mxu1 %v885_v1  ;;  %808 = vmatprep.subr.bf16.mxu0 %v886_v2  ;;  %v891_v7 = vld [vmem:[#allocation11 + $0x18] sm:$0xff]   ;;  %v893_v9 = vld [vmem:[#allocation11 + $0x20] sm:$0xff]   ;;  %v894_v10 = vld [vmem:[#allocation8 + $0x28] sm:$0xff]   ;;  %p1033_p6 = scmp.ne.s32.totalorder %s1325_s1, %s1032_s23  ;;  %p1038_p8 = scmp.lt.s32.totalorder %s1032_s23, %s1032_s23 }
  0x75   :  { %840 = vmatprep.subr.bf16.mxu1 %v887_v3  ;;  %v895_v11 = vld [vmem:[#allocation11 + $0x28] sm:$0xff]   ;;  %v109_v12 = vld [vmem:[#allocation2] sm:$0xff]  ;;  %v112_v22 = vld [vmem:[#allocation2 + $0x18] sm:$0xff] }
  0x76   :  { %v110_v13 = vld [vmem:[#allocation2 + $0x8] sm:$0xff]  ;;  %v1289_v14 = vld [vmem:[#allocation5] ss:$0 sm:$0xff]  ;;  %v1293_v17 = vld [vmem:[#allocation7] ss:$0 sm:$0xff]  ;;  %p1039_p9 = por %p1038_p8, %p1037_p7 }
  0x77   :  { %809 = vmatpush3.bf16.msra.mxu0 %v886_v2  ;;  %v132_v15 = vmul.f32 %v1289_v14, %v109_v12  ;;  %v133_v16 = vmul.f32 %v1289_v14, %v110_v13  ;;  %v356_v18 = vld [vmem:[#allocation10] sm:$0xff]  ;;  %v357_v19 = vld [vmem:[#allocation10 + $0x8] sm:$0xff]  ;;  %v135_v26 = vmul.f32 %v1289_v14, %v112_v22  ;;  %v896_v29 = vld [vmem:[#allocation8 + $0x30] sm:$0xff]  }
  0x78   :  { %841 = vmatpush3.bf16.msra.mxu1 %v887_v3  ;;  %810 = vmatprep.subr.bf16.mxu0 %v888_v4  ;;  %v372_v20 = vpack.c.bf16 %v357_v19, %v356_v18  ;;  %v111_v21 = vld [vmem:[#allocation2 + $0x10] sm:$0xff]  ;;  %v113_v27 = vld [vmem:[#allocation2 + $0x20] sm:$0xff]  ;;  %v114_v28 = vld [vmem:[#allocation2 + $0x28] sm:$0xff]  ;;  %p1040_p10 = pnand %p1039_p9, %p1033_p6 }
  0x79   :  { %842 = vmatprep.subr.bf16.mxu1 %v889_v5  ;;  %v155_v23 = vadd.f32 %v1293_v17, %v132_v15  ;;  %v156_v24 = vadd.f32 %v1293_v17, %v133_v16  ;;  %v134_v25 = vmul.f32 %v1289_v14, %v111_v21  ;;  %v136_v30 = vmul.f32 %v1289_v14, %v113_v27  ;;  %v897_v32 = vld [vmem:[#allocation11 + $0x30] sm:$0xff]   ;;  %v898_v42 = vld [vmem:[#allocation8 + $0x38] sm:$0xff]   ;;  %v118_v44 = vld [vmem:[#allocation2 + $0x48] sm:$0xff] }
  0x7a   :  { %v137_v31 = vmul.f32 %v1289_v14, %v114_v28  ;;  %854 = vmatprep.mubr.bf16.mxu1 %v372_v20  ;;  %v158_v36 = vadd.f32 %v1293_v17, %v135_v26  ;;  %v115_v40 = vld [vmem:[#allocation2 + $0x30] sm:$0xff]  ;;  %v116_v41 = vld [vmem:[#allocation2 + $0x38] sm:$0xff]  ;;  %v117_v43 = vld [vmem:[#allocation2 + $0x40] sm:$0xff]  ;;  %v141_v53 = vmul.f32 %v1289_v14, %v118_v44 }
  0x7b   :  { %811 = vmatpush3.bf16.msra.mxu0 %v888_v4  ;;  %v171_v33 = vmax.f32 %v155_v23, 0.0  ;;  %v172_v34 = vmax.f32 %v156_v24, 0.0  ;;  %v157_v35 = vadd.f32 %v1293_v17, %v134_v25  ;;  %v159_v38 = vadd.f32 %v1293_v17, %v136_v30  ;;  %v899_v45 = vld [vmem:[#allocation11 + $0x38] sm:$0xff]   ;;  %v358_v54 = vld [vmem:[#allocation10 + $0x10] sm:$0xff]  ;;  %v360_v56 = vld [vmem:[#allocation10 + $0x20] sm:$0xff] }
  0x7c   :  { %843 = vmatpush3.bf16.msra.mxu1 %v889_v5  ;;  %812 = vmatprep.subr.bf16.mxu0 %v890_v6  ;;  %v160_v39 = vadd.f32 %v1293_v17, %v137_v31  ;;  %v174_v47 = vmax.f32 %v158_v36, 0.0  ;;  %v138_v48 = vmul.f32 %v1289_v14, %v115_v40  ;;  %v139_v49 = vmul.f32 %v1289_v14, %v116_v41  ;;  %v359_v55 = vld [vmem:[#allocation10 + $0x18] sm:$0xff]  ;;  %v361_v57 = vld [vmem:[#allocation10 + $0x28] sm:$0xff]  ;;  %v362_v15 = vld [vmem:[#allocation10 + $0x30] sm:$0xff] }
  0x7d   :  { %844 = vmatprep.subr.bf16.mxu1 %v891_v7  ;;  %v187_v37 = vpack.c.bf16 %v172_v34, %v171_v33  ;;  %v173_v46 = vmax.f32 %v157_v35, 0.0  ;;  %v175_v50 = vmax.f32 %v159_v38, 0.0  ;;  %v140_v52 = vmul.f32 %v1289_v14, %v117_v43  ;;  %v119_v1 = vld [vmem:[#allocation2 + $0x50] sm:$0xff]  ;;  %v120_v2 = vld [vmem:[#allocation2 + $0x58] sm:$0xff]  ;;  %v121_v4 = vld [vmem:[#allocation2 + $0x60] sm:$0xff] }
  0x7e   :  { %v176_v51 = vmax.f32 %v160_v39, 0.0  ;;  %v161_v59 = vadd.f32 %v1293_v17, %v138_v48  ;;  %v162_v60 = vadd.f32 %v1293_v17, %v139_v49  ;;  %v373_v61 = vpack.c.bf16 %v359_v55, %v358_v54  ;;  %v122_v5 = vld [vmem:[#allocation2 + $0x68] sm:$0xff]  ;;  %v363_v16 = vld [vmem:[#allocation10 + $0x38] sm:$0xff]  ;;  %v123_v27 = vld [vmem:[#allocation2 + $0x70] sm:$0xff] }
  0x7f   :  { %813 = vmatpush3.bf16.msra.mxu0 %v890_v6  ;;  %822 = vmatprep.mubr.bf16.mxu0 %v187_v37  ;;  %v188_v58 = vpack.c.bf16 %v174_v47, %v173_v46  ;;  %v163_v63 = vadd.f32 %v1293_v17, %v140_v52  ;;  %v164_v0 = vadd.f32 %v1293_v17, %v141_v53  ;;  %v364_v18 = vld [vmem:[#allocation10 + $0x40] sm:$0xff]  ;;  %v365_v19 = vld [vmem:[#allocation10 + $0x48] sm:$0xff]  ;;  %v124_v28 = vld [vmem:[#allocation2 + $0x78] sm:$0xff] }
  0x80   :  { %845 = vmatpush3.bf16.msra.mxu1 %v891_v7  ;;  %814 = vmatprep.subr.bf16.mxu0 %v892_v8  ;;  %v189_v62 = vpack.c.bf16 %v176_v51, %v175_v50  ;;  %v374_v3 = vpack.c.bf16 %v361_v57, %v360_v56  ;;  %v177_v6 = vmax.f32 %v161_v59, 0.0  ;;  %v178_v7 = vmax.f32 %v162_v60, 0.0  ;;  %v366_v36 = vld [vmem:[#allocation10 + $0x50] sm:$0xff]  ;;  %v367_v37 = vld [vmem:[#allocation10 + $0x58] sm:$0xff]  ;;  %v368_v38 = vld [vmem:[#allocation10 + $0x60] sm:$0xff] }
  0x81   :  { %846 = vmatprep.subr.bf16.mxu1 %v893_v9  ;;  %v144_v12 = vmul.f32 %v1289_v14, %v121_v4  ;;  %v145_v13 = vmul.f32 %v1289_v14, %v122_v5  ;;  %v375_v23 = vpack.c.bf16 %v363_v16, %v362_v15  ;;  %v147_v33 = vmul.f32 %v1289_v14, %v124_v28  ;;  %v369_v39 = vld [vmem:[#allocation10 + $0x68] sm:$0xff]  ;;  %v370_v47 = vld [vmem:[#allocation10 + $0x70] sm:$0xff]  ;;  %v371_v48 = vld [vmem:[#allocation10 + $0x78] sm:$0xff] }
  0x82   :  { %v190_v20 = vpack.c.bf16 %v178_v7, %v177_v6  ;;  %v377_v43 = vpack.c.bf16 %v367_v37, %v366_v36  ;;  %v379_v50 = vpack.c.bf16 %v371_v48, %v370_v47 }
  0x83   :  { %815 = vmatpush3.bf16.msra.mxu0 %v892_v8  ;;  %v142_v8 = vmul.f32 %v1289_v14, %v119_v1  ;;  %v167_v25 = vadd.f32 %v1293_v17, %v144_v12  ;;  %v168_v26 = vadd.f32 %v1293_v17, %v145_v13 }
  0x84   :  { %847 = vmatpush3.bf16.msra.mxu1 %v893_v9  ;;  %816 = vmatprep.subr.bf16.mxu0 %v894_v10  ;;  %v143_v9 = vmul.f32 %v1289_v14, %v120_v2 }
  0x85   :  { %848 = vmatprep.subr.bf16.mxu1 %v895_v11  ;;  %v165_v21 = vadd.f32 %v1293_v17, %v142_v8  ;;  %v183_v34 = vmax.f32 %v167_v25, 0.0  ;;  %v184_v35 = vmax.f32 %v168_v26, 0.0 }
  0x86   :  { %v166_v22 = vadd.f32 %v1293_v17, %v143_v9 }
  0x87   :  { %817 = vmatpush3.bf16.msra.mxu0 %v894_v10  ;;  %v179_v10 = vmax.f32 %v163_v63, 0.0  ;;  %v181_v30 = vmax.f32 %v165_v21, 0.0  ;;  %v193_v44 = vpack.c.bf16 %v184_v35, %v183_v34 }
  0x88   :  { %849 = vmatpush3.bf16.msra.mxu1 %v895_v11  ;;  %818 = vmatprep.subr.bf16.mxu0 %v896_v29  ;;  %v180_v11 = vmax.f32 %v164_v0, 0.0  ;;  %v182_v31 = vmax.f32 %v166_v22, 0.0 }
  0x89   :  { %850 = vmatprep.subr.bf16.mxu1 %v897_v32 }
  0x8a   :  { %v191_v24 = vpack.c.bf16 %v180_v11, %v179_v10  ;;  %v192_v40 = vpack.c.bf16 %v182_v31, %v181_v30 }
  0x8b   :  { %819 = vmatpush3.bf16.msra.mxu0 %v896_v29  ;;  %v376_v29 = vpack.c.bf16 %v365_v19, %v364_v18 }
  0x8c   :  { %851 = vmatpush3.bf16.msra.mxu1 %v897_v32  ;;  %820 = vmatprep.subr.bf16.mxu0 %v898_v42  ;;  %v146_v32 = vmul.f32 %v1289_v14, %v123_v27 }
  0x8d   :  { %852 = vmatprep.subr.bf16.mxu1 %v899_v45 }
  0x8e   :  { %v169_v41 = vadd.f32 %v1293_v17, %v146_v32 }
  0x8f   :  { %821 = vmatpush3.bf16.msra.mxu0 %v898_v42  ;;  %v170_v42 = vadd.f32 %v1293_v17, %v147_v33 }
  0x90   :  { %853 = vmatpush3.bf16.msra.mxu1 %v899_v45  ;;  %v378_v45 = vpack.c.bf16 %v369_v39, %v368_v38  ;;  %v185_v46 = vmax.f32 %v169_v41, 0.0 }
  0x91   :  { %v186_v14 = vmax.f32 %v170_v42, 0.0 }
  0x92   :  { %823 = vmatmul.mubr.bf16.vlgmr.msra.gmra.mrb[0].mxu0 %v188_v58 }
  0x93   :  { %855 = vmatmul.mubr.bf16.vlgmr.msra.gmra.mrb[0].mxu1 %v373_v61  ;;  %826 = vmatprep.mubr.bf16.mxu0 %v189_v62  ;;  %v194_v49 = vpack.c.bf16 %v186_v14, %v185_v46 }
  0x94   :  { %858 = vmatprep.mubr.bf16.mxu1 %v374_v3 }
  0x9a   :  { %827 = vmatmul.mubr.bf16.gmra.mrb[4].mxu0 %v190_v20 }
  0x9b   :  { %859 = vmatmul.mubr.bf16.gmra.mrb[4].mxu1 %v375_v23  ;;  %830 = vmatprep.mubr.bf16.mxu0 %v191_v24 }
  0x9c   :  { %862 = vmatprep.mubr.bf16.mxu1 %v376_v29 }
  0xa2   :  { %831 = vmatmul.mubr.bf16.gmra.mrb[8].mxu0 %v192_v40 }
  0xa3   :  { %863 = vmatmul.mubr.bf16.gmra.mrb[8].mxu1 %v377_v43  ;;  %834 = vmatprep.mubr.bf16.mxu0 %v193_v44 }
  0xa4   :  { %866 = vmatprep.mubr.bf16.mxu1 %v378_v45 }
  0xaa   :  { %835 = vmatmul.mubr.bf16.gmra.mrb[12].mxu0 %v194_v49 }
  0xab   :  { %867 = vmatmul.mubr.bf16.gmra.mrb[12].mxu1 %v379_v50 }
 0x165   :  { %v824_v51 = vpop.f32.mrb[0].mxu0 }
 0x166   :  { %543 = vst [vmem:[#allocation13 + $0x10] sm:$0xff] %v824_v51  ;;  %v856_v52 = vpop.f32.mrb[0].mxu1  ;;  %v293_v53 = vpop.f32.mrb[1].mxu0  ;;  %v597_v0 = vmul.f32 %v824_v51, %v824_v51 }
 0x167   :  { %559 = vst [vmem:[#allocation14 + $0x10] sm:$0xff] %v856_v52  ;;  %541 = vst [vmem:[#allocation13] sm:$0xff] %v293_v53  ;;  %v478_v17 = vpop.f32.mrb[1].mxu1  ;;  %v825_v54 = vpop.f32.mrb[2].mxu0  ;;  %v595_v57 = vmul.f32 %v293_v53, %v293_v53  ;;  %v657_v3 = vmul.f32 %v856_v52, %v856_v52 }
 0x168   :  { %557 = vst [vmem:[#allocation14] sm:$0xff] %v478_v17  ;;  %544 = vst [vmem:[#allocation13 + $0x18] sm:$0xff] %v825_v54  ;;  %v857_v55 = vpop.f32.mrb[2].mxu1  ;;  %v296_v56 = vpop.f32.mrb[3].mxu0  ;;  %v655_v61 = vmul.f32 %v478_v17, %v478_v17  ;;  %v598_v6 = vmul.f32 %v825_v54, %v825_v54 }
 0x169   :  { %560 = vst [vmem:[#allocation14 + $0x18] sm:$0xff] %v857_v55  ;;  %542 = vst [vmem:[#allocation13 + $0x8] sm:$0xff] %v296_v56  ;;  %v573_v58 = vadd.f32 %v296_v56, %v293_v53  ;;  %v596_v59 = vmul.f32 %v296_v56, %v296_v56  ;;  %v481_v60 = vpop.f32.mrb[3].mxu1  ;;  %v658_v10 = vmul.f32 %v857_v55, %v857_v55 }
 0x16a   :  { %558 = vst [vmem:[#allocation14 + $0x8] sm:$0xff] %v481_v60  ;;  %v633_v62 = vadd.f32 %v481_v60, %v478_v17  ;;  %v656_v63 = vmul.f32 %v481_v60, %v481_v60 }
 0x16b   :  { %v574_v1 = vadd.f32 %v824_v51, %v573_v58  ;;  %v611_v2 = vadd.f32 %v596_v59, %v595_v57 }
 0x16c   :  { %v634_v4 = vadd.f32 %v856_v52, %v633_v62  ;;  %v671_v5 = vadd.f32 %v656_v63, %v655_v61 }
 0x16d   :  { %v612_v7 = vadd.f32 %v611_v2, %v597_v0  ;;  %v828_v8 = vpop.f32.mrb[4].mxu0  ;;  %v575_v9 = vadd.f32 %v825_v54, %v574_v1 }
 0x16e   :  { %v672_v11 = vadd.f32 %v671_v5, %v657_v3  ;;  %547 = vst [vmem:[#allocation13 + $0x30] sm:$0xff] %v828_v8  ;;  %v860_v12 = vpop.f32.mrb[4].mxu1  ;;  %v309_v13 = vpop.f32.mrb[5].mxu0  ;;  %v635_v15 = vadd.f32 %v857_v55, %v634_v4  ;;  %v601_v34 = vmul.f32 %v828_v8, %v828_v8 }
 0x16f   :  { %563 = vst [vmem:[#allocation14 + $0x30] sm:$0xff] %v860_v12  ;;  %545 = vst [vmem:[#allocation13 + $0x20] sm:$0xff] %v309_v13  ;;  %v576_v16 = vadd.f32 %v575_v9, %v309_v13  ;;  %v599_v18 = vmul.f32 %v309_v13, %v309_v13  ;;  %v613_v19 = vadd.f32 %v612_v7, %v598_v6  ;;  %v494_v20 = vpop.f32.mrb[5].mxu1  ;;  %v829_v21 = vpop.f32.mrb[6].mxu0 }
 0x170   :  { %561 = vst [vmem:[#allocation14 + $0x20] sm:$0xff] %v494_v20  ;;  %v636_v22 = vadd.f32 %v635_v15, %v494_v20  ;;  %v659_v23 = vmul.f32 %v494_v20, %v494_v20  ;;  %v673_v24 = vadd.f32 %v672_v11, %v658_v10  ;;  %548 = vst [vmem:[#allocation13 + $0x38] sm:$0xff] %v829_v21  ;;  %v861_v25 = vpop.f32.mrb[6].mxu1  ;;  %v312_v26 = vpop.f32.mrb[7].mxu0 }
 0x171   :  { %v614_v27 = vadd.f32 %v613_v19, %v599_v18  ;;  %564 = vst [vmem:[#allocation14 + $0x38] sm:$0xff] %v861_v25  ;;  %546 = vst [vmem:[#allocation13 + $0x28] sm:$0xff] %v312_v26  ;;  %v577_v28 = vadd.f32 %v576_v16, %v312_v26  ;;  %v600_v29 = vmul.f32 %v312_v26, %v312_v26  ;;  %v497_v30 = vpop.f32.mrb[7].mxu1 }
 0x172   :  { %v674_v31 = vadd.f32 %v673_v24, %v659_v23  ;;  %562 = vst [vmem:[#allocation14 + $0x28] sm:$0xff] %v497_v30  ;;  %v637_v32 = vadd.f32 %v636_v22, %v497_v30  ;;  %v660_v33 = vmul.f32 %v497_v30, %v497_v30  ;;  %v661_v37 = vmul.f32 %v860_v12, %v860_v12 }
 0x173   :  { %v578_v35 = vadd.f32 %v828_v8, %v577_v28  ;;  %v615_v36 = vadd.f32 %v614_v27, %v600_v29  ;;  %v602_v40 = vmul.f32 %v829_v21, %v829_v21  ;;  %v662_v44 = vmul.f32 %v861_v25, %v861_v25 }
 0x174   :  { %v638_v38 = vadd.f32 %v860_v12, %v637_v32  ;;  %v675_v39 = vadd.f32 %v674_v31, %v660_v33 }
 0x175   :  { %v616_v41 = vadd.f32 %v615_v36, %v601_v34  ;;  %v832_v42 = vpop.f32.mrb[8].mxu0  ;;  %v579_v43 = vadd.f32 %v829_v21, %v578_v35 }
 0x176   :  { %v676_v45 = vadd.f32 %v675_v39, %v661_v37  ;;  %551 = vst [vmem:[#allocation13 + $0x50] sm:$0xff] %v832_v42  ;;  %v864_v46 = vpop.f32.mrb[8].mxu1  ;;  %v325_v14 = vpop.f32.mrb[9].mxu0  ;;  %v639_v47 = vadd.f32 %v861_v25, %v638_v38  ;;  %v605_v0 = vmul.f32 %v832_v42, %v832_v42 }
 0x177   :  { %567 = vst [vmem:[#allocation14 + $0x50] sm:$0xff] %v864_v46  ;;  %549 = vst [vmem:[#allocation13 + $0x40] sm:$0xff] %v325_v14  ;;  %v580_v48 = vadd.f32 %v579_v43, %v325_v14  ;;  %v603_v49 = vmul.f32 %v325_v14, %v325_v14  ;;  %v617_v50 = vadd.f32 %v616_v41, %v602_v40  ;;  %v510_v51 = vpop.f32.mrb[9].mxu1  ;;  %v833_v52 = vpop.f32.mrb[10].mxu0 }
 0x178   :  { %565 = vst [vmem:[#allocation14 + $0x40] sm:$0xff] %v510_v51  ;;  %v640_v53 = vadd.f32 %v639_v47, %v510_v51  ;;  %v663_v17 = vmul.f32 %v510_v51, %v510_v51  ;;  %v677_v54 = vadd.f32 %v676_v45, %v662_v44  ;;  %552 = vst [vmem:[#allocation13 + $0x58] sm:$0xff] %v833_v52  ;;  %v865_v55 = vpop.f32.mrb[10].mxu1  ;;  %v328_v56 = vpop.f32.mrb[11].mxu0 }
 0x179   :  { %v618_v57 = vadd.f32 %v617_v50, %v603_v49  ;;  %568 = vst [vmem:[#allocation14 + $0x58] sm:$0xff] %v865_v55  ;;  %550 = vst [vmem:[#allocation13 + $0x48] sm:$0xff] %v328_v56  ;;  %v581_v58 = vadd.f32 %v580_v48, %v328_v56  ;;  %v604_v59 = vmul.f32 %v328_v56, %v328_v56  ;;  %v513_v60 = vpop.f32.mrb[11].mxu1 }
 0x17a   :  { %v678_v61 = vadd.f32 %v677_v54, %v663_v17  ;;  %566 = vst [vmem:[#allocation14 + $0x48] sm:$0xff] %v513_v60  ;;  %v641_v62 = vadd.f32 %v640_v53, %v513_v60  ;;  %v664_v63 = vmul.f32 %v513_v60, %v513_v60  ;;  %v665_v3 = vmul.f32 %v864_v46, %v864_v46 }
 0x17b   :  { %v582_v1 = vadd.f32 %v832_v42, %v581_v58  ;;  %v619_v2 = vadd.f32 %v618_v57, %v604_v59  ;;  %v606_v6 = vmul.f32 %v833_v52, %v833_v52  ;;  %v666_v10 = vmul.f32 %v865_v55, %v865_v55 }
 0x17c   :  { %v642_v4 = vadd.f32 %v864_v46, %v641_v62  ;;  %v679_v5 = vadd.f32 %v678_v61, %v664_v63 }
 0x17d   :  { %v620_v7 = vadd.f32 %v619_v2, %v605_v0  ;;  %v836_v8 = vpop.f32.mrb[12].mxu0  ;;  %v583_v9 = vadd.f32 %v833_v52, %v582_v1 }
 0x17e   :  { %v680_v11 = vadd.f32 %v679_v5, %v665_v3  ;;  %555 = vst [vmem:[#allocation13 + $0x70] sm:$0xff] %v836_v8  ;;  %v868_v12 = vpop.f32.mrb[12].mxu1  ;;  %v341_v13 = vpop.f32.mrb[13].mxu0  ;;  %v643_v15 = vadd.f32 %v865_v55, %v642_v4 }
 0x17f   :  { %571 = vst [vmem:[#allocation14 + $0x70] sm:$0xff] %v868_v12  ;;  %553 = vst [vmem:[#allocation13 + $0x60] sm:$0xff] %v341_v13  ;;  %v584_v16 = vadd.f32 %v583_v9, %v341_v13  ;;  %v607_v18 = vmul.f32 %v341_v13, %v341_v13  ;;  %v621_v19 = vadd.f32 %v620_v7, %v606_v6  ;;  %v526_v20 = vpop.f32.mrb[13].mxu1  ;;  %v837_v21 = vpop.f32.mrb[14].mxu0 }
 0x180   :  { %569 = vst [vmem:[#allocation14 + $0x60] sm:$0xff] %v526_v20  ;;  %v644_v22 = vadd.f32 %v643_v15, %v526_v20  ;;  %v667_v23 = vmul.f32 %v526_v20, %v526_v20  ;;  %v681_v24 = vadd.f32 %v680_v11, %v666_v10  ;;  %556 = vst [vmem:[#allocation13 + $0x78] sm:$0xff] %v837_v21  ;;  %v869_v25 = vpop.f32.mrb[14].mxu1  ;;  %v344_v26 = vpop.f32.mrb[15].mxu0 }
 0x181   :  { %v622_v27 = vadd.f32 %v621_v19, %v607_v18  ;;  %572 = vst [vmem:[#allocation14 + $0x78] sm:$0xff] %v869_v25  ;;  %554 = vst [vmem:[#allocation13 + $0x68] sm:$0xff] %v344_v26  ;;  %v585_v28 = vadd.f32 %v584_v16, %v344_v26  ;;  %v608_v29 = vmul.f32 %v344_v26, %v344_v26  ;;  %v529_v30 = vpop.f32.mrb[15].mxu1 }
 0x182   :  { %v682_v31 = vadd.f32 %v681_v24, %v667_v23  ;;  %570 = vst [vmem:[#allocation14 + $0x68] sm:$0xff] %v529_v30  ;;  %v645_v32 = vadd.f32 %v644_v22, %v529_v30  ;;  %v668_v33 = vmul.f32 %v529_v30, %v529_v30 }
 0x183   :  { %1043 = shalt.err (!%p1040_p10)
}
 0x184   :  { %s1044_s26 = scalar_lea.hbm %s1399_s6, 2048 }
 0x185   :  { %p1045_p11 = scmp.ne.s32.totalorder %s1399_s6, %s1044_s26  ;;  %p1048_p12 = scmp.lt.u32.totalorder %s1044_s26, %s1399_s6 }
 0x187   :  { %p1050_p13 = pnand %p1048_p12, %p1045_p11 }
 0x189   :  { %1053 = shalt.err (!%p1050_p13)
}
 0x18a   :  { %704 = dma.vmem_to_hbm [thread:$0]  %s1325_s1, 2048, %s1399_s6, [#allocation4], %s1139_s3, %s1139_s3, %s1140_s12   ;;  %v609_v34 = vmul.f32 %v836_v8, %v836_v8  ;;  %v586_v35 = vadd.f32 %v836_v8, %v585_v28  ;;  %v623_v36 = vadd.f32 %v622_v27, %v608_v29 }
 0x18b   :  { %s1054_s14 = scalar_lea.vmem %s1327_s22, 2048  ;;  %p1059_p1 = scmp.lt.s32.totalorder %s1327_s22, %s1327_s22 }
 0x18c   :  { %p1055_p0 = scmp.ne.s32.totalorder %s1327_s22, %s1054_s14  ;;  %p1060_p2 = scmp.lt.s32.totalorder %s1054_s14, %s1054_s14 }
 0x18e   :  { %p1061_p3 = por %p1060_p2, %p1059_p1 }
 0x190   :  { %p1062_p4 = pnand %p1061_p3, %p1055_p0 }
 0x192   :  { %1065 = shalt.err (!%p1062_p4)
}
 0x193   :  { %s1066_s18 = scalar_lea.hbm %s1400_s7, 2048 }
 0x194   :  { %p1067_p5 = scmp.ne.s32.totalorder %s1400_s7, %s1066_s18  ;;  %p1070_p6 = scmp.lt.u32.totalorder %s1066_s18, %s1400_s7 }
 0x196   :  { %p1072_p7 = pnand %p1070_p6, %p1067_p5 }
 0x198   :  { %1075 = shalt.err (!%p1072_p7)
}
 0x199   :  { %716 = dma.vmem_to_hbm [thread:$0]  %s1327_s22, 2048, %s1400_s7, [#allocation15], %s1139_s3, %s1139_s3, %s1140_s12   ;;  %v669_v37 = vmul.f32 %v868_v12, %v868_v12  ;;  %v646_v38 = vadd.f32 %v868_v12, %v645_v32  ;;  %v683_v39 = vadd.f32 %v682_v31, %v668_v33  ;;  %v610_v40 = vmul.f32 %v837_v21, %v837_v21 }
 0x19a   :  { %v587_v41 = vadd.f32 %v837_v21, %v586_v35  ;;  %v624_v42 = vadd.f32 %v623_v36, %v609_v34  ;;  %v670_v43 = vmul.f32 %v869_v25, %v869_v25  ;;  %s1146_s7 = smov [#allocation16]   ;;  %s1147_s12 = smov [#allocation17]  }
 0x19b   :  { %v647_v44 = vadd.f32 %v869_v25, %v646_v38  ;;  %v684_v45 = vadd.f32 %v683_v39, %v669_v37  ;;  %s723_s3 = sshll.u32 %s1146_s7, 4  ;;  %s733_s4 = sshll.u32 %s1147_s12, 4  ;;  %s724_s3 = int_to_ptr.vmem [resolvable:$true] %s723_s3  ;;  %s734_s4 = int_to_ptr.vmem [resolvable:$true] %s733_s4 }
 0x19c   :  { %v588_v46 = vrot.slane %v587_v41, 4  ;;  %v625_v14 = vadd.f32 %v624_v42, %v610_v40  ;;  %s1076_s30 = scalar_lea.vmem %s724_s3, 32  ;;  %p1081_p9 = scmp.lt.s32.totalorder %s724_s3, %s724_s3 }
 0x19d   :  { %v648_v47 = vrot.slane %v647_v44, 4  ;;  %v685_v48 = vadd.f32 %v684_v45, %v670_v43  ;;  %p1077_p8 = scmp.ne.s32.totalorder %s724_s3, %s1076_s30  ;;  %p1082_p10 = scmp.lt.s32.totalorder %s1076_s30, %s1076_s30 }
 0x19e   :  { %v589_v49 = vadd.f32 %v588_v46, %v587_v41  ;;  %v626_v50 = vrot.slane %v625_v14, 4 }
 0x19f   :  { %v649_v51 = vadd.f32 %v648_v47, %v647_v44  ;;  %v686_v52 = vrot.slane %v685_v48, 4  ;;  %p1083_p11 = por %p1082_p10, %p1081_p9 }
 0x1a0   :  { %v590_v53 = vrot.slane %v589_v49, 2  ;;  %v627_v17 = vadd.f32 %v626_v50, %v625_v14 }
 0x1a1   :  { %v650_v54 = vrot.slane %v649_v51, 2  ;;  %v687_v55 = vadd.f32 %v686_v52, %v685_v48  ;;  %p1084_p12 = pnand %p1083_p11, %p1077_p8 }
 0x1a2   :  { %v591_v56 = vadd.f32 %v590_v53, %v589_v49  ;;  %v628_v57 = vrot.slane %v627_v17, 2 }
 0x1a3   :  { %v651_v58 = vadd.f32 %v650_v54, %v649_v51  ;;  %v688_v59 = vrot.slane %v687_v55, 2 }
 0x1a4   :  { %v592_v60 = vrot.slane %v591_v56, 1  ;;  %v629_v61 = vadd.f32 %v628_v57, %v627_v17 }
 0x1a5   :  { %v652_v62 = vrot.slane %v651_v58, 1  ;;  %v689_v63 = vadd.f32 %v688_v59, %v687_v55 }
 0x1a6   :  { %v593_v0 = vadd.f32 %v592_v60, %v591_v56  ;;  %v630_v1 = vrot.slane %v629_v61, 1 }
 0x1a7   :  { %v653_v2 = vadd.f32 %v652_v62, %v651_v58  ;;  %v690_v3 = vrot.slane %v689_v63, 1 }
 0x1a8   :  { %594 = vst [vmem:[#allocation16] sm:$0x1] %v593_v0  ;;  %v631_v4 = vadd.f32 %v630_v1, %v629_v61 }
 0x1a9   :  { %654 = vst [vmem:[#allocation17] sm:$0x1] %v653_v2  ;;  %v691_v5 = vadd.f32 %v690_v3, %v689_v63 }
 0x1aa   :  { %632 = vst [vmem:[#allocation16 + $0x1] sm:$0x1] %v631_v4 }
 0x1ab   :  { %1087 = shalt.err (!%p1084_p12)
}
 0x1ac   :  { %s1088_s10 = scalar_lea.hbm %s1401_s8, 32 }
 0x1ad   :  { %p1089_p13 = scmp.ne.s32.totalorder %s1401_s8, %s1088_s10  ;;  %p1092_p0 = scmp.lt.u32.totalorder %s1088_s10, %s1401_s8 }
 0x1af   :  { %p1094_p1 = pnand %p1092_p0, %p1089_p13 }
 0x1b1   :  { %1097 = shalt.err (!%p1094_p1)
}
 0x1b2   :  { %726 = dma.vmem_to_hbm [thread:$0]  %s724_s3, 32, %s1401_s8, [#allocation15]   ;;  %692 = vst [vmem:[#allocation17 + $0x1] sm:$0x1] %v691_v5 }
 0x1b3   :  { %s1098_s29 = scalar_lea.vmem %s734_s4, 32  ;;  %p1103_p3 = scmp.lt.s32.totalorder %s734_s4, %s734_s4 }
 0x1b4   :  { %p1099_p2 = scmp.ne.s32.totalorder %s734_s4, %s1098_s29  ;;  %p1104_p4 = scmp.lt.s32.totalorder %s1098_s29, %s1098_s29 }
 0x1b6   :  { %p1105_p5 = por %p1104_p4, %p1103_p3 }
 0x1b8   :  { %p1106_p6 = pnand %p1105_p5, %p1099_p2 }
 0x1ba   :  { %1109 = shalt.err (!%p1106_p6)
}
 0x1bb   :  { %s1110_s28 = scalar_lea.hbm %s1402_s9, 32 }
 0x1bc   :  { %p1111_p7 = scmp.ne.s32.totalorder %s1402_s9, %s1110_s28  ;;  %p1114_p8 = scmp.lt.u32.totalorder %s1110_s28, %s1402_s9 }
 0x1be   :  { %p1116_p9 = pnand %p1114_p8, %p1111_p7 }
 0x1c0   :  { %1119 = shalt.err (!%p1116_p9)
}
 0x1c1   :  { %736 = dma.vmem_to_hbm [thread:$0]  %s734_s4, 32, %s1402_s9, [#allocation18]  }
 0x1c2   :  { %1128 = dma.done.wait [#allocation4], 2048  }
 0x1c3   :  { %1129 = vsyncadd [#allocation4], 4294965248 }
 0x1c4   :  { %1130 = dma.done.wait [#allocation15], 2080  }
 0x1c5   :  { %1131 = vsyncadd [#allocation15], 4294965216 }
 0x1c6   :  { %1132 = dma.done.wait [#allocation18], 32  }
 0x1c7   :  { %1133 = vsyncadd [#allocation18], 4294967264 }
 0x1c8   :  { %749 = vsyncpa [#allocation3], 1 }
 0x1c9   :  { %750 = vsyncpa [#allocation6], 1 }
 0x1ca   :  { %751 = vsyncpa [#allocation9], 1 }
 0x1cb   :  { %752 = vsyncpa [#allocation12], 1 }
 0x1cc   :  { %753 = vsyncpa [#allocation4], 1 }
 0x1cd   :  { %754 = vsyncpa [#allocation15], 1 }
 0x1ce   :  { %755 = vsyncpa [#allocation18], 1 }

// kernel: bottleneck_forward.9
= control target key start
LH: loop header
LB: loop body
LE: loop exit
PB: predicated region body
PF: predicated region fallthrough
CT: control target
= control target key end

     0   :  { %11 = vsyncpa [#allocation3], 0  ;;  %s676_s0 = inlined_call_operand.hbm [shape: f32[128,128], index: 0, kind: input, shape index: {}]   ;;  %s677_s1 = inlined_call_operand.hbm [shape: f32[1,128], index: 1, kind: input, shape index: {}]   ;;  %s678_s2 = inlined_call_operand.hbm [shape: f32[1,128], index: 2, kind: input, shape index: {}]   ;;  %s679_s3 = inlined_call_operand.hbm [shape: f32[128,128], index: 3, kind: input, shape index: {}]   ;;  %s680_s4 = inlined_call_operand.hbm [shape: f32[1,128], index: 4, kind: input, shape index: {}]   ;;  %s681_s5 = inlined_call_operand.hbm [shape: f32[1,128], index: 5, kind: input, shape index: {}]   ;;  %s682_s6 = inlined_call_operand.hbm [shape: f32[128,128], index: 6, kind: output, shape index: {}]  }
   0x1   :  { %12 = vsyncpa [#allocation6], 0 }
   0x2   :  { %13 = vsyncpa [#allocation9], 0 }
   0x3   :  { %14 = vsyncpa [#allocation12], 0 }
   0x4   :  { %15 = vsyncpa [#allocation4], 0  ;;  %s467_s21 = smov [#allocation5]   ;;  %s303_s25 = scalar_lea.hbm %s677_s1, 16 }
   0x5   :  { %s34_s22 = sshll.u32 %s467_s21, 4  ;;  %p304_p0 = scmp.ne.s32.totalorder %s677_s1, %s303_s25  ;;  %s35_s22 = int_to_ptr.vmem [resolvable:$true] %s34_s22 }
   0x6   :  { %p307_p1 = scmp.lt.u32.totalorder %s303_s25, %s677_s1 }
   0x8   :  { %p309_p2 = pnand %p307_p1, %p304_p0 }
   0xa   :  { %312 = shalt.err (!%p309_p2)
}
   0xb   :  { %s313_s30 = scalar_lea.vmem %s35_s22, 16  ;;  %s317_s7 = scalar_lea.vmem %s35_s22, 32 }
   0xc   :  { %p314_p3 = scmp.ne.s32.totalorder %s35_s22, %s313_s30  ;;  %p318_p4 = scmp.lt.s32.totalorder %s35_s22, %s35_s22 }
   0xd   :  { %p319_p5 = scmp.lt.s32.totalorder %s317_s7, %s313_s30 }
   0xf   :  { %p320_p6 = por %p319_p5, %p318_p4 }
  0x11   :  { %p321_p7 = pnand %p320_p6, %p314_p3 }
  0x13   :  { %324 = shalt.err (!%p321_p7)
}
  0x14   :  { %37 = dma.hbm_to_vmem [thread:$0]  %s677_s1, 16, %s35_s22, [#allocation6]  }
  0x15   :  { %s468_s10 = smov [#allocation8]   ;;  %s469_s12 = smov [#allocation2]  }
  0x16   :  { %s53_s11 = sshll.u32 %s468_s10, 4  ;;  %s21_s13 = sshll.u32 %s469_s12, 4  ;;  %s54_s11 = int_to_ptr.vmem [resolvable:$true] %s53_s11  ;;  %s22_s13 = int_to_ptr.vmem [resolvable:$true] %s21_s13 }
  0x17   :  { %s325_s16 = scalar_lea.hbm %s679_s3, 2048 }
  0x18   :  { %p326_p8 = scmp.ne.s32.totalorder %s679_s3, %s325_s16  ;;  %p329_p9 = scmp.lt.u32.totalorder %s325_s16, %s679_s3 }
  0x1a   :  { %p331_p10 = pnand %p329_p9, %p326_p8 }
  0x1c   :  { %334 = shalt.err (!%p331_p10)
}
  0x1d   :  { %s335_s1 = scalar_lea.vmem %s54_s11, 2048  ;;  %p340_p12 = scmp.lt.s32.totalorder %s54_s11, %s54_s11 }
  0x1e   :  { %p336_p11 = scmp.ne.s32.totalorder %s54_s11, %s335_s1  ;;  %p341_p13 = scmp.lt.s32.totalorder %s335_s1, %s335_s1 }
  0x20   :  { %p342_p0 = por %p341_p13, %p340_p12 }
  0x22   :  { %p343_p1 = pnand %p342_p0, %p336_p11 }
  0x24   :  { %346 = shalt.err (!%p343_p1)
}
  0x25   :  { %s470_s21 = smov 128   ;;  %s471_s22 = smov 8  }
  0x26   :  { %59 = dma.hbm_to_vmem [thread:$0]  %s679_s3, 2048, %s54_s11, [#allocation9], %s470_s21, %s470_s21, %s471_s22  }
  0x27   :  { %s347_s27 = scalar_lea.hbm %s676_s0, 2048 }
  0x28   :  { %p348_p2 = scmp.ne.s32.totalorder %s676_s0, %s347_s27  ;;  %p351_p3 = scmp.lt.u32.totalorder %s347_s27, %s676_s0 }
  0x2a   :  { %p353_p4 = pnand %p351_p3, %p348_p2 }
  0x2c   :  { %356 = shalt.err (!%p353_p4)
}
  0x2d   :  { %s357_s8 = scalar_lea.vmem %s22_s13, 2048  ;;  %p362_p6 = scmp.lt.s32.totalorder %s22_s13, %s22_s13 }
  0x2e   :  { %p358_p5 = scmp.ne.s32.totalorder %s22_s13, %s357_s8  ;;  %p363_p7 = scmp.lt.s32.totalorder %s357_s8, %s357_s8 }
  0x30   :  { %p364_p8 = por %p363_p7, %p362_p6 }
  0x32   :  { %p365_p9 = pnand %p364_p8, %p358_p5 }
  0x34   :  { %368 = shalt.err (!%p365_p9)
}
  0x35   :  { %27 = dma.hbm_to_vmem [thread:$0]  %s676_s0, 2048, %s22_s13, [#allocation3], %s470_s21, %s470_s21, %s471_s22  }
  0x36   :  { %s472_s10 = smov [#allocation7]   ;;  %s473_s12 = smov [#allocation10]  }
  0x37   :  { %s44_s11 = sshll.u32 %s472_s10, 4  ;;  %s66_s14 = sshll.u32 %s473_s12, 4  ;;  %s45_s11 = int_to_ptr.vmem [resolvable:$true] %s44_s11  ;;  %s67_s14 = int_to_ptr.vmem [resolvable:$true] %s66_s14 }
  0x38   :  { %s369_s17 = scalar_lea.hbm %s678_s2, 16 }
  0x39   :  { %p370_p10 = scmp.ne.s32.totalorder %s678_s2, %s369_s17  ;;  %p373_p11 = scmp.lt.u32.totalorder %s369_s17, %s678_s2 }
  0x3b   :  { %p375_p12 = pnand %p373_p11, %p370_p10 }
  0x3d   :  { %378 = shalt.err (!%p375_p12)
}
  0x3e   :  { %s379_s0 = scalar_lea.vmem %s45_s11, 16  ;;  %s383_s13 = scalar_lea.vmem %s45_s11, 32 }
  0x3f   :  { %p380_p13 = scmp.ne.s32.totalorder %s45_s11, %s379_s0  ;;  %p384_p0 = scmp.lt.s32.totalorder %s45_s11, %s45_s11 }
  0x40   :  { %p385_p1 = scmp.lt.s32.totalorder %s383_s13, %s379_s0 }
  0x42   :  { %p386_p2 = por %p385_p1, %p384_p0 }
  0x44   :  { %p387_p3 = pnand %p386_p2, %p380_p13 }
  0x46   :  { %390 = shalt.err (!%p387_p3)
}
  0x47   :  { %47 = dma.hbm_to_vmem [thread:$0]  %s678_s2, 16, %s45_s11, [#allocation6]  }
  0x48   :  { %s391_s27 = scalar_lea.hbm %s680_s4, 16 }
  0x49   :  { %p392_p4 = scmp.ne.s32.totalorder %s680_s4, %s391_s27  ;;  %p395_p5 = scmp.lt.u32.totalorder %s391_s27, %s680_s4 }
  0x4b   :  { %p397_p6 = pnand %p395_p5, %p392_p4 }
  0x4d   :  { %400 = shalt.err (!%p397_p6)
}
  0x4e   :  { %s401_s8 = scalar_lea.vmem %s67_s14, 16  ;;  %s405_s3 = scalar_lea.vmem %s67_s14, 32 }
  0x4f   :  { %p402_p7 = scmp.ne.s32.totalorder %s67_s14, %s401_s8  ;;  %p406_p8 = scmp.lt.s32.totalorder %s67_s14, %s67_s14 }
  0x50   :  { %p407_p9 = scmp.lt.s32.totalorder %s405_s3, %s401_s8 }
  0x52   :  { %p408_p10 = por %p407_p9, %p406_p8 }
  0x54   :  { %p409_p11 = pnand %p408_p10, %p402_p7 }
  0x56   :  { %412 = shalt.err (!%p409_p11)
}
  0x57   :  { %69 = dma.hbm_to_vmem [thread:$0]  %s680_s4, 16, %s67_s14, [#allocation9]  }
  0x58   :  { %s474_s10 = smov [#allocation11]   ;;  %s413_s16 = scalar_lea.hbm %s681_s5, 16 }
  0x59   :  { %s76_s11 = sshll.u32 %s474_s10, 4  ;;  %p414_p12 = scmp.ne.s32.totalorder %s681_s5, %s413_s16  ;;  %s77_s11 = int_to_ptr.vmem [resolvable:$true] %s76_s11 }
  0x5a   :  { %p417_p13 = scmp.lt.u32.totalorder %s413_s16, %s681_s5 }
  0x5c   :  { %p419_p0 = pnand %p417_p13, %p414_p12 }
  0x5e   :  { %422 = shalt.err (!%p419_p0)
}
  0x5f   :  { %s423_s1 = scalar_lea.vmem %s77_s11, 16  ;;  %s427_s4 = scalar_lea.vmem %s77_s11, 32 }
  0x60   :  { %p424_p1 = scmp.ne.s32.totalorder %s77_s11, %s423_s1  ;;  %p428_p2 = scmp.lt.s32.totalorder %s77_s11, %s77_s11 }
  0x61   :  { %p429_p3 = scmp.lt.s32.totalorder %s427_s4, %s423_s1 }
  0x63   :  { %p430_p4 = por %p429_p3, %p428_p2 }
  0x65   :  { %p431_p5 = pnand %p430_p4, %p424_p1 }
  0x67   :  { %434 = shalt.err (!%p431_p5)
}
  0x68   :  { %79 = dma.hbm_to_vmem [thread:$0]  %s681_s5, 16, %s77_s11, [#allocation12]  }
  0x69   :  { %457 = dma.done.wait [#allocation3], 2048  }
  0x6a   :  { %458 = vsyncadd [#allocation3], 4294965248 }
  0x6b   :  { %459 = dma.done.wait [#allocation6], 32  }
  0x6c   :  { %460 = vsyncadd [#allocation6], 4294967264 }
  0x6d   :  { %461 = dma.done.wait [#allocation9], 2064  }
  0x6e   :  { %462 = vsyncadd [#allocation9], 4294965232 }
  0x6f   :  { %463 = dma.done.wait [#allocation12], 16  }
  0x70   :  { %464 = vsyncadd [#allocation12], 4294967280  ;;  %v98_v0 = vld [vmem:[#allocation2] sm:$0xff]  ;;  %v99_v8 = vld [vmem:[#allocation2 + $0x8] sm:$0xff]  ;;  %s475_s5 = smov [#allocation13]  }
  0x71   :  { %v589_v1 = vld [vmem:[#allocation5] ss:$0 sm:$0xff]  ;;  %v591_v2 = vld [vmem:[#allocation7] ss:$0 sm:$0xff]  ;;  %v160_v4 = vld [vmem:[#allocation8] sm:$0xff]  ;;  %s275_s13 = sshll.u32 %s475_s5, 4  ;;  %s276_s13 = int_to_ptr.vmem [resolvable:$true] %s275_s13 }
  0x72   :  { %v121_v3 = vmul.f32 %v589_v1, %v98_v0  ;;  %v594_v5 = vld [vmem:[#allocation10] ss:$0 sm:$0xff]  ;;  %v597_v7 = vld [vmem:[#allocation11] ss:$0 sm:$0xff]  ;;  %v161_v9 = vld [vmem:[#allocation8 + $0x8] sm:$0xff]  ;;  %v122_v12 = vmul.f32 %v589_v1, %v99_v8  ;;  %s435_s23 = scalar_lea.vmem %s276_s13, 2048  ;;  %p440_p7 = scmp.lt.s32.totalorder %s276_s13, %s276_s13 }
  0x73   :  { %v183_v6 = vmul.f32 %v594_v5, %v160_v4  ;;  %v100_v10 = vld [vmem:[#allocation2 + $0x10] sm:$0xff]  ;;  %v184_v13 = vmul.f32 %v594_v5, %v161_v9  ;;  %v101_v16 = vld [vmem:[#allocation2 + $0x18] sm:$0xff]  ;;  %v102_v21 = vld [vmem:[#allocation2 + $0x20] sm:$0xff]  ;;  %p436_p6 = scmp.ne.s32.totalorder %s276_s13, %s435_s23  ;;  %p441_p8 = scmp.lt.s32.totalorder %s435_s23, %s435_s23 }
  0x74   :  { %v144_v11 = vadd.f32 %v591_v2, %v121_v3  ;;  %v123_v14 = vmul.f32 %v589_v1, %v100_v10  ;;  %v162_v15 = vld [vmem:[#allocation8 + $0x10] sm:$0xff]  ;;  %v163_v17 = vld [vmem:[#allocation8 + $0x18] sm:$0xff]  ;;  %v124_v19 = vmul.f32 %v589_v1, %v101_v16  ;;  %v164_v22 = vld [vmem:[#allocation8 + $0x20] sm:$0xff]  ;;  %v145_v25 = vadd.f32 %v591_v2, %v122_v12 }
  0x75   :  { %v185_v18 = vmul.f32 %v594_v5, %v162_v15  ;;  %v186_v20 = vmul.f32 %v594_v5, %v163_v17  ;;  %v103_v23 = vld [vmem:[#allocation2 + $0x28] sm:$0xff]  ;;  %v125_v27 = vmul.f32 %v589_v1, %v102_v21  ;;  %v104_v29 = vld [vmem:[#allocation2 + $0x30] sm:$0xff]  ;;  %v187_v32 = vmul.f32 %v594_v5, %v164_v22  ;;  %v105_v39 = vld [vmem:[#allocation2 + $0x38] sm:$0xff]  ;;  %p442_p9 = por %p441_p8, %p440_p7 }
  0x76   :  { %v199_v24 = vadd.f32 %v183_v6, %v144_v11  ;;  %v146_v26 = vadd.f32 %v591_v2, %v123_v14  ;;  %v165_v28 = vld [vmem:[#allocation8 + $0x28] sm:$0xff]  ;;  %v166_v30 = vld [vmem:[#allocation8 + $0x30] sm:$0xff]  ;;  %v147_v31 = vadd.f32 %v591_v2, %v124_v19  ;;  %v126_v33 = vmul.f32 %v589_v1, %v103_v23  ;;  %v167_v44 = vld [vmem:[#allocation8 + $0x38] sm:$0xff] }
  0x77   :  { %v188_v34 = vmul.f32 %v594_v5, %v165_v28  ;;  %v200_v36 = vadd.f32 %v184_v13, %v145_v25  ;;  %v148_v38 = vadd.f32 %v591_v2, %v125_v27  ;;  %v127_v42 = vmul.f32 %v589_v1, %v104_v29  ;;  %v106_v53 = vld [vmem:[#allocation2 + $0x40] sm:$0xff]  ;;  %v107_v55 = vld [vmem:[#allocation2 + $0x48] sm:$0xff]  ;;  %v108_v3 = vld [vmem:[#allocation2 + $0x50] sm:$0xff]  ;;  %p443_p10 = pnand %p442_p9, %p436_p6 }
  0x78   :  { %v222_v35 = vadd.f32 %v597_v7, %v199_v24  ;;  %v201_v37 = vadd.f32 %v185_v18, %v146_v26  ;;  %v202_v40 = vadd.f32 %v186_v20, %v147_v31  ;;  %v149_v41 = vadd.f32 %v591_v2, %v126_v33  ;;  %v168_v54 = vld [vmem:[#allocation8 + $0x40] sm:$0xff]  ;;  %v169_v60 = vld [vmem:[#allocation8 + $0x48] sm:$0xff]  ;;  %v170_v4 = vld [vmem:[#allocation8 + $0x50] sm:$0xff] }
  0x79   :  { %v189_v43 = vmul.f32 %v594_v5, %v166_v30  ;;  %v223_v46 = vadd.f32 %v597_v7, %v200_v36  ;;  %v203_v48 = vadd.f32 %v187_v32, %v148_v38  ;;  %v150_v51 = vadd.f32 %v591_v2, %v127_v42  ;;  %v109_v11 = vld [vmem:[#allocation2 + $0x58] sm:$0xff]  ;;  %v110_v17 = vld [vmem:[#allocation2 + $0x60] sm:$0xff]  ;;  %v111_v23 = vld [vmem:[#allocation2 + $0x68] sm:$0xff] }
  0x7a   :  { %v238_v45 = vmax.f32 %v222_v35, 0.0  ;;  %v224_v47 = vadd.f32 %v597_v7, %v201_v37  ;;  %v225_v49 = vadd.f32 %v597_v7, %v202_v40  ;;  %v204_v50 = vadd.f32 %v188_v34, %v149_v41  ;;  %v171_v12 = vld [vmem:[#allocation8 + $0x58] sm:$0xff]  ;;  %v172_v22 = vld [vmem:[#allocation8 + $0x60] sm:$0xff]  ;;  %v173_v32 = vld [vmem:[#allocation8 + $0x68] sm:$0xff] }
  0x7b   :  { %v128_v52 = vmul.f32 %v589_v1, %v105_v39  ;;  %v239_v56 = vmax.f32 %v223_v46, 0.0  ;;  %v226_v58 = vadd.f32 %v597_v7, %v203_v48  ;;  %v190_v59 = vmul.f32 %v594_v5, %v167_v44  ;;  %v112_v33 = vld [vmem:[#allocation2 + $0x70] sm:$0xff]  ;;  %v175_v48 = vld [vmem:[#allocation8 + $0x78] sm:$0xff] }
  0x7c   :  { %254 = vst [vmem:[#allocation13] sm:$0xff] %v238_v45  ;;  %v240_v57 = vmax.f32 %v224_v47, 0.0  ;;  %v241_v61 = vmax.f32 %v225_v49, 0.0  ;;  %v227_v62 = vadd.f32 %v597_v7, %v204_v50  ;;  %v205_v63 = vadd.f32 %v189_v43, %v150_v51  ;;  %v174_v42 = vld [vmem:[#allocation8 + $0x70] sm:$0xff] }
  0x7d   :  { %v151_v0 = vadd.f32 %v591_v2, %v128_v52  ;;  %255 = vst [vmem:[#allocation13 + $0x8] sm:$0xff] %v239_v56  ;;  %v242_v6 = vmax.f32 %v226_v58, 0.0  ;;  %v129_v8 = vmul.f32 %v589_v1, %v106_v53  ;;  %v191_v9 = vmul.f32 %v594_v5, %v168_v54  ;;  %v113_v47 = vld [vmem:[#allocation2 + $0x78] sm:$0xff] }
  0x7e   :  { %256 = vst [vmem:[#allocation13 + $0x10] sm:$0xff] %v240_v57  ;;  %v130_v10 = vmul.f32 %v589_v1, %v107_v55  ;;  %257 = vst [vmem:[#allocation13 + $0x18] sm:$0xff] %v241_v61  ;;  %v243_v13 = vmax.f32 %v227_v62, 0.0  ;;  %v228_v14 = vadd.f32 %v597_v7, %v205_v63  ;;  %v192_v16 = vmul.f32 %v594_v5, %v169_v60 }
  0x7f   :  { %v206_v15 = vadd.f32 %v190_v59, %v151_v0  ;;  %258 = vst [vmem:[#allocation13 + $0x20] sm:$0xff] %v242_v6  ;;  %v152_v18 = vadd.f32 %v591_v2, %v129_v8  ;;  %v131_v20 = vmul.f32 %v589_v1, %v108_v3  ;;  %v193_v21 = vmul.f32 %v594_v5, %v170_v4 }
  0x80   :  { %v153_v19 = vadd.f32 %v591_v2, %v130_v10  ;;  %259 = vst [vmem:[#allocation13 + $0x28] sm:$0xff] %v243_v13  ;;  %v244_v24 = vmax.f32 %v228_v14, 0.0  ;;  %v132_v26 = vmul.f32 %v589_v1, %v109_v11  ;;  %v194_v27 = vmul.f32 %v594_v5, %v171_v12 }
  0x81   :  { %v229_v25 = vadd.f32 %v597_v7, %v206_v15  ;;  %v207_v28 = vadd.f32 %v191_v9, %v152_v18  ;;  %v154_v30 = vadd.f32 %v591_v2, %v131_v20  ;;  %v133_v31 = vmul.f32 %v589_v1, %v110_v17 }
  0x82   :  { %v208_v29 = vadd.f32 %v192_v16, %v153_v19  ;;  %260 = vst [vmem:[#allocation13 + $0x30] sm:$0xff] %v244_v24  ;;  %v155_v35 = vadd.f32 %v591_v2, %v132_v26  ;;  %v195_v36 = vmul.f32 %v594_v5, %v172_v22  ;;  %v134_v37 = vmul.f32 %v589_v1, %v111_v23 }
  0x83   :  { %v245_v34 = vmax.f32 %v229_v25, 0.0  ;;  %v230_v38 = vadd.f32 %v597_v7, %v207_v28  ;;  %v209_v40 = vadd.f32 %v193_v21, %v154_v30  ;;  %v156_v41 = vadd.f32 %v591_v2, %v133_v31 }
  0x84   :  { %v231_v39 = vadd.f32 %v597_v7, %v208_v29  ;;  %v210_v43 = vadd.f32 %v194_v27, %v155_v35  ;;  %v157_v44 = vadd.f32 %v591_v2, %v134_v37  ;;  %v196_v45 = vmul.f32 %v594_v5, %v173_v32 }
  0x85   :  { %261 = vst [vmem:[#allocation13 + $0x38] sm:$0xff] %v245_v34  ;;  %v135_v46 = vmul.f32 %v589_v1, %v112_v33  ;;  %v246_v49 = vmax.f32 %v230_v38, 0.0  ;;  %v232_v51 = vadd.f32 %v597_v7, %v209_v40  ;;  %v211_v52 = vadd.f32 %v195_v36, %v156_v41 }
  0x86   :  { %v247_v50 = vmax.f32 %v231_v39, 0.0  ;;  %v233_v53 = vadd.f32 %v597_v7, %v210_v43  ;;  %v212_v54 = vadd.f32 %v196_v45, %v157_v44  ;;  %v197_v56 = vmul.f32 %v594_v5, %v174_v42 }
  0x87   :  { %v158_v55 = vadd.f32 %v591_v2, %v135_v46  ;;  %262 = vst [vmem:[#allocation13 + $0x40] sm:$0xff] %v246_v49  ;;  %v248_v57 = vmax.f32 %v232_v51, 0.0  ;;  %v234_v58 = vadd.f32 %v597_v7, %v211_v52  ;;  %v136_v59 = vmul.f32 %v589_v1, %v113_v47 }
  0x88   :  { %263 = vst [vmem:[#allocation13 + $0x48] sm:$0xff] %v247_v50  ;;  %v198_v60 = vmul.f32 %v594_v5, %v175_v48  ;;  %v249_v61 = vmax.f32 %v233_v53, 0.0  ;;  %v235_v62 = vadd.f32 %v597_v7, %v212_v54 }
  0x89   :  { %v213_v63 = vadd.f32 %v197_v56, %v158_v55  ;;  %264 = vst [vmem:[#allocation13 + $0x50] sm:$0xff] %v248_v57  ;;  %v250_v0 = vmax.f32 %v234_v58, 0.0  ;;  %v159_v3 = vadd.f32 %v591_v2, %v136_v59 }
  0x8a   :  { %265 = vst [vmem:[#allocation13 + $0x58] sm:$0xff] %v249_v61  ;;  %v251_v4 = vmax.f32 %v235_v62, 0.0 }
  0x8b   :  { %v236_v6 = vadd.f32 %v597_v7, %v213_v63  ;;  %266 = vst [vmem:[#allocation13 + $0x60] sm:$0xff] %v250_v0  ;;  %v214_v8 = vadd.f32 %v198_v60, %v159_v3 }
  0x8c   :  { %267 = vst [vmem:[#allocation13 + $0x68] sm:$0xff] %v251_v4 }
  0x8d   :  { %v252_v9 = vmax.f32 %v236_v6, 0.0  ;;  %v237_v1 = vadd.f32 %v597_v7, %v214_v8 }
  0x8f   :  { %268 = vst [vmem:[#allocation13 + $0x70] sm:$0xff] %v252_v9  ;;  %v253_v5 = vmax.f32 %v237_v1, 0.0 }
  0x91   :  { %269 = vst [vmem:[#allocation13 + $0x78] sm:$0xff] %v253_v5 }
  0x92   :  { %446 = shalt.err (!%p443_p10)
}
  0x93   :  { %s447_s26 = scalar_lea.hbm %s682_s6, 2048 }
  0x94   :  { %p448_p11 = scmp.ne.s32.totalorder %s682_s6, %s447_s26  ;;  %p451_p12 = scmp.lt.u32.totalorder %s447_s26, %s682_s6 }
  0x96   :  { %p453_p13 = pnand %p451_p12, %p448_p11 }
  0x98   :  { %456 = shalt.err (!%p453_p13)
}
  0x99   :  { %281 = dma.vmem_to_hbm [thread:$0]  %s276_s13, 2048, %s682_s6, [#allocation4], %s470_s21, %s470_s21, %s471_s22  }
  0x9a   :  { %465 = dma.done.wait [#allocation4], 2048  }
  0x9b   :  { %466 = vsyncadd [#allocation4], 4294965248 }
  0x9c   :  { %285 = vsyncpa [#allocation3], 1 }
  0x9d   :  { %286 = vsyncpa [#allocation6], 1 }
  0x9e   :  { %287 = vsyncpa [#allocation9], 1 }
  0x9f   :  { %288 = vsyncpa [#allocation12], 1 }
  0xa0   :  { %289 = vsyncpa [#allocation4], 1 }

</bundles_post_ra>
